<compile_context>
chip_gen: v7x
topology: tpu7x:2x2x1
jax: 0.10.0
libtpu: 0.0.40
codegen_flags: <defaults>
</compile_context>

<pallas_src>
import functools

import jax
import jax.numpy as jnp
from jax.experimental import pallas as pl
from jax.experimental.pallas import tpu as pltpu  # noqa: F401  (TPU backend)

# ---------------- model config (small, consistent with a CLIP text tower) ----
B = 2            # batch
SEQ = 16         # context length
VOCAB = 128      # vocab size (toy)
WIDTH = 64       # transformer width
HEADS = 4
HEAD_DIM = WIDTH // HEADS       # 16
MLP_DIM = 4 * WIDTH             # 256
LAYERS = 2
OUT_DIM = 32                    # text_projection output dim (embed_dim)
EPS = 1e-5


def _layernorm(x, w, b):
    mu = jnp.mean(x, axis=-1, keepdims=True)
    xc = x - mu
    var = jnp.mean(xc * xc, axis=-1, keepdims=True)
    return xc * jax.lax.rsqrt(var + EPS) * w + b


# ------------------------------ fused kernel ---------------------------------
def _clip_text_kernel(x_ref, wqkv_ref, wo_ref, wfc_ref, wpr_ref,
                      bqkv_ref, bfc_ref, vecs_ref, lnf_ref, sel_ref, proj_ref,
                      out_ref, *, batch, seq):
    x = x_ref[...]                                           # (B*S, W) f32

    # causal attention mask of the CLIP text transformer (built once, reused)
    row = jax.lax.broadcasted_iota(jnp.int32, (seq, seq), 0)
    col = jax.lax.broadcasted_iota(jnp.int32, (seq, seq), 1)
    mask = jnp.where(col <= row, 0.0, -1e30).astype(jnp.float32)   # (S, S)

    for l in range(LAYERS):
        vecs = vecs_ref[l]                                   # (8, W) packed small vectors
        ln1w, ln1b = vecs[0:1], vecs[1:2]
        ln2w, ln2b = vecs[2:3], vecs[3:4]
        bo, bpr = vecs[4:5], vecs[5:6]
        wqkv_l = wqkv_ref[l]                                 # (W, 3W) — q-scale folded in
        wo_l = wo_ref[l]                                     # (W, W)
        wfc_l = wfc_ref[l]                                   # (W, 4W)
        wpr_l = wpr_ref[l]                                   # (4W, W)
        bqkv_l = bqkv_ref[l]                                 # (1, 3W)
        bfc_l = bfc_ref[l]                                   # (1, 4W)

        # ---- attention branch (pre-LN) ----
        h = _layernorm(x, ln1w, ln1b)                        # (B*S, W)
        qkv = jnp.dot(h, wqkv_l, preferred_element_type=jnp.float32) + bqkv_l  # (B*S, 3W)

        attn_rows = []
        for b in range(batch):
            r = slice(b * seq, (b + 1) * seq)
            acc = None
            for hh in range(HEADS):
                c = hh * HEAD_DIM
                q = qkv[r, c:c + HEAD_DIM]                   # scale already folded in
                k = qkv[r, WIDTH + c:WIDTH + c + HEAD_DIM]
                v = qkv[r, 2 * WIDTH + c:2 * WIDTH + c + HEAD_DIM]
                s = jax.lax.dot_general(q, k, (((1,), (1,)), ((), ())),
                                        preferred_element_type=jnp.float32)    # (S, S)
                s = s + mask
                s = s - jnp.max(s, axis=-1, keepdims=True)
                p = jnp.exp(s)
                p = p * pl.reciprocal(jnp.sum(p, axis=-1, keepdims=True), approx=True)
                head = jnp.dot(p, v, preferred_element_type=jnp.float32)        # (S, hd)
                # accumulate through the matching row-slice of W_out (no lane concat)
                contrib = jnp.dot(head, wo_l[c:c + HEAD_DIM, :],
                                  preferred_element_type=jnp.float32)           # (S, W)
                acc = contrib if acc is None else acc + contrib
            attn_rows.append(acc)
        attn = jnp.concatenate(attn_rows, axis=0) + bo       # (B*S, W)
        x = x + attn

        # ---- MLP branch (QuickGELU, as in CLIP) ----
        h2 = _layernorm(x, ln2w, ln2b)
        m = jnp.dot(h2, wfc_l, preferred_element_type=jnp.float32) + bfc_l
        m = m * jax.nn.sigmoid(1.702 * m)
        m = jnp.dot(m, wpr_l, preferred_element_type=jnp.float32) + bpr
        x = x + m

    # ---- ln_final + EOT gather (one-hot matmul) + text_projection ----
    lnf = lnf_ref[...]                                       # (2, W)
    xf = _layernorm(x, lnf[0:1], lnf[1:2])                   # (B*S, W)
    pooled = jnp.dot(sel_ref[...], xf, preferred_element_type=jnp.float32)       # (B, W)
    out_ref[...] = jnp.dot(pooled, proj_ref[...], preferred_element_type=jnp.float32)


# ------------------------------ parameters -----------------------------------
def init_params(key):
    """Parameters in native PyTorch layouts (nn.MultiheadAttention / nn.Linear)."""
    ks = jax.random.split(key, 4 + LAYERS)
    params = dict(
        token_embedding=jax.random.normal(ks[0], (VOCAB, WIDTH), jnp.float32) * 0.02,
        positional_embedding=jax.random.normal(ks[1], (SEQ, WIDTH), jnp.float32) * 0.01,
        ln_final_w=jnp.ones((WIDTH,), jnp.float32),
        ln_final_b=jnp.zeros((WIDTH,), jnp.float32),
        text_projection=jax.random.normal(ks[2], (WIDTH, OUT_DIM), jnp.float32) * WIDTH ** -0.5,
        layers=[],
    )
    for l in range(LAYERS):
        lk = jax.random.split(ks[4 + l], 6)
        params["layers"].append(dict(
            ln1_w=jnp.ones((WIDTH,), jnp.float32), ln1_b=jnp.zeros((WIDTH,), jnp.float32),
            in_proj_w=jax.random.normal(lk[0], (3 * WIDTH, WIDTH), jnp.float32) * 0.02,
            in_proj_b=jax.random.normal(lk[1], (3 * WIDTH,), jnp.float32) * 0.01,
            out_proj_w=jax.random.normal(lk[2], (WIDTH, WIDTH), jnp.float32) * 0.02,
            out_proj_b=jnp.zeros((WIDTH,), jnp.float32),
            ln2_w=jnp.ones((WIDTH,), jnp.float32), ln2_b=jnp.zeros((WIDTH,), jnp.float32),
            fc_w=jax.random.normal(lk[3], (MLP_DIM, WIDTH), jnp.float32) * 0.02,
            fc_b=jax.random.normal(lk[4], (MLP_DIM,), jnp.float32) * 0.01,
            proj_w=jax.random.normal(lk[5], (WIDTH, MLP_DIM), jnp.float32) * 0.02,
            proj_b=jnp.zeros((WIDTH,), jnp.float32),
        ))
    return params


def prep_params(params):
    """One-time conversion to kernel-friendly layouts (transposes, QKV fuse, scale
    folding, bias packing).  Runs once, NOT per forward call."""
    scale = HEAD_DIM ** -0.5
    zeros = jnp.zeros((WIDTH,), jnp.float32)
    wqkv, wo, wfc, wpr, bqkv, bfc, vecs = [], [], [], [], [], [], []
    for lp in params["layers"]:
        w_in_t = lp["in_proj_w"].T                                   # (W, 3W), cols [q|k|v]
        w_in_t = jnp.concatenate([w_in_t[:, :WIDTH] * scale, w_in_t[:, WIDTH:]], axis=1)
        b_in = jnp.concatenate([lp["in_proj_b"][:WIDTH] * scale, lp["in_proj_b"][WIDTH:]])
        wqkv.append(w_in_t)
        bqkv.append(b_in.reshape(1, 3 * WIDTH))
        wo.append(lp["out_proj_w"].T)                                # (W, W)
        wfc.append(lp["fc_w"].T)                                     # (W, 4W)
        wpr.append(lp["proj_w"].T)                                   # (4W, W)
        bfc.append(lp["fc_b"].reshape(1, MLP_DIM))
        vecs.append(jnp.stack([lp["ln1_w"], lp["ln1_b"], lp["ln2_w"], lp["ln2_b"],
                               lp["out_proj_b"], lp["proj_b"], zeros, zeros]))
    return dict(
        token_embedding=params["token_embedding"],
        positional_embedding=params["positional_embedding"],
        wqkv=jnp.stack(wqkv), wo=jnp.stack(wo), wfc=jnp.stack(wfc), wpr=jnp.stack(wpr),
        bqkv=jnp.stack(bqkv), bfc=jnp.stack(bfc), vecs=jnp.stack(vecs),
        ln_final=jnp.stack([params["ln_final_w"], params["ln_final_b"]]),
        text_projection=params["text_projection"],
    )


# ------------------------------ forward --------------------------------------
def clip_text_feature(text, p):
    """text: (B, S) int32 token ids.  Returns (B, OUT_DIM) text features."""
    Bx, Sx = text.shape
    # token embedding lookup + positional embedding (data-dependent gather -> JAX glue)
    # TODO(synk): embedding gather + argmax stay in XLA; Pallas has no clean in-kernel
    # equivalent for these data-dependent lookups at this size.
    x = jnp.take(p["token_embedding"], text, axis=0) + p["positional_embedding"][None, :, :]
    x = x.reshape(Bx * Sx, WIDTH).astype(jnp.float32)
    # EOT token selection: x[arange(B), text.argmax(-1)]  ==  one_hot @ x_flat
    eot = jnp.argmax(text, axis=-1)                                  # (B,)
    sel = jax.nn.one_hot(eot + jnp.arange(Bx) * Sx, Bx * Sx, dtype=jnp.float32)  # (B, B*S)

    kernel = functools.partial(_clip_text_kernel, batch=Bx, seq=Sx)
    out = pl.pallas_call(
        kernel,
        out_shape=jax.ShapeDtypeStruct((Bx, OUT_DIM), jnp.float32),
    )(x, p["wqkv"], p["wo"], p["wfc"], p["wpr"],
      p["bqkv"], p["bfc"], p["vecs"], p["ln_final"], sel, p["text_projection"])
    return out


# ------------------------ pure-JAX reference (PyTorch math) ------------------
def clip_text_feature_ref(text, params):
    Bx, Sx = text.shape
    scale = HEAD_DIM ** -0.5
    x = jnp.take(params["token_embedding"], text, axis=0) + params["positional_embedding"][None]
    row = jnp.arange(Sx)[:, None]
    col = jnp.arange(Sx)[None, :]
    mask = jnp.where(col <= row, 0.0, -1e30).astype(jnp.float32)
    for lp in params["layers"]:
        h = _layernorm(x, lp["ln1_w"], lp["ln1_b"])
        qkv = h @ lp["in_proj_w"].T + lp["in_proj_b"]
        q, k, v = jnp.split(qkv, 3, axis=-1)
        q = q.reshape(Bx, Sx, HEADS, HEAD_DIM) * scale
        k = k.reshape(Bx, Sx, HEADS, HEAD_DIM)
        v = v.reshape(Bx, Sx, HEADS, HEAD_DIM)
        s = jnp.einsum("bqhd,bkhd->bhqk", q, k) + mask
        p = jax.nn.softmax(s, axis=-1)
        o = jnp.einsum("bhqk,bkhd->bqhd", p, v).reshape(Bx, Sx, WIDTH)
        attn = o @ lp["out_proj_w"].T + lp["out_proj_b"]
        x = x + attn
        h2 = _layernorm(x, lp["ln2_w"], lp["ln2_b"])
        m = h2 @ lp["fc_w"].T + lp["fc_b"]
        m = m * jax.nn.sigmoid(1.702 * m)
        m = m @ lp["proj_w"].T + lp["proj_b"]
        x = x + m
    x = _layernorm(x, params["ln_final_w"], params["ln_final_b"])
    pooled = x[jnp.arange(Bx), jnp.argmax(text, axis=-1)]
    return pooled @ params["text_projection"]


if __name__ == "__main__":
    key = jax.random.PRNGKey(0)
    pkey, tkey = jax.random.split(key)
    params = init_params(pkey)
    prepped = prep_params(params)

    text = jax.random.randint(tkey, (B, SEQ), 0, VOCAB, dtype=jnp.int32)

    fwd = jax.jit(clip_text_feature)
    out = fwd(text, prepped)
    jax.block_until_ready(out)

    assert out.shape == (B, OUT_DIM), out.shape
    assert bool(jnp.all(jnp.isfinite(out)))

    ref = clip_text_feature_ref(text, params)
    # loose tolerance: kernel uses approx EUP reciprocal in the softmax denominator
    assert bool(jnp.allclose(out, ref, atol=5e-2, rtol=5e-2)), (
        float(jnp.max(jnp.abs(out - ref))))
    print("KERNEL_OK")
</pallas_src>

<mosaic_0001>
module attributes {stable_mosaic.version = 11 : i64} {
  func.func @_clip_text_kernel(%arg0: memref<32x64xf32, #tpu.memory_space<vmem>>, %arg1: memref<2x64x192xf32, #tpu.memory_space<vmem>>, %arg2: memref<2x64x64xf32, #tpu.memory_space<vmem>>, %arg3: memref<2x64x256xf32, #tpu.memory_space<vmem>>, %arg4: memref<2x256x64xf32, #tpu.memory_space<vmem>>, %arg5: memref<2x1x192xf32, #tpu.memory_space<vmem>>, %arg6: memref<2x1x256xf32, #tpu.memory_space<vmem>>, %arg7: memref<2x8x64xf32, #tpu.memory_space<vmem>>, %arg8: memref<2x64xf32, #tpu.memory_space<vmem>>, %arg9: memref<2x32xf32, #tpu.memory_space<vmem>>, %arg10: memref<64x32xf32, #tpu.memory_space<vmem>>, %arg11: memref<2x32xf32, #tpu.memory_space<vmem>>) attributes {dimension_semantics = [], scalar_prefetch = 0 : i64, scratch_operands = 0 : i64, tpu.core_type = #tpu.core_type<tc>} {
    %c0 = arith.constant 0 : index
    %c0_0 = arith.constant 0 : index
    %0 = vector.load %arg0[%c0, %c0_0] : memref<32x64xf32, #tpu.memory_space<vmem>>, vector<32x64xf32>
    %1 = tpu.iota {dimensions = array<i32: 0>} : vector<16x16xi32>
    %2 = tpu.iota {dimensions = array<i32: 1>} : vector<16x16xi32>
    %3 = arith.cmpi sle, %2, %1 : vector<16x16xi32>
    %cst = arith.constant 0.000000e+00 : f32
    %cst_1 = arith.constant -1.000000e+30 : f32
    %4 = vector.broadcast %cst : f32 to vector<16x16xf32>
    %5 = vector.broadcast %cst_1 : f32 to vector<16x16xf32>
    %6 = arith.select %3, %4, %5 : vector<16x16xi1>, vector<16x16xf32>
    %c0_2 = arith.constant 0 : index
    %c0_3 = arith.constant 0 : index
    %c0_4 = arith.constant 0 : index
    %7 = vector.load %arg7[%c0_2, %c0_3, %c0_4] : memref<2x8x64xf32, #tpu.memory_space<vmem>>, vector<1x8x64xf32>
    %8 = vector.shape_cast %7 : vector<1x8x64xf32> to vector<8x64xf32>
    %9 = vector.extract_strided_slice %8 {offsets = [0, 0], sizes = [1, 64], strides = [1, 1]} : vector<8x64xf32> to vector<1x64xf32>
    %10 = vector.extract_strided_slice %8 {offsets = [1, 0], sizes = [1, 64], strides = [1, 1]} : vector<8x64xf32> to vector<1x64xf32>
    %11 = vector.extract_strided_slice %8 {offsets = [2, 0], sizes = [1, 64], strides = [1, 1]} : vector<8x64xf32> to vector<1x64xf32>
    %12 = vector.extract_strided_slice %8 {offsets = [3, 0], sizes = [1, 64], strides = [1, 1]} : vector<8x64xf32> to vector<1x64xf32>
    %13 = vector.extract_strided_slice %8 {offsets = [4, 0], sizes = [1, 64], strides = [1, 1]} : vector<8x64xf32> to vector<1x64xf32>
    %14 = vector.extract_strided_slice %8 {offsets = [5, 0], sizes = [1, 64], strides = [1, 1]} : vector<8x64xf32> to vector<1x64xf32>
    %c0_5 = arith.constant 0 : index
    %c0_6 = arith.constant 0 : index
    %c0_7 = arith.constant 0 : index
    %15 = vector.load %arg1[%c0_5, %c0_6, %c0_7] : memref<2x64x192xf32, #tpu.memory_space<vmem>>, vector<1x64x192xf32>
    %16 = vector.shape_cast %15 : vector<1x64x192xf32> to vector<64x192xf32>
    %c0_8 = arith.constant 0 : index
    %c0_9 = arith.constant 0 : index
    %c0_10 = arith.constant 0 : index
    %17 = vector.load %arg2[%c0_8, %c0_9, %c0_10] : memref<2x64x64xf32, #tpu.memory_space<vmem>>, vector<1x64x64xf32>
    %18 = vector.shape_cast %17 : vector<1x64x64xf32> to vector<64x64xf32>
    %c0_11 = arith.constant 0 : index
    %c0_12 = arith.constant 0 : index
    %c0_13 = arith.constant 0 : index
    %19 = vector.load %arg3[%c0_11, %c0_12, %c0_13] : memref<2x64x256xf32, #tpu.memory_space<vmem>>, vector<1x64x256xf32>
    %20 = vector.shape_cast %19 : vector<1x64x256xf32> to vector<64x256xf32>
    %c0_14 = arith.constant 0 : index
    %c0_15 = arith.constant 0 : index
    %c0_16 = arith.constant 0 : index
    %21 = vector.load %arg4[%c0_14, %c0_15, %c0_16] : memref<2x256x64xf32, #tpu.memory_space<vmem>>, vector<1x256x64xf32>
    %22 = vector.shape_cast %21 : vector<1x256x64xf32> to vector<256x64xf32>
    %c0_17 = arith.constant 0 : index
    %c0_18 = arith.constant 0 : index
    %c0_19 = arith.constant 0 : index
    %23 = vector.load %arg5[%c0_17, %c0_18, %c0_19] : memref<2x1x192xf32, #tpu.memory_space<vmem>>, vector<1x1x192xf32>
    %24 = vector.shape_cast %23 : vector<1x1x192xf32> to vector<1x192xf32>
    %c0_20 = arith.constant 0 : index
    %c0_21 = arith.constant 0 : index
    %c0_22 = arith.constant 0 : index
    %25 = vector.load %arg6[%c0_20, %c0_21, %c0_22] : memref<2x1x256xf32, #tpu.memory_space<vmem>>, vector<1x1x256xf32>
    %26 = vector.shape_cast %25 : vector<1x1x256xf32> to vector<1x256xf32>
    %cst_23 = arith.constant dense<0.000000e+00> : vector<32xf32>
    %27 = vector.multi_reduction <add>, %0, %cst_23 [1] : vector<32x64xf32> to vector<32xf32>
    %28 = vector.shape_cast %27 : vector<32xf32> to vector<32x1xf32>
    %cst_24 = arith.constant 6.400000e+01 : f32
    %29 = vector.broadcast %cst_24 : f32 to vector<32x1xf32>
    %30 = arith.divf %28, %29 : vector<32x1xf32>
    %31 = vector.broadcast %30 : vector<32x1xf32> to vector<32x64xf32>
    %32 = arith.subf %0, %31 : vector<32x64xf32>
    %33 = arith.mulf %32, %32 : vector<32x64xf32>
    %cst_25 = arith.constant dense<0.000000e+00> : vector<32xf32>
    %34 = vector.multi_reduction <add>, %33, %cst_25 [1] : vector<32x64xf32> to vector<32xf32>
    %35 = vector.shape_cast %34 : vector<32xf32> to vector<32x1xf32>
    %cst_26 = arith.constant 6.400000e+01 : f32
    %36 = vector.broadcast %cst_26 : f32 to vector<32x1xf32>
    %37 = arith.divf %35, %36 : vector<32x1xf32>
    %cst_27 = arith.constant 9.99999974E-6 : f32
    %38 = vector.broadcast %cst_27 : f32 to vector<32x1xf32>
    %39 = arith.addf %37, %38 : vector<32x1xf32>
    %40 = math.rsqrt %39 : vector<32x1xf32>
    %41 = vector.broadcast %40 : vector<32x1xf32> to vector<32x64xf32>
    %42 = arith.mulf %32, %41 : vector<32x64xf32>
    %43 = vector.broadcast %9 : vector<1x64xf32> to vector<32x64xf32>
    %44 = arith.mulf %42, %43 : vector<32x64xf32>
    %45 = vector.broadcast %10 : vector<1x64xf32> to vector<32x64xf32>
    %46 = arith.addf %44, %45 : vector<32x64xf32>
    %cst_28 = arith.constant dense<0.000000e+00> : vector<32x192xf32>
    %47 = tpu.matmul %46, %16, %cst_28 {dimension_numbers = #tpu.dot_dimension_numbers<[1], [0], [0], [1], [0, 0, 1, 1], [], []>} : vector<32x64xf32>, vector<64x192xf32>, vector<32x192xf32> -> vector<32x192xf32>
    %48 = vector.broadcast %24 : vector<1x192xf32> to vector<32x192xf32>
    %49 = arith.addf %47, %48 : vector<32x192xf32>
    %50 = vector.extract_strided_slice %49 {offsets = [0, 0], sizes = [16, 16], strides = [1, 1]} : vector<32x192xf32> to vector<16x16xf32>
    %51 = vector.extract_strided_slice %49 {offsets = [0, 64], sizes = [16, 16], strides = [1, 1]} : vector<32x192xf32> to vector<16x16xf32>
    %52 = vector.extract_strided_slice %49 {offsets = [0, 128], sizes = [16, 16], strides = [1, 1]} : vector<32x192xf32> to vector<16x16xf32>
    %cst_29 = arith.constant dense<0.000000e+00> : vector<16x16xf32>
    %53 = tpu.matmul %50, %51, %cst_29 {dimension_numbers = #tpu.dot_dimension_numbers<[1], [1], [0], [0], [0, 0, 1, 0], [], []>} : vector<16x16xf32>, vector<16x16xf32>, vector<16x16xf32> -> vector<16x16xf32>
    %54 = arith.addf %53, %6 : vector<16x16xf32>
    %cst_30 = arith.constant dense<0xFF800000> : vector<16xf32>
    %55 = vector.multi_reduction <maximumf>, %54, %cst_30 [1] : vector<16x16xf32> to vector<16xf32>
    %56 = vector.shape_cast %55 : vector<16xf32> to vector<16x1xf32>
    %57 = vector.broadcast %56 : vector<16x1xf32> to vector<16x16xf32>
    %58 = arith.subf %54, %57 : vector<16x16xf32>
    %59 = math.exp %58 : vector<16x16xf32>
    %cst_31 = arith.constant dense<0.000000e+00> : vector<16xf32>
    %60 = vector.multi_reduction <add>, %59, %cst_31 [1] : vector<16x16xf32> to vector<16xf32>
    %61 = vector.shape_cast %60 : vector<16xf32> to vector<16x1xf32>
    %62 = tpu.reciprocal %61 {approx = true} : vector<16x1xf32> -> vector<16x1xf32>
    %63 = vector.broadcast %62 : vector<16x1xf32> to vector<16x16xf32>
    %64 = arith.mulf %59, %63 : vector<16x16xf32>
    %cst_32 = arith.constant dense<0.000000e+00> : vector<16x16xf32>
    %65 = tpu.matmul %64, %52, %cst_32 {dimension_numbers = #tpu.dot_dimension_numbers<[1], [0], [0], [1], [0, 0, 1, 1], [], []>} : vector<16x16xf32>, vector<16x16xf32>, vector<16x16xf32> -> vector<16x16xf32>
    %66 = vector.extract_strided_slice %18 {offsets = [0, 0], sizes = [16, 64], strides = [1, 1]} : vector<64x64xf32> to vector<16x64xf32>
    %cst_33 = arith.constant dense<0.000000e+00> : vector<16x64xf32>
    %67 = tpu.matmul %65, %66, %cst_33 {dimension_numbers = #tpu.dot_dimension_numbers<[1], [0], [0], [1], [0, 0, 1, 1], [], []>} : vector<16x16xf32>, vector<16x64xf32>, vector<16x64xf32> -> vector<16x64xf32>
    %68 = vector.extract_strided_slice %49 {offsets = [0, 16], sizes = [16, 16], strides = [1, 1]} : vector<32x192xf32> to vector<16x16xf32>
    %69 = vector.extract_strided_slice %49 {offsets = [0, 80], sizes = [16, 16], strides = [1, 1]} : vector<32x192xf32> to vector<16x16xf32>
    %70 = vector.extract_strided_slice %49 {offsets = [0, 144], sizes = [16, 16], strides = [1, 1]} : vector<32x192xf32> to vector<16x16xf32>
    %cst_34 = arith.constant dense<0.000000e+00> : vector<16x16xf32>
    %71 = tpu.matmul %68, %69, %cst_34 {dimension_numbers = #tpu.dot_dimension_numbers<[1], [1], [0], [0], [0, 0, 1, 0], [], []>} : vector<16x16xf32>, vector<16x16xf32>, vector<16x16xf32> -> vector<16x16xf32>
    %72 = arith.addf %71, %6 : vector<16x16xf32>
    %cst_35 = arith.constant dense<0xFF800000> : vector<16xf32>
    %73 = vector.multi_reduction <maximumf>, %72, %cst_35 [1] : vector<16x16xf32> to vector<16xf32>
    %74 = vector.shape_cast %73 : vector<16xf32> to vector<16x1xf32>
    %75 = vector.broadcast %74 : vector<16x1xf32> to vector<16x16xf32>
    %76 = arith.subf %72, %75 : vector<16x16xf32>
    %77 = math.exp %76 : vector<16x16xf32>
    %cst_36 = arith.constant dense<0.000000e+00> : vector<16xf32>
    %78 = vector.multi_reduction <add>, %77, %cst_36 [1] : vector<16x16xf32> to vector<16xf32>
    %79 = vector.shape_cast %78 : vector<16xf32> to vector<16x1xf32>
    %80 = tpu.reciprocal %79 {approx = true} : vector<16x1xf32> -> vector<16x1xf32>
    %81 = vector.broadcast %80 : vector<16x1xf32> to vector<16x16xf32>
    %82 = arith.mulf %77, %81 : vector<16x16xf32>
    %cst_37 = arith.constant dense<0.000000e+00> : vector<16x16xf32>
    %83 = tpu.matmul %82, %70, %cst_37 {dimension_numbers = #tpu.dot_dimension_numbers<[1], [0], [0], [1], [0, 0, 1, 1], [], []>} : vector<16x16xf32>, vector<16x16xf32>, vector<16x16xf32> -> vector<16x16xf32>
    %84 = vector.extract_strided_slice %18 {offsets = [16, 0], sizes = [16, 64], strides = [1, 1]} : vector<64x64xf32> to vector<16x64xf32>
    %cst_38 = arith.constant dense<0.000000e+00> : vector<16x64xf32>
    %85 = tpu.matmul %83, %84, %cst_38 {dimension_numbers = #tpu.dot_dimension_numbers<[1], [0], [0], [1], [0, 0, 1, 1], [], []>} : vector<16x16xf32>, vector<16x64xf32>, vector<16x64xf32> -> vector<16x64xf32>
    %86 = arith.addf %67, %85 : vector<16x64xf32>
    %87 = vector.extract_strided_slice %49 {offsets = [0, 32], sizes = [16, 16], strides = [1, 1]} : vector<32x192xf32> to vector<16x16xf32>
    %88 = vector.extract_strided_slice %49 {offsets = [0, 96], sizes = [16, 16], strides = [1, 1]} : vector<32x192xf32> to vector<16x16xf32>
    %89 = vector.extract_strided_slice %49 {offsets = [0, 160], sizes = [16, 16], strides = [1, 1]} : vector<32x192xf32> to vector<16x16xf32>
    %cst_39 = arith.constant dense<0.000000e+00> : vector<16x16xf32>
    %90 = tpu.matmul %87, %88, %cst_39 {dimension_numbers = #tpu.dot_dimension_numbers<[1], [1], [0], [0], [0, 0, 1, 0], [], []>} : vector<16x16xf32>, vector<16x16xf32>, vector<16x16xf32> -> vector<16x16xf32>
    %91 = arith.addf %90, %6 : vector<16x16xf32>
    %cst_40 = arith.constant dense<0xFF800000> : vector<16xf32>
    %92 = vector.multi_reduction <maximumf>, %91, %cst_40 [1] : vector<16x16xf32> to vector<16xf32>
    %93 = vector.shape_cast %92 : vector<16xf32> to vector<16x1xf32>
    %94 = vector.broadcast %93 : vector<16x1xf32> to vector<16x16xf32>
    %95 = arith.subf %91, %94 : vector<16x16xf32>
    %96 = math.exp %95 : vector<16x16xf32>
    %cst_41 = arith.constant dense<0.000000e+00> : vector<16xf32>
    %97 = vector.multi_reduction <add>, %96, %cst_41 [1] : vector<16x16xf32> to vector<16xf32>
    %98 = vector.shape_cast %97 : vector<16xf32> to vector<16x1xf32>
    %99 = tpu.reciprocal %98 {approx = true} : vector<16x1xf32> -> vector<16x1xf32>
    %100 = vector.broadcast %99 : vector<16x1xf32> to vector<16x16xf32>
    %101 = arith.mulf %96, %100 : vector<16x16xf32>
    %cst_42 = arith.constant dense<0.000000e+00> : vector<16x16xf32>
    %102 = tpu.matmul %101, %89, %cst_42 {dimension_numbers = #tpu.dot_dimension_numbers<[1], [0], [0], [1], [0, 0, 1, 1], [], []>} : vector<16x16xf32>, vector<16x16xf32>, vector<16x16xf32> -> vector<16x16xf32>
    %103 = vector.extract_strided_slice %18 {offsets = [32, 0], sizes = [16, 64], strides = [1, 1]} : vector<64x64xf32> to vector<16x64xf32>
    %cst_43 = arith.constant dense<0.000000e+00> : vector<16x64xf32>
    %104 = tpu.matmul %102, %103, %cst_43 {dimension_numbers = #tpu.dot_dimension_numbers<[1], [0], [0], [1], [0, 0, 1, 1], [], []>} : vector<16x16xf32>, vector<16x64xf32>, vector<16x64xf32> -> vector<16x64xf32>
    %105 = arith.addf %86, %104 : vector<16x64xf32>
    %106 = vector.extract_strided_slice %49 {offsets = [0, 48], sizes = [16, 16], strides = [1, 1]} : vector<32x192xf32> to vector<16x16xf32>
    %107 = vector.extract_strided_slice %49 {offsets = [0, 112], sizes = [16, 16], strides = [1, 1]} : vector<32x192xf32> to vector<16x16xf32>
    %108 = vector.extract_strided_slice %49 {offsets = [0, 176], sizes = [16, 16], strides = [1, 1]} : vector<32x192xf32> to vector<16x16xf32>
    %cst_44 = arith.constant dense<0.000000e+00> : vector<16x16xf32>
    %109 = tpu.matmul %106, %107, %cst_44 {dimension_numbers = #tpu.dot_dimension_numbers<[1], [1], [0], [0], [0, 0, 1, 0], [], []>} : vector<16x16xf32>, vector<16x16xf32>, vector<16x16xf32> -> vector<16x16xf32>
    %110 = arith.addf %109, %6 : vector<16x16xf32>
    %cst_45 = arith.constant dense<0xFF800000> : vector<16xf32>
    %111 = vector.multi_reduction <maximumf>, %110, %cst_45 [1] : vector<16x16xf32> to vector<16xf32>
    %112 = vector.shape_cast %111 : vector<16xf32> to vector<16x1xf32>
    %113 = vector.broadcast %112 : vector<16x1xf32> to vector<16x16xf32>
    %114 = arith.subf %110, %113 : vector<16x16xf32>
    %115 = math.exp %114 : vector<16x16xf32>
    %cst_46 = arith.constant dense<0.000000e+00> : vector<16xf32>
    %116 = vector.multi_reduction <add>, %115, %cst_46 [1] : vector<16x16xf32> to vector<16xf32>
    %117 = vector.shape_cast %116 : vector<16xf32> to vector<16x1xf32>
    %118 = tpu.reciprocal %117 {approx = true} : vector<16x1xf32> -> vector<16x1xf32>
    %119 = vector.broadcast %118 : vector<16x1xf32> to vector<16x16xf32>
    %120 = arith.mulf %115, %119 : vector<16x16xf32>
    %cst_47 = arith.constant dense<0.000000e+00> : vector<16x16xf32>
    %121 = tpu.matmul %120, %108, %cst_47 {dimension_numbers = #tpu.dot_dimension_numbers<[1], [0], [0], [1], [0, 0, 1, 1], [], []>} : vector<16x16xf32>, vector<16x16xf32>, vector<16x16xf32> -> vector<16x16xf32>
    %122 = vector.extract_strided_slice %18 {offsets = [48, 0], sizes = [16, 64], strides = [1, 1]} : vector<64x64xf32> to vector<16x64xf32>
    %cst_48 = arith.constant dense<0.000000e+00> : vector<16x64xf32>
    %123 = tpu.matmul %121, %122, %cst_48 {dimension_numbers = #tpu.dot_dimension_numbers<[1], [0], [0], [1], [0, 0, 1, 1], [], []>} : vector<16x16xf32>, vector<16x64xf32>, vector<16x64xf32> -> vector<16x64xf32>
    %124 = arith.addf %105, %123 : vector<16x64xf32>
    %125 = vector.extract_strided_slice %49 {offsets = [16, 0], sizes = [16, 16], strides = [1, 1]} : vector<32x192xf32> to vector<16x16xf32>
    %126 = vector.extract_strided_slice %49 {offsets = [16, 64], sizes = [16, 16], strides = [1, 1]} : vector<32x192xf32> to vector<16x16xf32>
    %127 = vector.extract_strided_slice %49 {offsets = [16, 128], sizes = [16, 16], strides = [1, 1]} : vector<32x192xf32> to vector<16x16xf32>
    %cst_49 = arith.constant dense<0.000000e+00> : vector<16x16xf32>
    %128 = tpu.matmul %125, %126, %cst_49 {dimension_numbers = #tpu.dot_dimension_numbers<[1], [1], [0], [0], [0, 0, 1, 0], [], []>} : vector<16x16xf32>, vector<16x16xf32>, vector<16x16xf32> -> vector<16x16xf32>
    %129 = arith.addf %128, %6 : vector<16x16xf32>
    %cst_50 = arith.constant dense<0xFF800000> : vector<16xf32>
    %130 = vector.multi_reduction <maximumf>, %129, %cst_50 [1] : vector<16x16xf32> to vector<16xf32>
    %131 = vector.shape_cast %130 : vector<16xf32> to vector<16x1xf32>
    %132 = vector.broadcast %131 : vector<16x1xf32> to vector<16x16xf32>
    %133 = arith.subf %129, %132 : vector<16x16xf32>
    %134 = math.exp %133 : vector<16x16xf32>
    %cst_51 = arith.constant dense<0.000000e+00> : vector<16xf32>
    %135 = vector.multi_reduction <add>, %134, %cst_51 [1] : vector<16x16xf32> to vector<16xf32>
    %136 = vector.shape_cast %135 : vector<16xf32> to vector<16x1xf32>
    %137 = tpu.reciprocal %136 {approx = true} : vector<16x1xf32> -> vector<16x1xf32>
    %138 = vector.broadcast %137 : vector<16x1xf32> to vector<16x16xf32>
    %139 = arith.mulf %134, %138 : vector<16x16xf32>
    %cst_52 = arith.constant dense<0.000000e+00> : vector<16x16xf32>
    %140 = tpu.matmul %139, %127, %cst_52 {dimension_numbers = #tpu.dot_dimension_numbers<[1], [0], [0], [1], [0, 0, 1, 1], [], []>} : vector<16x16xf32>, vector<16x16xf32>, vector<16x16xf32> -> vector<16x16xf32>
    %141 = vector.extract_strided_slice %18 {offsets = [0, 0], sizes = [16, 64], strides = [1, 1]} : vector<64x64xf32> to vector<16x64xf32>
    %cst_53 = arith.constant dense<0.000000e+00> : vector<16x64xf32>
    %142 = tpu.matmul %140, %141, %cst_53 {dimension_numbers = #tpu.dot_dimension_numbers<[1], [0], [0], [1], [0, 0, 1, 1], [], []>} : vector<16x16xf32>, vector<16x64xf32>, vector<16x64xf32> -> vector<16x64xf32>
    %143 = vector.extract_strided_slice %49 {offsets = [16, 16], sizes = [16, 16], strides = [1, 1]} : vector<32x192xf32> to vector<16x16xf32>
    %144 = vector.extract_strided_slice %49 {offsets = [16, 80], sizes = [16, 16], strides = [1, 1]} : vector<32x192xf32> to vector<16x16xf32>
    %145 = vector.extract_strided_slice %49 {offsets = [16, 144], sizes = [16, 16], strides = [1, 1]} : vector<32x192xf32> to vector<16x16xf32>
    %cst_54 = arith.constant dense<0.000000e+00> : vector<16x16xf32>
    %146 = tpu.matmul %143, %144, %cst_54 {dimension_numbers = #tpu.dot_dimension_numbers<[1], [1], [0], [0], [0, 0, 1, 0], [], []>} : vector<16x16xf32>, vector<16x16xf32>, vector<16x16xf32> -> vector<16x16xf32>
    %147 = arith.addf %146, %6 : vector<16x16xf32>
    %cst_55 = arith.constant dense<0xFF800000> : vector<16xf32>
    %148 = vector.multi_reduction <maximumf>, %147, %cst_55 [1] : vector<16x16xf32> to vector<16xf32>
    %149 = vector.shape_cast %148 : vector<16xf32> to vector<16x1xf32>
    %150 = vector.broadcast %149 : vector<16x1xf32> to vector<16x16xf32>
    %151 = arith.subf %147, %150 : vector<16x16xf32>
    %152 = math.exp %151 : vector<16x16xf32>
    %cst_56 = arith.constant dense<0.000000e+00> : vector<16xf32>
    %153 = vector.multi_reduction <add>, %152, %cst_56 [1] : vector<16x16xf32> to vector<16xf32>
    %154 = vector.shape_cast %153 : vector<16xf32> to vector<16x1xf32>
    %155 = tpu.reciprocal %154 {approx = true} : vector<16x1xf32> -> vector<16x1xf32>
    %156 = vector.broadcast %155 : vector<16x1xf32> to vector<16x16xf32>
    %157 = arith.mulf %152, %156 : vector<16x16xf32>
    %cst_57 = arith.constant dense<0.000000e+00> : vector<16x16xf32>
    %158 = tpu.matmul %157, %145, %cst_57 {dimension_numbers = #tpu.dot_dimension_numbers<[1], [0], [0], [1], [0, 0, 1, 1], [], []>} : vector<16x16xf32>, vector<16x16xf32>, vector<16x16xf32> -> vector<16x16xf32>
    %159 = vector.extract_strided_slice %18 {offsets = [16, 0], sizes = [16, 64], strides = [1, 1]} : vector<64x64xf32> to vector<16x64xf32>
    %cst_58 = arith.constant dense<0.000000e+00> : vector<16x64xf32>
    %160 = tpu.matmul %158, %159, %cst_58 {dimension_numbers = #tpu.dot_dimension_numbers<[1], [0], [0], [1], [0, 0, 1, 1], [], []>} : vector<16x16xf32>, vector<16x64xf32>, vector<16x64xf32> -> vector<16x64xf32>
    %161 = arith.addf %142, %160 : vector<16x64xf32>
    %162 = vector.extract_strided_slice %49 {offsets = [16, 32], sizes = [16, 16], strides = [1, 1]} : vector<32x192xf32> to vector<16x16xf32>
    %163 = vector.extract_strided_slice %49 {offsets = [16, 96], sizes = [16, 16], strides = [1, 1]} : vector<32x192xf32> to vector<16x16xf32>
    %164 = vector.extract_strided_slice %49 {offsets = [16, 160], sizes = [16, 16], strides = [1, 1]} : vector<32x192xf32> to vector<16x16xf32>
    %cst_59 = arith.constant dense<0.000000e+00> : vector<16x16xf32>
    %165 = tpu.matmul %162, %163, %cst_59 {dimension_numbers = #tpu.dot_dimension_numbers<[1], [1], [0], [0], [0, 0, 1, 0], [], []>} : vector<16x16xf32>, vector<16x16xf32>, vector<16x16xf32> -> vector<16x16xf32>
    %166 = arith.addf %165, %6 : vector<16x16xf32>
    %cst_60 = arith.constant dense<0xFF800000> : vector<16xf32>
    %167 = vector.multi_reduction <maximumf>, %166, %cst_60 [1] : vector<16x16xf32> to vector<16xf32>
    %168 = vector.shape_cast %167 : vector<16xf32> to vector<16x1xf32>
    %169 = vector.broadcast %168 : vector<16x1xf32> to vector<16x16xf32>
    %170 = arith.subf %166, %169 : vector<16x16xf32>
    %171 = math.exp %170 : vector<16x16xf32>
    %cst_61 = arith.constant dense<0.000000e+00> : vector<16xf32>
    %172 = vector.multi_reduction <add>, %171, %cst_61 [1] : vector<16x16xf32> to vector<16xf32>
    %173 = vector.shape_cast %172 : vector<16xf32> to vector<16x1xf32>
    %174 = tpu.reciprocal %173 {approx = true} : vector<16x1xf32> -> vector<16x1xf32>
    %175 = vector.broadcast %174 : vector<16x1xf32> to vector<16x16xf32>
    %176 = arith.mulf %171, %175 : vector<16x16xf32>
    %cst_62 = arith.constant dense<0.000000e+00> : vector<16x16xf32>
    %177 = tpu.matmul %176, %164, %cst_62 {dimension_numbers = #tpu.dot_dimension_numbers<[1], [0], [0], [1], [0, 0, 1, 1], [], []>} : vector<16x16xf32>, vector<16x16xf32>, vector<16x16xf32> -> vector<16x16xf32>
    %178 = vector.extract_strided_slice %18 {offsets = [32, 0], sizes = [16, 64], strides = [1, 1]} : vector<64x64xf32> to vector<16x64xf32>
    %cst_63 = arith.constant dense<0.000000e+00> : vector<16x64xf32>
    %179 = tpu.matmul %177, %178, %cst_63 {dimension_numbers = #tpu.dot_dimension_numbers<[1], [0], [0], [1], [0, 0, 1, 1], [], []>} : vector<16x16xf32>, vector<16x64xf32>, vector<16x64xf32> -> vector<16x64xf32>
    %180 = arith.addf %161, %179 : vector<16x64xf32>
    %181 = vector.extract_strided_slice %49 {offsets = [16, 48], sizes = [16, 16], strides = [1, 1]} : vector<32x192xf32> to vector<16x16xf32>
    %182 = vector.extract_strided_slice %49 {offsets = [16, 112], sizes = [16, 16], strides = [1, 1]} : vector<32x192xf32> to vector<16x16xf32>
    %183 = vector.extract_strided_slice %49 {offsets = [16, 176], sizes = [16, 16], strides = [1, 1]} : vector<32x192xf32> to vector<16x16xf32>
    %cst_64 = arith.constant dense<0.000000e+00> : vector<16x16xf32>
    %184 = tpu.matmul %181, %182, %cst_64 {dimension_numbers = #tpu.dot_dimension_numbers<[1], [1], [0], [0], [0, 0, 1, 0], [], []>} : vector<16x16xf32>, vector<16x16xf32>, vector<16x16xf32> -> vector<16x16xf32>
    %185 = arith.addf %184, %6 : vector<16x16xf32>
    %cst_65 = arith.constant dense<0xFF800000> : vector<16xf32>
    %186 = vector.multi_reduction <maximumf>, %185, %cst_65 [1] : vector<16x16xf32> to vector<16xf32>
    %187 = vector.shape_cast %186 : vector<16xf32> to vector<16x1xf32>
    %188 = vector.broadcast %187 : vector<16x1xf32> to vector<16x16xf32>
    %189 = arith.subf %185, %188 : vector<16x16xf32>
    %190 = math.exp %189 : vector<16x16xf32>
    %cst_66 = arith.constant dense<0.000000e+00> : vector<16xf32>
    %191 = vector.multi_reduction <add>, %190, %cst_66 [1] : vector<16x16xf32> to vector<16xf32>
    %192 = vector.shape_cast %191 : vector<16xf32> to vector<16x1xf32>
    %193 = tpu.reciprocal %192 {approx = true} : vector<16x1xf32> -> vector<16x1xf32>
    %194 = vector.broadcast %193 : vector<16x1xf32> to vector<16x16xf32>
    %195 = arith.mulf %190, %194 : vector<16x16xf32>
    %cst_67 = arith.constant dense<0.000000e+00> : vector<16x16xf32>
    %196 = tpu.matmul %195, %183, %cst_67 {dimension_numbers = #tpu.dot_dimension_numbers<[1], [0], [0], [1], [0, 0, 1, 1], [], []>} : vector<16x16xf32>, vector<16x16xf32>, vector<16x16xf32> -> vector<16x16xf32>
    %197 = vector.extract_strided_slice %18 {offsets = [48, 0], sizes = [16, 64], strides = [1, 1]} : vector<64x64xf32> to vector<16x64xf32>
    %cst_68 = arith.constant dense<0.000000e+00> : vector<16x64xf32>
    %198 = tpu.matmul %196, %197, %cst_68 {dimension_numbers = #tpu.dot_dimension_numbers<[1], [0], [0], [1], [0, 0, 1, 1], [], []>} : vector<16x16xf32>, vector<16x64xf32>, vector<16x64xf32> -> vector<16x64xf32>
    %199 = arith.addf %180, %198 : vector<16x64xf32>
    %200 = tpu.concatenate %124, %199 in 0 : vector<16x64xf32>, vector<16x64xf32> -> vector<32x64xf32>
    %201 = vector.broadcast %13 : vector<1x64xf32> to vector<32x64xf32>
    %202 = arith.addf %200, %201 : vector<32x64xf32>
    %203 = arith.addf %0, %202 : vector<32x64xf32>
    %cst_69 = arith.constant dense<0.000000e+00> : vector<32xf32>
    %204 = vector.multi_reduction <add>, %203, %cst_69 [1] : vector<32x64xf32> to vector<32xf32>
    %205 = vector.shape_cast %204 : vector<32xf32> to vector<32x1xf32>
    %cst_70 = arith.constant 6.400000e+01 : f32
    %206 = vector.broadcast %cst_70 : f32 to vector<32x1xf32>
    %207 = arith.divf %205, %206 : vector<32x1xf32>
    %208 = vector.broadcast %207 : vector<32x1xf32> to vector<32x64xf32>
    %209 = arith.subf %203, %208 : vector<32x64xf32>
    %210 = arith.mulf %209, %209 : vector<32x64xf32>
    %cst_71 = arith.constant dense<0.000000e+00> : vector<32xf32>
    %211 = vector.multi_reduction <add>, %210, %cst_71 [1] : vector<32x64xf32> to vector<32xf32>
    %212 = vector.shape_cast %211 : vector<32xf32> to vector<32x1xf32>
    %cst_72 = arith.constant 6.400000e+01 : f32
    %213 = vector.broadcast %cst_72 : f32 to vector<32x1xf32>
    %214 = arith.divf %212, %213 : vector<32x1xf32>
    %cst_73 = arith.constant 9.99999974E-6 : f32
    %215 = vector.broadcast %cst_73 : f32 to vector<32x1xf32>
    %216 = arith.addf %214, %215 : vector<32x1xf32>
    %217 = math.rsqrt %216 : vector<32x1xf32>
    %218 = vector.broadcast %217 : vector<32x1xf32> to vector<32x64xf32>
    %219 = arith.mulf %209, %218 : vector<32x64xf32>
    %220 = vector.broadcast %11 : vector<1x64xf32> to vector<32x64xf32>
    %221 = arith.mulf %219, %220 : vector<32x64xf32>
    %222 = vector.broadcast %12 : vector<1x64xf32> to vector<32x64xf32>
    %223 = arith.addf %221, %222 : vector<32x64xf32>
    %cst_74 = arith.constant dense<0.000000e+00> : vector<32x256xf32>
    %224 = tpu.matmul %223, %20, %cst_74 {dimension_numbers = #tpu.dot_dimension_numbers<[1], [0], [0], [1], [0, 0, 1, 1], [], []>} : vector<32x64xf32>, vector<64x256xf32>, vector<32x256xf32> -> vector<32x256xf32>
    %225 = vector.broadcast %26 : vector<1x256xf32> to vector<32x256xf32>
    %226 = arith.addf %224, %225 : vector<32x256xf32>
    %cst_75 = arith.constant 1.702000e+00 : f32
    %227 = vector.broadcast %cst_75 : f32 to vector<32x256xf32>
    %228 = arith.mulf %227, %226 : vector<32x256xf32>
    %229 = arith.negf %228 : vector<32x256xf32>
    %230 = math.exp %229 : vector<32x256xf32>
    %cst_76 = arith.constant 1.000000e+00 : f32
    %231 = vector.broadcast %cst_76 : f32 to vector<32x256xf32>
    %232 = arith.addf %231, %230 : vector<32x256xf32>
    %233 = arith.divf %231, %232 : vector<32x256xf32>
    %234 = arith.mulf %226, %233 : vector<32x256xf32>
    %cst_77 = arith.constant dense<0.000000e+00> : vector<32x64xf32>
    %235 = tpu.matmul %234, %22, %cst_77 {dimension_numbers = #tpu.dot_dimension_numbers<[1], [0], [0], [1], [0, 0, 1, 1], [], []>} : vector<32x256xf32>, vector<256x64xf32>, vector<32x64xf32> -> vector<32x64xf32>
    %236 = vector.broadcast %14 : vector<1x64xf32> to vector<32x64xf32>
    %237 = arith.addf %235, %236 : vector<32x64xf32>
    %238 = arith.addf %203, %237 : vector<32x64xf32>
    %c1 = arith.constant 1 : index
    %c0_78 = arith.constant 0 : index
    %c0_79 = arith.constant 0 : index
    %239 = vector.load %arg7[%c1, %c0_78, %c0_79] : memref<2x8x64xf32, #tpu.memory_space<vmem>>, vector<1x8x64xf32>
    %240 = vector.shape_cast %239 : vector<1x8x64xf32> to vector<8x64xf32>
    %241 = vector.extract_strided_slice %240 {offsets = [0, 0], sizes = [1, 64], strides = [1, 1]} : vector<8x64xf32> to vector<1x64xf32>
    %242 = vector.extract_strided_slice %240 {offsets = [1, 0], sizes = [1, 64], strides = [1, 1]} : vector<8x64xf32> to vector<1x64xf32>
    %243 = vector.extract_strided_slice %240 {offsets = [2, 0], sizes = [1, 64], strides = [1, 1]} : vector<8x64xf32> to vector<1x64xf32>
    %244 = vector.extract_strided_slice %240 {offsets = [3, 0], sizes = [1, 64], strides = [1, 1]} : vector<8x64xf32> to vector<1x64xf32>
    %245 = vector.extract_strided_slice %240 {offsets = [4, 0], sizes = [1, 64], strides = [1, 1]} : vector<8x64xf32> to vector<1x64xf32>
    %246 = vector.extract_strided_slice %240 {offsets = [5, 0], sizes = [1, 64], strides = [1, 1]} : vector<8x64xf32> to vector<1x64xf32>
    %c1_80 = arith.constant 1 : index
    %c0_81 = arith.constant 0 : index
    %c0_82 = arith.constant 0 : index
    %247 = vector.load %arg1[%c1_80, %c0_81, %c0_82] : memref<2x64x192xf32, #tpu.memory_space<vmem>>, vector<1x64x192xf32>
    %248 = vector.shape_cast %247 : vector<1x64x192xf32> to vector<64x192xf32>
    %c1_83 = arith.constant 1 : index
    %c0_84 = arith.constant 0 : index
    %c0_85 = arith.constant 0 : index
    %249 = vector.load %arg2[%c1_83, %c0_84, %c0_85] : memref<2x64x64xf32, #tpu.memory_space<vmem>>, vector<1x64x64xf32>
    %250 = vector.shape_cast %249 : vector<1x64x64xf32> to vector<64x64xf32>
    %c1_86 = arith.constant 1 : index
    %c0_87 = arith.constant 0 : index
    %c0_88 = arith.constant 0 : index
    %251 = vector.load %arg3[%c1_86, %c0_87, %c0_88] : memref<2x64x256xf32, #tpu.memory_space<vmem>>, vector<1x64x256xf32>
    %252 = vector.shape_cast %251 : vector<1x64x256xf32> to vector<64x256xf32>
    %c1_89 = arith.constant 1 : index
    %c0_90 = arith.constant 0 : index
    %c0_91 = arith.constant 0 : index
    %253 = vector.load %arg4[%c1_89, %c0_90, %c0_91] : memref<2x256x64xf32, #tpu.memory_space<vmem>>, vector<1x256x64xf32>
    %254 = vector.shape_cast %253 : vector<1x256x64xf32> to vector<256x64xf32>
    %c1_92 = arith.constant 1 : index
    %c0_93 = arith.constant 0 : index
    %c0_94 = arith.constant 0 : index
    %255 = vector.load %arg5[%c1_92, %c0_93, %c0_94] : memref<2x1x192xf32, #tpu.memory_space<vmem>>, vector<1x1x192xf32>
    %256 = vector.shape_cast %255 : vector<1x1x192xf32> to vector<1x192xf32>
    %c1_95 = arith.constant 1 : index
    %c0_96 = arith.constant 0 : index
    %c0_97 = arith.constant 0 : index
    %257 = vector.load %arg6[%c1_95, %c0_96, %c0_97] : memref<2x1x256xf32, #tpu.memory_space<vmem>>, vector<1x1x256xf32>
    %258 = vector.shape_cast %257 : vector<1x1x256xf32> to vector<1x256xf32>
    %cst_98 = arith.constant dense<0.000000e+00> : vector<32xf32>
    %259 = vector.multi_reduction <add>, %238, %cst_98 [1] : vector<32x64xf32> to vector<32xf32>
    %260 = vector.shape_cast %259 : vector<32xf32> to vector<32x1xf32>
    %cst_99 = arith.constant 6.400000e+01 : f32
    %261 = vector.broadcast %cst_99 : f32 to vector<32x1xf32>
    %262 = arith.divf %260, %261 : vector<32x1xf32>
    %263 = vector.broadcast %262 : vector<32x1xf32> to vector<32x64xf32>
    %264 = arith.subf %238, %263 : vector<32x64xf32>
    %265 = arith.mulf %264, %264 : vector<32x64xf32>
    %cst_100 = arith.constant dense<0.000000e+00> : vector<32xf32>
    %266 = vector.multi_reduction <add>, %265, %cst_100 [1] : vector<32x64xf32> to vector<32xf32>
    %267 = vector.shape_cast %266 : vector<32xf32> to vector<32x1xf32>
    %cst_101 = arith.constant 6.400000e+01 : f32
    %268 = vector.broadcast %cst_101 : f32 to vector<32x1xf32>
    %269 = arith.divf %267, %268 : vector<32x1xf32>
    %cst_102 = arith.constant 9.99999974E-6 : f32
    %270 = vector.broadcast %cst_102 : f32 to vector<32x1xf32>
    %271 = arith.addf %269, %270 : vector<32x1xf32>
    %272 = math.rsqrt %271 : vector<32x1xf32>
    %273 = vector.broadcast %272 : vector<32x1xf32> to vector<32x64xf32>
    %274 = arith.mulf %264, %273 : vector<32x64xf32>
    %275 = vector.broadcast %241 : vector<1x64xf32> to vector<32x64xf32>
    %276 = arith.mulf %274, %275 : vector<32x64xf32>
    %277 = vector.broadcast %242 : vector<1x64xf32> to vector<32x64xf32>
    %278 = arith.addf %276, %277 : vector<32x64xf32>
    %cst_103 = arith.constant dense<0.000000e+00> : vector<32x192xf32>
    %279 = tpu.matmul %278, %248, %cst_103 {dimension_numbers = #tpu.dot_dimension_numbers<[1], [0], [0], [1], [0, 0, 1, 1], [], []>} : vector<32x64xf32>, vector<64x192xf32>, vector<32x192xf32> -> vector<32x192xf32>
    %280 = vector.broadcast %256 : vector<1x192xf32> to vector<32x192xf32>
    %281 = arith.addf %279, %280 : vector<32x192xf32>
    %282 = vector.extract_strided_slice %281 {offsets = [0, 0], sizes = [16, 16], strides = [1, 1]} : vector<32x192xf32> to vector<16x16xf32>
    %283 = vector.extract_strided_slice %281 {offsets = [0, 64], sizes = [16, 16], strides = [1, 1]} : vector<32x192xf32> to vector<16x16xf32>
    %284 = vector.extract_strided_slice %281 {offsets = [0, 128], sizes = [16, 16], strides = [1, 1]} : vector<32x192xf32> to vector<16x16xf32>
    %cst_104 = arith.constant dense<0.000000e+00> : vector<16x16xf32>
    %285 = tpu.matmul %282, %283, %cst_104 {dimension_numbers = #tpu.dot_dimension_numbers<[1], [1], [0], [0], [0, 0, 1, 0], [], []>} : vector<16x16xf32>, vector<16x16xf32>, vector<16x16xf32> -> vector<16x16xf32>
    %286 = arith.addf %285, %6 : vector<16x16xf32>
    %cst_105 = arith.constant dense<0xFF800000> : vector<16xf32>
    %287 = vector.multi_reduction <maximumf>, %286, %cst_105 [1] : vector<16x16xf32> to vector<16xf32>
    %288 = vector.shape_cast %287 : vector<16xf32> to vector<16x1xf32>
    %289 = vector.broadcast %288 : vector<16x1xf32> to vector<16x16xf32>
    %290 = arith.subf %286, %289 : vector<16x16xf32>
    %291 = math.exp %290 : vector<16x16xf32>
    %cst_106 = arith.constant dense<0.000000e+00> : vector<16xf32>
    %292 = vector.multi_reduction <add>, %291, %cst_106 [1] : vector<16x16xf32> to vector<16xf32>
    %293 = vector.shape_cast %292 : vector<16xf32> to vector<16x1xf32>
    %294 = tpu.reciprocal %293 {approx = true} : vector<16x1xf32> -> vector<16x1xf32>
    %295 = vector.broadcast %294 : vector<16x1xf32> to vector<16x16xf32>
    %296 = arith.mulf %291, %295 : vector<16x16xf32>
    %cst_107 = arith.constant dense<0.000000e+00> : vector<16x16xf32>
    %297 = tpu.matmul %296, %284, %cst_107 {dimension_numbers = #tpu.dot_dimension_numbers<[1], [0], [0], [1], [0, 0, 1, 1], [], []>} : vector<16x16xf32>, vector<16x16xf32>, vector<16x16xf32> -> vector<16x16xf32>
    %298 = vector.extract_strided_slice %250 {offsets = [0, 0], sizes = [16, 64], strides = [1, 1]} : vector<64x64xf32> to vector<16x64xf32>
    %cst_108 = arith.constant dense<0.000000e+00> : vector<16x64xf32>
    %299 = tpu.matmul %297, %298, %cst_108 {dimension_numbers = #tpu.dot_dimension_numbers<[1], [0], [0], [1], [0, 0, 1, 1], [], []>} : vector<16x16xf32>, vector<16x64xf32>, vector<16x64xf32> -> vector<16x64xf32>
    %300 = vector.extract_strided_slice %281 {offsets = [0, 16], sizes = [16, 16], strides = [1, 1]} : vector<32x192xf32> to vector<16x16xf32>
    %301 = vector.extract_strided_slice %281 {offsets = [0, 80], sizes = [16, 16], strides = [1, 1]} : vector<32x192xf32> to vector<16x16xf32>
    %302 = vector.extract_strided_slice %281 {offsets = [0, 144], sizes = [16, 16], strides = [1, 1]} : vector<32x192xf32> to vector<16x16xf32>
    %cst_109 = arith.constant dense<0.000000e+00> : vector<16x16xf32>
    %303 = tpu.matmul %300, %301, %cst_109 {dimension_numbers = #tpu.dot_dimension_numbers<[1], [1], [0], [0], [0, 0, 1, 0], [], []>} : vector<16x16xf32>, vector<16x16xf32>, vector<16x16xf32> -> vector<16x16xf32>
    %304 = arith.addf %303, %6 : vector<16x16xf32>
    %cst_110 = arith.constant dense<0xFF800000> : vector<16xf32>
    %305 = vector.multi_reduction <maximumf>, %304, %cst_110 [1] : vector<16x16xf32> to vector<16xf32>
    %306 = vector.shape_cast %305 : vector<16xf32> to vector<16x1xf32>
    %307 = vector.broadcast %306 : vector<16x1xf32> to vector<16x16xf32>
    %308 = arith.subf %304, %307 : vector<16x16xf32>
    %309 = math.exp %308 : vector<16x16xf32>
    %cst_111 = arith.constant dense<0.000000e+00> : vector<16xf32>
    %310 = vector.multi_reduction <add>, %309, %cst_111 [1] : vector<16x16xf32> to vector<16xf32>
    %311 = vector.shape_cast %310 : vector<16xf32> to vector<16x1xf32>
    %312 = tpu.reciprocal %311 {approx = true} : vector<16x1xf32> -> vector<16x1xf32>
    %313 = vector.broadcast %312 : vector<16x1xf32> to vector<16x16xf32>
    %314 = arith.mulf %309, %313 : vector<16x16xf32>
    %cst_112 = arith.constant dense<0.000000e+00> : vector<16x16xf32>
    %315 = tpu.matmul %314, %302, %cst_112 {dimension_numbers = #tpu.dot_dimension_numbers<[1], [0], [0], [1], [0, 0, 1, 1], [], []>} : vector<16x16xf32>, vector<16x16xf32>, vector<16x16xf32> -> vector<16x16xf32>
    %316 = vector.extract_strided_slice %250 {offsets = [16, 0], sizes = [16, 64], strides = [1, 1]} : vector<64x64xf32> to vector<16x64xf32>
    %cst_113 = arith.constant dense<0.000000e+00> : vector<16x64xf32>
    %317 = tpu.matmul %315, %316, %cst_113 {dimension_numbers = #tpu.dot_dimension_numbers<[1], [0], [0], [1], [0, 0, 1, 1], [], []>} : vector<16x16xf32>, vector<16x64xf32>, vector<16x64xf32> -> vector<16x64xf32>
    %318 = arith.addf %299, %317 : vector<16x64xf32>
    %319 = vector.extract_strided_slice %281 {offsets = [0, 32], sizes = [16, 16], strides = [1, 1]} : vector<32x192xf32> to vector<16x16xf32>
    %320 = vector.extract_strided_slice %281 {offsets = [0, 96], sizes = [16, 16], strides = [1, 1]} : vector<32x192xf32> to vector<16x16xf32>
    %321 = vector.extract_strided_slice %281 {offsets = [0, 160], sizes = [16, 16], strides = [1, 1]} : vector<32x192xf32> to vector<16x16xf32>
    %cst_114 = arith.constant dense<0.000000e+00> : vector<16x16xf32>
    %322 = tpu.matmul %319, %320, %cst_114 {dimension_numbers = #tpu.dot_dimension_numbers<[1], [1], [0], [0], [0, 0, 1, 0], [], []>} : vector<16x16xf32>, vector<16x16xf32>, vector<16x16xf32> -> vector<16x16xf32>
    %323 = arith.addf %322, %6 : vector<16x16xf32>
    %cst_115 = arith.constant dense<0xFF800000> : vector<16xf32>
    %324 = vector.multi_reduction <maximumf>, %323, %cst_115 [1] : vector<16x16xf32> to vector<16xf32>
    %325 = vector.shape_cast %324 : vector<16xf32> to vector<16x1xf32>
    %326 = vector.broadcast %325 : vector<16x1xf32> to vector<16x16xf32>
    %327 = arith.subf %323, %326 : vector<16x16xf32>
    %328 = math.exp %327 : vector<16x16xf32>
    %cst_116 = arith.constant dense<0.000000e+00> : vector<16xf32>
    %329 = vector.multi_reduction <add>, %328, %cst_116 [1] : vector<16x16xf32> to vector<16xf32>
    %330 = vector.shape_cast %329 : vector<16xf32> to vector<16x1xf32>
    %331 = tpu.reciprocal %330 {approx = true} : vector<16x1xf32> -> vector<16x1xf32>
    %332 = vector.broadcast %331 : vector<16x1xf32> to vector<16x16xf32>
    %333 = arith.mulf %328, %332 : vector<16x16xf32>
    %cst_117 = arith.constant dense<0.000000e+00> : vector<16x16xf32>
    %334 = tpu.matmul %333, %321, %cst_117 {dimension_numbers = #tpu.dot_dimension_numbers<[1], [0], [0], [1], [0, 0, 1, 1], [], []>} : vector<16x16xf32>, vector<16x16xf32>, vector<16x16xf32> -> vector<16x16xf32>
    %335 = vector.extract_strided_slice %250 {offsets = [32, 0], sizes = [16, 64], strides = [1, 1]} : vector<64x64xf32> to vector<16x64xf32>
    %cst_118 = arith.constant dense<0.000000e+00> : vector<16x64xf32>
    %336 = tpu.matmul %334, %335, %cst_118 {dimension_numbers = #tpu.dot_dimension_numbers<[1], [0], [0], [1], [0, 0, 1, 1], [], []>} : vector<16x16xf32>, vector<16x64xf32>, vector<16x64xf32> -> vector<16x64xf32>
    %337 = arith.addf %318, %336 : vector<16x64xf32>
    %338 = vector.extract_strided_slice %281 {offsets = [0, 48], sizes = [16, 16], strides = [1, 1]} : vector<32x192xf32> to vector<16x16xf32>
    %339 = vector.extract_strided_slice %281 {offsets = [0, 112], sizes = [16, 16], strides = [1, 1]} : vector<32x192xf32> to vector<16x16xf32>
    %340 = vector.extract_strided_slice %281 {offsets = [0, 176], sizes = [16, 16], strides = [1, 1]} : vector<32x192xf32> to vector<16x16xf32>
    %cst_119 = arith.constant dense<0.000000e+00> : vector<16x16xf32>
    %341 = tpu.matmul %338, %339, %cst_119 {dimension_numbers = #tpu.dot_dimension_numbers<[1], [1], [0], [0], [0, 0, 1, 0], [], []>} : vector<16x16xf32>, vector<16x16xf32>, vector<16x16xf32> -> vector<16x16xf32>
    %342 = arith.addf %341, %6 : vector<16x16xf32>
    %cst_120 = arith.constant dense<0xFF800000> : vector<16xf32>
    %343 = vector.multi_reduction <maximumf>, %342, %cst_120 [1] : vector<16x16xf32> to vector<16xf32>
    %344 = vector.shape_cast %343 : vector<16xf32> to vector<16x1xf32>
    %345 = vector.broadcast %344 : vector<16x1xf32> to vector<16x16xf32>
    %346 = arith.subf %342, %345 : vector<16x16xf32>
    %347 = math.exp %346 : vector<16x16xf32>
    %cst_121 = arith.constant dense<0.000000e+00> : vector<16xf32>
    %348 = vector.multi_reduction <add>, %347, %cst_121 [1] : vector<16x16xf32> to vector<16xf32>
    %349 = vector.shape_cast %348 : vector<16xf32> to vector<16x1xf32>
    %350 = tpu.reciprocal %349 {approx = true} : vector<16x1xf32> -> vector<16x1xf32>
    %351 = vector.broadcast %350 : vector<16x1xf32> to vector<16x16xf32>
    %352 = arith.mulf %347, %351 : vector<16x16xf32>
    %cst_122 = arith.constant dense<0.000000e+00> : vector<16x16xf32>
    %353 = tpu.matmul %352, %340, %cst_122 {dimension_numbers = #tpu.dot_dimension_numbers<[1], [0], [0], [1], [0, 0, 1, 1], [], []>} : vector<16x16xf32>, vector<16x16xf32>, vector<16x16xf32> -> vector<16x16xf32>
    %354 = vector.extract_strided_slice %250 {offsets = [48, 0], sizes = [16, 64], strides = [1, 1]} : vector<64x64xf32> to vector<16x64xf32>
    %cst_123 = arith.constant dense<0.000000e+00> : vector<16x64xf32>
    %355 = tpu.matmul %353, %354, %cst_123 {dimension_numbers = #tpu.dot_dimension_numbers<[1], [0], [0], [1], [0, 0, 1, 1], [], []>} : vector<16x16xf32>, vector<16x64xf32>, vector<16x64xf32> -> vector<16x64xf32>
    %356 = arith.addf %337, %355 : vector<16x64xf32>
    %357 = vector.extract_strided_slice %281 {offsets = [16, 0], sizes = [16, 16], strides = [1, 1]} : vector<32x192xf32> to vector<16x16xf32>
    %358 = vector.extract_strided_slice %281 {offsets = [16, 64], sizes = [16, 16], strides = [1, 1]} : vector<32x192xf32> to vector<16x16xf32>
    %359 = vector.extract_strided_slice %281 {offsets = [16, 128], sizes = [16, 16], strides = [1, 1]} : vector<32x192xf32> to vector<16x16xf32>
    %cst_124 = arith.constant dense<0.000000e+00> : vector<16x16xf32>
    %360 = tpu.matmul %357, %358, %cst_124 {dimension_numbers = #tpu.dot_dimension_numbers<[1], [1], [0], [0], [0, 0, 1, 0], [], []>} : vector<16x16xf32>, vector<16x16xf32>, vector<16x16xf32> -> vector<16x16xf32>
    %361 = arith.addf %360, %6 : vector<16x16xf32>
    %cst_125 = arith.constant dense<0xFF800000> : vector<16xf32>
    %362 = vector.multi_reduction <maximumf>, %361, %cst_125 [1] : vector<16x16xf32> to vector<16xf32>
    %363 = vector.shape_cast %362 : vector<16xf32> to vector<16x1xf32>
    %364 = vector.broadcast %363 : vector<16x1xf32> to vector<16x16xf32>
    %365 = arith.subf %361, %364 : vector<16x16xf32>
    %366 = math.exp %365 : vector<16x16xf32>
    %cst_126 = arith.constant dense<0.000000e+00> : vector<16xf32>
    %367 = vector.multi_reduction <add>, %366, %cst_126 [1] : vector<16x16xf32> to vector<16xf32>
    %368 = vector.shape_cast %367 : vector<16xf32> to vector<16x1xf32>
    %369 = tpu.reciprocal %368 {approx = true} : vector<16x1xf32> -> vector<16x1xf32>
    %370 = vector.broadcast %369 : vector<16x1xf32> to vector<16x16xf32>
    %371 = arith.mulf %366, %370 : vector<16x16xf32>
    %cst_127 = arith.constant dense<0.000000e+00> : vector<16x16xf32>
    %372 = tpu.matmul %371, %359, %cst_127 {dimension_numbers = #tpu.dot_dimension_numbers<[1], [0], [0], [1], [0, 0, 1, 1], [], []>} : vector<16x16xf32>, vector<16x16xf32>, vector<16x16xf32> -> vector<16x16xf32>
    %373 = vector.extract_strided_slice %250 {offsets = [0, 0], sizes = [16, 64], strides = [1, 1]} : vector<64x64xf32> to vector<16x64xf32>
    %cst_128 = arith.constant dense<0.000000e+00> : vector<16x64xf32>
    %374 = tpu.matmul %372, %373, %cst_128 {dimension_numbers = #tpu.dot_dimension_numbers<[1], [0], [0], [1], [0, 0, 1, 1], [], []>} : vector<16x16xf32>, vector<16x64xf32>, vector<16x64xf32> -> vector<16x64xf32>
    %375 = vector.extract_strided_slice %281 {offsets = [16, 16], sizes = [16, 16], strides = [1, 1]} : vector<32x192xf32> to vector<16x16xf32>
    %376 = vector.extract_strided_slice %281 {offsets = [16, 80], sizes = [16, 16], strides = [1, 1]} : vector<32x192xf32> to vector<16x16xf32>
    %377 = vector.extract_strided_slice %281 {offsets = [16, 144], sizes = [16, 16], strides = [1, 1]} : vector<32x192xf32> to vector<16x16xf32>
    %cst_129 = arith.constant dense<0.000000e+00> : vector<16x16xf32>
    %378 = tpu.matmul %375, %376, %cst_129 {dimension_numbers = #tpu.dot_dimension_numbers<[1], [1], [0], [0], [0, 0, 1, 0], [], []>} : vector<16x16xf32>, vector<16x16xf32>, vector<16x16xf32> -> vector<16x16xf32>
    %379 = arith.addf %378, %6 : vector<16x16xf32>
    %cst_130 = arith.constant dense<0xFF800000> : vector<16xf32>
    %380 = vector.multi_reduction <maximumf>, %379, %cst_130 [1] : vector<16x16xf32> to vector<16xf32>
    %381 = vector.shape_cast %380 : vector<16xf32> to vector<16x1xf32>
    %382 = vector.broadcast %381 : vector<16x1xf32> to vector<16x16xf32>
    %383 = arith.subf %379, %382 : vector<16x16xf32>
    %384 = math.exp %383 : vector<16x16xf32>
    %cst_131 = arith.constant dense<0.000000e+00> : vector<16xf32>
    %385 = vector.multi_reduction <add>, %384, %cst_131 [1] : vector<16x16xf32> to vector<16xf32>
    %386 = vector.shape_cast %385 : vector<16xf32> to vector<16x1xf32>
    %387 = tpu.reciprocal %386 {approx = true} : vector<16x1xf32> -> vector<16x1xf32>
    %388 = vector.broadcast %387 : vector<16x1xf32> to vector<16x16xf32>
    %389 = arith.mulf %384, %388 : vector<16x16xf32>
    %cst_132 = arith.constant dense<0.000000e+00> : vector<16x16xf32>
    %390 = tpu.matmul %389, %377, %cst_132 {dimension_numbers = #tpu.dot_dimension_numbers<[1], [0], [0], [1], [0, 0, 1, 1], [], []>} : vector<16x16xf32>, vector<16x16xf32>, vector<16x16xf32> -> vector<16x16xf32>
    %391 = vector.extract_strided_slice %250 {offsets = [16, 0], sizes = [16, 64], strides = [1, 1]} : vector<64x64xf32> to vector<16x64xf32>
    %cst_133 = arith.constant dense<0.000000e+00> : vector<16x64xf32>
    %392 = tpu.matmul %390, %391, %cst_133 {dimension_numbers = #tpu.dot_dimension_numbers<[1], [0], [0], [1], [0, 0, 1, 1], [], []>} : vector<16x16xf32>, vector<16x64xf32>, vector<16x64xf32> -> vector<16x64xf32>
    %393 = arith.addf %374, %392 : vector<16x64xf32>
    %394 = vector.extract_strided_slice %281 {offsets = [16, 32], sizes = [16, 16], strides = [1, 1]} : vector<32x192xf32> to vector<16x16xf32>
    %395 = vector.extract_strided_slice %281 {offsets = [16, 96], sizes = [16, 16], strides = [1, 1]} : vector<32x192xf32> to vector<16x16xf32>
    %396 = vector.extract_strided_slice %281 {offsets = [16, 160], sizes = [16, 16], strides = [1, 1]} : vector<32x192xf32> to vector<16x16xf32>
    %cst_134 = arith.constant dense<0.000000e+00> : vector<16x16xf32>
    %397 = tpu.matmul %394, %395, %cst_134 {dimension_numbers = #tpu.dot_dimension_numbers<[1], [1], [0], [0], [0, 0, 1, 0], [], []>} : vector<16x16xf32>, vector<16x16xf32>, vector<16x16xf32> -> vector<16x16xf32>
    %398 = arith.addf %397, %6 : vector<16x16xf32>
    %cst_135 = arith.constant dense<0xFF800000> : vector<16xf32>
    %399 = vector.multi_reduction <maximumf>, %398, %cst_135 [1] : vector<16x16xf32> to vector<16xf32>
    %400 = vector.shape_cast %399 : vector<16xf32> to vector<16x1xf32>
    %401 = vector.broadcast %400 : vector<16x1xf32> to vector<16x16xf32>
    %402 = arith.subf %398, %401 : vector<16x16xf32>
    %403 = math.exp %402 : vector<16x16xf32>
    %cst_136 = arith.constant dense<0.000000e+00> : vector<16xf32>
    %404 = vector.multi_reduction <add>, %403, %cst_136 [1] : vector<16x16xf32> to vector<16xf32>
    %405 = vector.shape_cast %404 : vector<16xf32> to vector<16x1xf32>
    %406 = tpu.reciprocal %405 {approx = true} : vector<16x1xf32> -> vector<16x1xf32>
    %407 = vector.broadcast %406 : vector<16x1xf32> to vector<16x16xf32>
    %408 = arith.mulf %403, %407 : vector<16x16xf32>
    %cst_137 = arith.constant dense<0.000000e+00> : vector<16x16xf32>
    %409 = tpu.matmul %408, %396, %cst_137 {dimension_numbers = #tpu.dot_dimension_numbers<[1], [0], [0], [1], [0, 0, 1, 1], [], []>} : vector<16x16xf32>, vector<16x16xf32>, vector<16x16xf32> -> vector<16x16xf32>
    %410 = vector.extract_strided_slice %250 {offsets = [32, 0], sizes = [16, 64], strides = [1, 1]} : vector<64x64xf32> to vector<16x64xf32>
    %cst_138 = arith.constant dense<0.000000e+00> : vector<16x64xf32>
    %411 = tpu.matmul %409, %410, %cst_138 {dimension_numbers = #tpu.dot_dimension_numbers<[1], [0], [0], [1], [0, 0, 1, 1], [], []>} : vector<16x16xf32>, vector<16x64xf32>, vector<16x64xf32> -> vector<16x64xf32>
    %412 = arith.addf %393, %411 : vector<16x64xf32>
    %413 = vector.extract_strided_slice %281 {offsets = [16, 48], sizes = [16, 16], strides = [1, 1]} : vector<32x192xf32> to vector<16x16xf32>
    %414 = vector.extract_strided_slice %281 {offsets = [16, 112], sizes = [16, 16], strides = [1, 1]} : vector<32x192xf32> to vector<16x16xf32>
    %415 = vector.extract_strided_slice %281 {offsets = [16, 176], sizes = [16, 16], strides = [1, 1]} : vector<32x192xf32> to vector<16x16xf32>
    %cst_139 = arith.constant dense<0.000000e+00> : vector<16x16xf32>
    %416 = tpu.matmul %413, %414, %cst_139 {dimension_numbers = #tpu.dot_dimension_numbers<[1], [1], [0], [0], [0, 0, 1, 0], [], []>} : vector<16x16xf32>, vector<16x16xf32>, vector<16x16xf32> -> vector<16x16xf32>
    %417 = arith.addf %416, %6 : vector<16x16xf32>
    %cst_140 = arith.constant dense<0xFF800000> : vector<16xf32>
    %418 = vector.multi_reduction <maximumf>, %417, %cst_140 [1] : vector<16x16xf32> to vector<16xf32>
    %419 = vector.shape_cast %418 : vector<16xf32> to vector<16x1xf32>
    %420 = vector.broadcast %419 : vector<16x1xf32> to vector<16x16xf32>
    %421 = arith.subf %417, %420 : vector<16x16xf32>
    %422 = math.exp %421 : vector<16x16xf32>
    %cst_141 = arith.constant dense<0.000000e+00> : vector<16xf32>
    %423 = vector.multi_reduction <add>, %422, %cst_141 [1] : vector<16x16xf32> to vector<16xf32>
    %424 = vector.shape_cast %423 : vector<16xf32> to vector<16x1xf32>
    %425 = tpu.reciprocal %424 {approx = true} : vector<16x1xf32> -> vector<16x1xf32>
    %426 = vector.broadcast %425 : vector<16x1xf32> to vector<16x16xf32>
    %427 = arith.mulf %422, %426 : vector<16x16xf32>
    %cst_142 = arith.constant dense<0.000000e+00> : vector<16x16xf32>
    %428 = tpu.matmul %427, %415, %cst_142 {dimension_numbers = #tpu.dot_dimension_numbers<[1], [0], [0], [1], [0, 0, 1, 1], [], []>} : vector<16x16xf32>, vector<16x16xf32>, vector<16x16xf32> -> vector<16x16xf32>
    %429 = vector.extract_strided_slice %250 {offsets = [48, 0], sizes = [16, 64], strides = [1, 1]} : vector<64x64xf32> to vector<16x64xf32>
    %cst_143 = arith.constant dense<0.000000e+00> : vector<16x64xf32>
    %430 = tpu.matmul %428, %429, %cst_143 {dimension_numbers = #tpu.dot_dimension_numbers<[1], [0], [0], [1], [0, 0, 1, 1], [], []>} : vector<16x16xf32>, vector<16x64xf32>, vector<16x64xf32> -> vector<16x64xf32>
    %431 = arith.addf %412, %430 : vector<16x64xf32>
    %432 = tpu.concatenate %356, %431 in 0 : vector<16x64xf32>, vector<16x64xf32> -> vector<32x64xf32>
    %433 = vector.broadcast %245 : vector<1x64xf32> to vector<32x64xf32>
    %434 = arith.addf %432, %433 : vector<32x64xf32>
    %435 = arith.addf %238, %434 : vector<32x64xf32>
    %cst_144 = arith.constant dense<0.000000e+00> : vector<32xf32>
    %436 = vector.multi_reduction <add>, %435, %cst_144 [1] : vector<32x64xf32> to vector<32xf32>
    %437 = vector.shape_cast %436 : vector<32xf32> to vector<32x1xf32>
    %cst_145 = arith.constant 6.400000e+01 : f32
    %438 = vector.broadcast %cst_145 : f32 to vector<32x1xf32>
    %439 = arith.divf %437, %438 : vector<32x1xf32>
    %440 = vector.broadcast %439 : vector<32x1xf32> to vector<32x64xf32>
    %441 = arith.subf %435, %440 : vector<32x64xf32>
    %442 = arith.mulf %441, %441 : vector<32x64xf32>
    %cst_146 = arith.constant dense<0.000000e+00> : vector<32xf32>
    %443 = vector.multi_reduction <add>, %442, %cst_146 [1] : vector<32x64xf32> to vector<32xf32>
    %444 = vector.shape_cast %443 : vector<32xf32> to vector<32x1xf32>
    %cst_147 = arith.constant 6.400000e+01 : f32
    %445 = vector.broadcast %cst_147 : f32 to vector<32x1xf32>
    %446 = arith.divf %444, %445 : vector<32x1xf32>
    %cst_148 = arith.constant 9.99999974E-6 : f32
    %447 = vector.broadcast %cst_148 : f32 to vector<32x1xf32>
    %448 = arith.addf %446, %447 : vector<32x1xf32>
    %449 = math.rsqrt %448 : vector<32x1xf32>
    %450 = vector.broadcast %449 : vector<32x1xf32> to vector<32x64xf32>
    %451 = arith.mulf %441, %450 : vector<32x64xf32>
    %452 = vector.broadcast %243 : vector<1x64xf32> to vector<32x64xf32>
    %453 = arith.mulf %451, %452 : vector<32x64xf32>
    %454 = vector.broadcast %244 : vector<1x64xf32> to vector<32x64xf32>
    %455 = arith.addf %453, %454 : vector<32x64xf32>
    %cst_149 = arith.constant dense<0.000000e+00> : vector<32x256xf32>
    %456 = tpu.matmul %455, %252, %cst_149 {dimension_numbers = #tpu.dot_dimension_numbers<[1], [0], [0], [1], [0, 0, 1, 1], [], []>} : vector<32x64xf32>, vector<64x256xf32>, vector<32x256xf32> -> vector<32x256xf32>
    %457 = vector.broadcast %258 : vector<1x256xf32> to vector<32x256xf32>
    %458 = arith.addf %456, %457 : vector<32x256xf32>
    %cst_150 = arith.constant 1.702000e+00 : f32
    %459 = vector.broadcast %cst_150 : f32 to vector<32x256xf32>
    %460 = arith.mulf %459, %458 : vector<32x256xf32>
    %461 = arith.negf %460 : vector<32x256xf32>
    %462 = math.exp %461 : vector<32x256xf32>
    %cst_151 = arith.constant 1.000000e+00 : f32
    %463 = vector.broadcast %cst_151 : f32 to vector<32x256xf32>
    %464 = arith.addf %463, %462 : vector<32x256xf32>
    %465 = arith.divf %463, %464 : vector<32x256xf32>
    %466 = arith.mulf %458, %465 : vector<32x256xf32>
    %cst_152 = arith.constant dense<0.000000e+00> : vector<32x64xf32>
    %467 = tpu.matmul %466, %254, %cst_152 {dimension_numbers = #tpu.dot_dimension_numbers<[1], [0], [0], [1], [0, 0, 1, 1], [], []>} : vector<32x256xf32>, vector<256x64xf32>, vector<32x64xf32> -> vector<32x64xf32>
    %468 = vector.broadcast %246 : vector<1x64xf32> to vector<32x64xf32>
    %469 = arith.addf %467, %468 : vector<32x64xf32>
    %470 = arith.addf %435, %469 : vector<32x64xf32>
    %c0_153 = arith.constant 0 : index
    %c0_154 = arith.constant 0 : index
    %471 = vector.load %arg8[%c0_153, %c0_154] : memref<2x64xf32, #tpu.memory_space<vmem>>, vector<2x64xf32>
    %472 = vector.extract_strided_slice %471 {offsets = [0, 0], sizes = [1, 64], strides = [1, 1]} : vector<2x64xf32> to vector<1x64xf32>
    %473 = vector.extract_strided_slice %471 {offsets = [1, 0], sizes = [1, 64], strides = [1, 1]} : vector<2x64xf32> to vector<1x64xf32>
    %cst_155 = arith.constant dense<0.000000e+00> : vector<32xf32>
    %474 = vector.multi_reduction <add>, %470, %cst_155 [1] : vector<32x64xf32> to vector<32xf32>
    %475 = vector.shape_cast %474 : vector<32xf32> to vector<32x1xf32>
    %cst_156 = arith.constant 6.400000e+01 : f32
    %476 = vector.broadcast %cst_156 : f32 to vector<32x1xf32>
    %477 = arith.divf %475, %476 : vector<32x1xf32>
    %478 = vector.broadcast %477 : vector<32x1xf32> to vector<32x64xf32>
    %479 = arith.subf %470, %478 : vector<32x64xf32>
    %480 = arith.mulf %479, %479 : vector<32x64xf32>
    %cst_157 = arith.constant dense<0.000000e+00> : vector<32xf32>
    %481 = vector.multi_reduction <add>, %480, %cst_157 [1] : vector<32x64xf32> to vector<32xf32>
    %482 = vector.shape_cast %481 : vector<32xf32> to vector<32x1xf32>
    %cst_158 = arith.constant 6.400000e+01 : f32
    %483 = vector.broadcast %cst_158 : f32 to vector<32x1xf32>
    %484 = arith.divf %482, %483 : vector<32x1xf32>
    %cst_159 = arith.constant 9.99999974E-6 : f32
    %485 = vector.broadcast %cst_159 : f32 to vector<32x1xf32>
    %486 = arith.addf %484, %485 : vector<32x1xf32>
    %487 = math.rsqrt %486 : vector<32x1xf32>
    %488 = vector.broadcast %487 : vector<32x1xf32> to vector<32x64xf32>
    %489 = arith.mulf %479, %488 : vector<32x64xf32>
    %490 = vector.broadcast %472 : vector<1x64xf32> to vector<32x64xf32>
    %491 = arith.mulf %489, %490 : vector<32x64xf32>
    %492 = vector.broadcast %473 : vector<1x64xf32> to vector<32x64xf32>
    %493 = arith.addf %491, %492 : vector<32x64xf32>
    %c0_160 = arith.constant 0 : index
    %c0_161 = arith.constant 0 : index
    %494 = vector.load %arg9[%c0_160, %c0_161] : memref<2x32xf32, #tpu.memory_space<vmem>>, vector<2x32xf32>
    %cst_162 = arith.constant dense<0.000000e+00> : vector<2x64xf32>
    %495 = tpu.matmul %494, %493, %cst_162 {dimension_numbers = #tpu.dot_dimension_numbers<[1], [0], [0], [1], [0, 0, 1, 1], [], []>} : vector<2x32xf32>, vector<32x64xf32>, vector<2x64xf32> -> vector<2x64xf32>
    %c0_163 = arith.constant 0 : index
    %c0_164 = arith.constant 0 : index
    %496 = vector.load %arg10[%c0_163, %c0_164] : memref<64x32xf32, #tpu.memory_space<vmem>>, vector<64x32xf32>
    %cst_165 = arith.constant dense<0.000000e+00> : vector<2x32xf32>
    %497 = tpu.matmul %495, %496, %cst_165 {dimension_numbers = #tpu.dot_dimension_numbers<[1], [0], [0], [1], [0, 0, 1, 1], [], []>} : vector<2x64xf32>, vector<64x32xf32>, vector<2x32xf32> -> vector<2x32xf32>
    %c0_166 = arith.constant 0 : index
    %c0_167 = arith.constant 0 : index
    %498 = vector.load %arg11[%c0_166, %c0_167] : memref<2x32xf32, #tpu.memory_space<vmem>>, vector<2x32xf32>
    tpu.vector_store %arg11[%c0_166, %c0_167], %497 {strides = array<i32>} : memref<2x32xf32, #tpu.memory_space<vmem>>, vector<2x32xf32>,
    return
  }
}

</mosaic_0001>

<bundles_post_ra>
// kernel: clip_text_feature.1
= control target key start
LH: loop header
LB: loop body
LE: loop exit
PB: predicated region body
PF: predicated region fallthrough
CT: control target
= control target key end

     0   :  { %vm127_vm0 = vcmask 523264   ;;  %s9144_s0 = inlined_call_operand.vmem [shape: f32[32,64], index: 0, kind: input, shape index: {}]   ;;  %s9145_s1 = inlined_call_operand.vmem [shape: f32[2,64,192], index: 1, kind: input, shape index: {}]   ;;  %s9146_s2 = inlined_call_operand.vmem [shape: f32[2,64,64], index: 2, kind: input, shape index: {}]   ;;  %s9147_s3 = inlined_call_operand.vmem [shape: f32[2,64,256], index: 3, kind: input, shape index: {}]   ;;  %s9148_s4 = inlined_call_operand.vmem [shape: f32[2,256,64], index: 4, kind: input, shape index: {}]   ;;  %s9149_s5 = inlined_call_operand.vmem [shape: f32[2,1,192], index: 5, kind: input, shape index: {}]   ;;  %s9150_s6 = inlined_call_operand.vmem [shape: f32[2,1,256], index: 6, kind: input, shape index: {}]   ;;  %s9151_s7 = inlined_call_operand.vmem [shape: f32[2,8,64], index: 7, kind: input, shape index: {}]   ;;  %s9152_s8 = inlined_call_operand.vmem [shape: f32[2,64], index: 8, kind: input, shape index: {}]   ;;  %s9153_s9 = inlined_call_operand.vmem [shape: f32[2,32], index: 9, kind: input, shape index: {}]   ;;  %s9154_s10 = inlined_call_operand.vmem [shape: f32[64,32], index: 10, kind: input, shape index: {}]   ;;  %s9155_s11 = inlined_call_operand.hbm [shape: f32[2,32], index: 11, kind: output, shape index: {}]  }
   0x1   :  { %v39_v0 = vld [vmem:[%s9144_s0] sm:$0xff]  ;;  %v40_v1 = vld [vmem:[%s9144_s0 + $0x8] sm:$0xff] }
   0x2   :  { %16 = vsyncpa [#allocation3], 0  ;;  %v128_v2 = vsel %vm127_vm0, %v39_v0, 0.0  ;;  %v131_v3 = vsel %vm127_vm0, %v40_v1, 0.0  ;;  %v54_v14 = vld [vmem:[%s9145_s1 + $0x8] sm:$0xff]  ;;  %v56_v15 = vld [vmem:[%s9145_s1 + $0x18] sm:$0xff]  ;;  %v43_v45 = vlaneseq }
   0x3   :  { %129 = vadd.xlane.f32.xlu0 %v128_v2  ;;  %v6896_v16 = vpack.c.bf16 %v56_v15, %v54_v14  ;;  %v53_v17 = vld [vmem:[%s9145_s1] sm:$0xff]  ;;  %v55_v18 = vld [vmem:[%s9145_s1 + $0x10] sm:$0xff]  ;;  %v58_v20 = vld [vmem:[%s9145_s1 + $0x28] sm:$0xff]  ;;  %v7704_v33 = vmov 0.0   ;;  %vm315_vm1 = vcmask 130048   ;;  %s7705_s23 = smov 64  }
   0x4   :  { %v6898_v19 = vpack.c.bf16 %v55_v18, %v53_v17  ;;  %v60_v21 = vld [vmem:[%s9145_s1 + $0x38] sm:$0xff]  ;;  %v57_v23 = vld [vmem:[%s9145_s1 + $0x20] sm:$0xff]  ;;  %v59_v24 = vld [vmem:[%s9145_s1 + $0x30] sm:$0xff]  ;;  %284 = vmatprep.mubr.f32.mxu0 %v7704_v33  ;;  %v7852_v49 = vshrl.u32 %v43_v45, 7  ;;  %s7706_s24 = smov 32   ;;  %s7707_s25 = smov 96  }
   0x5   :  { %6897 = vmatprep.subr.bf16.mxu0 %v6896_v16  ;;  %v6900_v22 = vpack.c.bf16 %v60_v21, %v58_v20  ;;  %v6902_v25 = vpack.c.bf16 %v59_v24, %v57_v23  ;;  %v62_v26 = vld [vmem:[%s9145_s1 + $0x48] sm:$0xff]  ;;  %v64_v27 = vld [vmem:[%s9145_s1 + $0x58] sm:$0xff]  ;;  %v61_v28 = vld [vmem:[%s9145_s1 + $0x40] sm:$0xff]  ;;  %s7709_s26 = smov 112   ;;  %s7710_s27 = smov 80   ;;  %vm7714_vm5 = vmmov 0  }
   0x6   :  { %6899 = vmatpush1.bf16.msra.mxu0 %v6898_v19  ;;  %v6904_v29 = vpack.c.bf16 %v64_v27, %v62_v26  ;;  %v63_v30 = vld [vmem:[%s9145_s1 + $0x50] sm:$0xff]  ;;  %v66_v31 = vld [vmem:[%s9145_s1 + $0x68] sm:$0xff]  ;;  %v68_v32 = vld [vmem:[%s9145_s1 + $0x78] sm:$0xff]  ;;  %v7855_v51 = vsub.s32 0, %v7852_v49  ;;  %v7863_v53 = vsub.s32 1, %v7852_v49  ;;  %s7711_s28 = smov 48  }
   0x7   :  { %132 = vadd.xlane.f32.xlu0 %v131_v3  ;;  %6901 = vmatprep.subr.bf16.mxu0 %v6900_v22  ;;  %v6906_v34 = vpack.c.bf16 %v63_v30, %v61_v28  ;;  %v6908_v35 = vpack.c.bf16 %v68_v32, %v66_v31  ;;  %v65_v36 = vld [vmem:[%s9145_s1 + $0x60] sm:$0xff]  ;;  %v67_v37 = vld [vmem:[%s9145_s1 + $0x70] sm:$0xff]  ;;  %v42_v40 = vld [vmem:[%s9144_s0 + $0x18] sm:$0xff]  ;;  %s7712_s29 = smov 16   ;;  %vm5828_vm6 = vcmask 261120   ;;  %vm5983_vm7 = vcmask 254976  }
   0x8   :  { %v6910_v38 = vpack.c.bf16 %v67_v37, %v65_v36  ;;  %v41_v39 = vld [vmem:[%s9144_s0 + $0x10] sm:$0xff]  ;;  %v137_v42 = vsel %vm127_vm0, %v42_v40, 0.0  ;;  %v7860_v52 = vld [vmem:[%s9151_s7] sm:$0xff]  ;;  %vm7911_vm2 = vmpackc.low %vm315_vm1, %vm315_vm1 }
   0x9   :  { %v134_v41 = vsel %vm127_vm0, %v41_v39, 0.0  ;;  %v184_v54 = vrot.slane %v7860_v52, %v7855_v51  ;;  %v192_v57 = vrot.slane %v7860_v52, %v7863_v53  ;;  %v125_v22 = vld [vmem:[%s9149_s5] sm:$0x3] }
   0xa   :  { %6903 = vmatpush1.bf16.msra.mxu0 %v6902_v25  ;;  %v7883_v24 = vrot.slane %v125_v22, %v7855_v51 }
   0xb   :  { %6905 = vmatprep.subr.bf16.mxu0 %v6904_v29  ;;  %v205_v29 = vrot.slane %v125_v22, %v7863_v53 }
   0xe   :  { %6907 = vmatpush1.bf16.msra.mxu0 %v6906_v34 }
   0xf   :  { %6909 = vmatprep.subr.bf16.mxu0 %v6908_v35 }
  0x12   :  { %6911 = vmatpush1.bf16.msra.mxu0 %v6910_v38 }
  0x90   :  { %v130_v4 = vpop.xlane.xlu0 %129 }
  0x91   :  { %v141_v5 = vmul.f32 0.015625, %v130_v4 }
  0x93   :  { %v7784_v6 = vsub.f32 %v39_v0, %v141_v5 }
  0x94   :  { %v133_v7 = vpop.xlane.xlu0 %132 }
  0x95   :  { %v142_v8 = vmul.f32 0.015625, %v133_v7  ;;  %v149_v9 = vmul.f32 %v7784_v6, %v7784_v6 }
  0x97   :  { %v7788_v10 = vsub.f32 %v40_v1, %v142_v8  ;;  %v153_v11 = vsel %vm127_vm0, %v149_v9, 0.0 }
  0x98   :  { %154 = vadd.xlane.f32.xlu1 %v153_v11 }
  0x99   :  { %v150_v12 = vmul.f32 %v7788_v10, %v7788_v10 }
  0x9b   :  { %v156_v13 = vsel %vm127_vm0, %v150_v12, 0.0 }
  0x9c   :  { %157 = vadd.xlane.f32.xlu1 %v156_v13 }
  0xa0   :  { %135 = vadd.xlane.f32.xlu1 %v134_v41 }
  0xa4   :  { %138 = vadd.xlane.f32.xlu1 %v137_v42 }
 0x125   :  { %v155_v43 = vpop.xlane.xlu1 %154 }
 0x126   :  { %v165_v44 = vmul.f32 0.015625, %v155_v43 }
 0x128   :  { %v169_v46 = vadd.f32 1e-05, %v165_v44 }
 0x129   :  { %v158_v47 = vpop.xlane.xlu1 %157 }
 0x12a   :  { %7442 = vrsqrt.f32 %v169_v46  ;;  %v166_v48 = vmul.f32 0.015625, %v158_v47 }
 0x12c   :  { %v170_v50 = vadd.f32 1e-05, %v166_v48 }
 0x12d   :  { %v136_v0 = vpop.xlane.xlu1 %135 }
 0x12e   :  { %7444 = vrsqrt.f32 %v170_v50  ;;  %v143_v1 = vmul.f32 0.015625, %v136_v0 }
 0x130   :  { %v147_v2 = vsub.f32 %v41_v39, %v143_v1 }
 0x131   :  { %v139_v3 = vpop.xlane.xlu1 %138 }
 0x132   :  { %v144_v4 = vmul.f32 0.015625, %v139_v3  ;;  %v151_v5 = vmul.f32 %v147_v2, %v147_v2 }
 0x134   :  { %v7443_v55 = vpop.eup %7442  ;;  %v159_v7 = vsel %vm127_vm0, %v151_v5, 0.0 }
 0x135   :  { %v177_v56 = vmul.f32 %v7443_v55, %v7784_v6  ;;  %v148_v6 = vsub.f32 %v42_v40, %v144_v4  ;;  %160 = vadd.xlane.f32.xlu1 %v159_v7 }
 0x137   :  { %v185_v58 = vmul.f32 %v184_v54, %v177_v56  ;;  %v152_v8 = vmul.f32 %v148_v6, %v148_v6 }
 0x138   :  { %v7445_v59 = vpop.eup %7444 }
 0x139   :  { %v193_v60 = vadd.f32 %v192_v57, %v185_v58  ;;  %v178_v61 = vmul.f32 %v7445_v59, %v7788_v10  ;;  %v162_v9 = vsel %vm127_vm0, %v152_v8, 0.0  ;;  %v45_v59 = vadd.s32 8, %v7852_v49 }
 0x13a   :  { %163 = vadd.xlane.f32.xlu1 %v162_v9 }
 0x13b   :  { %5999 = vmatmul.mubr.msk.f32.vlgmr.msra.gmra.mrb[0].mxu0 %vm127_vm0, %v193_v60  ;;  %v186_v62 = vmul.f32 %v184_v54, %v178_v61  ;;  %v47_v60 = vand.u32 127, %v43_v45  ;;  %v7708_v61 = vmov -1e+30  }
 0x13c   :  { %290 = vmatprep.mubr.f32.mxu0 %v7704_v33 }
 0x13d   :  { %v194_v63 = vadd.f32 %v192_v57, %v186_v62  ;;  %vm49_vm3 = vcmp.le.s32.totalorder %v47_v60, %v45_v59  ;;  %vm48_vm4 = vcmp.le.s32.totalorder %v47_v60, %v7852_v49 }
 0x13e   :  { %v7934_v62 = vsel %vm49_vm3, 0.0, %v7708_v61 }
 0x13f   :  { %6000 = vmatmul.mubr.msk.f32.gmra.mrb[2].mxu0 %vm127_vm0, %v194_v63  ;;  %v7936_v63 = vsel %vm48_vm4, 0.0, %v7708_v61 }
 0x140   :  { %296 = vmatprep.mubr.f32.mxu0 %v7704_v33 }
 0x1c2   :  { %v161_v10 = vpop.xlane.xlu1 %160 }
 0x1c3   :  { %v167_v11 = vmul.f32 0.015625, %v161_v10 }
 0x1c5   :  { %v171_v13 = vadd.f32 1e-05, %v167_v11 }
 0x1c7   :  { %v164_v12 = vpop.xlane.xlu1 %163  ;;  %7446 = vrsqrt.f32 %v171_v13 }
 0x1c8   :  { %v168_v14 = vmul.f32 0.015625, %v164_v12 }
 0x1ca   :  { %v172_v15 = vadd.f32 1e-05, %v168_v14 }
 0x1cc   :  { %7448 = vrsqrt.f32 %v172_v15 }
 0x1d1   :  { %v7447_v16 = vpop.eup %7446 }
 0x1d2   :  { %v179_v17 = vmul.f32 %v7447_v16, %v147_v2 }
 0x1d4   :  { %v187_v19 = vmul.f32 %v184_v54, %v179_v17 }
 0x1d6   :  { %v7449_v18 = vpop.eup %7448  ;;  %v195_v20 = vadd.f32 %v192_v57, %v187_v19 }
 0x1d7   :  { %v180_v21 = vmul.f32 %v7449_v18, %v148_v6 }
 0x1d8   :  { %6001 = vmatmul.mubr.msk.f32.gmra.mrb[4].mxu0 %vm127_vm0, %v195_v20 }
 0x1d9   :  { %v188_v23 = vmul.f32 %v184_v54, %v180_v21  ;;  %302 = vmatprep.mubr.f32.mxu0 %v7704_v33 }
 0x1db   :  { %v196_v25 = vadd.f32 %v192_v57, %v188_v23 }
 0x1dd   :  { %6002 = vmatmul.mubr.msk.f32.gmra.mrb[6].mxu0 %vm127_vm0, %v196_v25 }
 0x20e   :  { %v286_v26 = vpop.f32.mrb[0].mxu0 }
 0x20f   :  { %v7887_v27 = vadd.f32 %v286_v26, %v7883_v24  ;;  %v288_v28 = vpop.f32.mrb[1].mxu0 }
 0x210   :  { %v289_v34 = vadd.f32 %v288_v28, %v205_v29 }
 0x211   :  { %6534 = vmatprep.mubr.msk.f32.mxu1 %vm315_vm1, %v7887_v27 }
 0x212   :  { %v292_v30 = vpop.f32.mrb[2].mxu0 }
 0x213   :  { %v7893_v31 = vadd.f32 %v292_v30, %v7883_v24  ;;  %v294_v32 = vpop.f32.mrb[3].mxu0 }
 0x214   :  { %v295_v35 = vadd.f32 %v294_v32, %v205_v29 }
 0x215   :  { %v7897_v36 = vpack.i.bf16 %v7893_v31, %v7887_v27 }
 0x216   :  { %v6918_v37 = vpack.c.bf16 %v295_v35, %v289_v34  ;;  %v7899_v38 = vpack.i.bf16 %v295_v35, %v289_v34 }
 0x217   :  { %7303 = vrot.lane.b32.xlu0 %v7897_v36, %s7705_s23  ;;  %7308 = vrot.lane.b32.xlu1 %v7897_v36, %s7706_s24 }
 0x21b   :  { %866 = vrot.lane.b32.xlu0 %v7887_v27, %s7707_s25 }
 0x21f   :  { %868 = vrot.lane.b32.xlu0 %v7893_v31, %s7707_s25 }
 0x289   :  { %v7304_v39 = vpop.permute.xlu0 %7303  ;;  %v7309_v40 = vpop.permute.xlu1 %7308 }
 0x28a   :  { %v7311_v41 = vunpack.i.h.bf16 %v7309_v40  ;;  %v7310_v42 = vunpack.i.l.bf16 %v7309_v40  ;;  %v7306_v43 = vunpack.i.h.bf16 %v7304_v39  ;;  %v7305_v44 = vunpack.i.l.bf16 %v7304_v39 }
 0x28c   :  { %v6940_v47 = vpack.c.bf16 %v7311_v41, %v7310_v42  ;;  %v6912_v48 = vpack.c.bf16 %v7306_v43, %v7305_v44 }
 0x28d   :  { %v867_v50 = vpop.permute.xlu0 %866 }
 0x28e   :  { %6914 = vmatprep.subr.msk.bf16.mxu1 %vm7911_vm2, %v6912_v48  ;;  %6942 = vmatprep.subr.msk.bf16.mxu0 %vm7911_vm2, %v6940_v47 }
 0x28f   :  { %6576 = vmatprep.mubr.msk.f32.mxu0 %vm315_vm1, %v867_v50  ;;  %6917 = vmatpush3.bf16.xpose.msk.msra.mxu1 %vm7911_vm2, %v6912_v48 }
 0x290   :  { %6945 = vmatpush3.bf16.xpose.msk.msra.mxu0 %vm7911_vm2, %v6940_v47  ;;  %6919 = vmatprep.subr.bf16.mxu1 %v6918_v37 }
 0x291   :  { %v869_v54 = vpop.permute.xlu0 %868 }
 0x296   :  { %6535 = vmatmul.mubr.msk.f32.vlgmr.msra.gmra.mrb[0].mxu1 %vm315_vm1, %v7893_v31 }
 0x297   :  { %6577 = vmatmul.mubr.msk.f32.vlgmr.msra.gmra.mrb[8].mxu0 %vm315_vm1, %v869_v54  ;;  %6921 = vmatpush3.bf16.msra.mxu1 %v6918_v37 }
 0x2ab   :  { %v7927_v55 = vpop.f32.mrb[4].mxu0 }
 0x2ac   :  { %v300_v56 = vpop.f32.mrb[5].mxu0 }
 0x2ad   :  { %v301_v7 = vadd.f32 %v300_v56, %v205_v29 }
 0x2b0   :  { %v7929_v57 = vpop.f32.mrb[6].mxu0 }
 0x2b1   :  { %v306_v58 = vpop.f32.mrb[7].mxu0 }
 0x2b2   :  { %v307_v8 = vadd.f32 %v306_v58, %v205_v29 }
 0x2b4   :  { %v7946_v9 = vpack.c.bf16 %v307_v8, %v301_v7  ;;  %v7948_v10 = vpack.i.bf16 %v307_v8, %v301_v7 }
 0x369   :  { %v6536_v0 = vpop.f32.mrb[0].mxu1 }
 0x36a   :  { %v396_v1 = vadd.f32 %v6536_v0, %v7934_v62  ;;  %v6578_v2 = vpop.f32.mrb[8].mxu0  ;;  %v390_v3 = vpop.f32.mrb[1].mxu1 }
 0x36b   :  { %v391_v4 = vadd.f32 %v390_v3, %v7936_v63  ;;  %v948_v5 = vpop.f32.mrb[9].mxu0 }
 0x36c   :  { %v402_v6 = vsel %vm315_vm1, %v396_v1, -inf  ;;  %v949_v11 = vadd.f32 %v948_v5, %v7936_v63 }
 0x36d   :  { %403 = vmax.xlane.f32.xlu1 %v402_v6  ;;  %v399_v45 = vsel %vm315_vm1, %v391_v4, -inf }
 0x36e   :  { %400 = vmax.xlane.f32.xlu0 %v399_v45  ;;  %v957_v12 = vsel %vm315_vm1, %v949_v11, -inf }
 0x37e   :  { %502 = vrot.lane.b32.xlu1 %v7887_v27, %s7709_s26 }
 0x382   :  { %504 = vrot.lane.b32.xlu1 %v7893_v31, %s7709_s26 }
 0x3a6   :  { %958 = vmax.xlane.f32.xlu1 %v957_v12 }
 0x3b7   :  { %7318 = vrot.lane.b32.xlu1 %v7899_v38, %s7707_s25 }
 0x3bb   :  { %1149 = vrot.lane.b32.xlu1 %v7887_v27, %s7710_s27 }
 0x3bf   :  { %1151 = vrot.lane.b32.xlu1 %v7893_v31, %s7710_s27  ;;  %v954_v31 = vadd.f32 %v6578_v2, %v7934_v62 }
 0x3c1   :  { %v960_v32 = vsel %vm315_vm1, %v954_v31, -inf }
 0x3fa   :  { %v404_v13 = vpop.xlane.xlu1 %403 }
 0x3fb   :  { %v406_v14 = vsub.f32 %v396_v1, %v404_v13  ;;  %v401_v15 = vpop.xlane.xlu0 %400 }
 0x3fc   :  { %v405_v16 = vsub.f32 %v391_v4, %v401_v15 }
 0x3fd   :  { %v409_v17 = vmul.f32 1.442695, %v406_v14 }
 0x3fe   :  { %v407_v18 = vmul.f32 1.442695, %v405_v16  ;;  %v503_v23 = vpop.permute.xlu1 %502 }
 0x3ff   :  { %7450 = vpow2.f32 %v409_v17 }
 0x400   :  { %7452 = vpow2.f32 %v407_v18  ;;  %v7991_v18 = vadd.f32 %v7927_v55, %v7883_v24 }
 0x402   :  { %v505_v25 = vpop.permute.xlu1 %504 }
 0x409   :  { %v7451_v19 = vpop.eup %7450 }
 0x40a   :  { %v414_v20 = vsel %vm315_vm1, %v7451_v19, 0.0  ;;  %v7453_v21 = vpop.eup %7452 }
 0x40b   :  { %415 = vadd.xlane.f32.xlu0 %v414_v20  ;;  %v411_v22 = vsel %vm315_vm1, %v7453_v21, 0.0 }
 0x40f   :  { %412 = vadd.xlane.f32.xlu0 %v411_v22 }
 0x425   :  { %7313 = vrot.lane.b32.xlu0 %v7897_v36, %s7711_s28 }
 0x433   :  { %v959_v26 = vpop.xlane.xlu1 %958 }
 0x434   :  { %v963_v48 = vsub.f32 %v949_v11, %v959_v26 }
 0x436   :  { %v965_v56 = vmul.f32 1.442695, %v963_v48 }
 0x437   :  { %v7319_v27 = vpop.permute.xlu1 %7318 }
 0x438   :  { %v7321_v28 = vunpack.i.h.bf16 %v7319_v27  ;;  %v7320_v29 = vunpack.i.l.bf16 %v7319_v27 }
 0x43a   :  { %v6946_v30 = vpack.c.bf16 %v7321_v28, %v7320_v29 }
 0x43c   :  { %6947 = vmatprep.subr.bf16.mxu0 %v6946_v30 }
 0x43d   :  { %6949 = vmatpush3.bf16.msra.mxu0 %v6946_v30 }
 0x444   :  { %961 = vmax.xlane.f32.xlu0 %v960_v32 }
 0x498   :  { %v416_v34 = vpop.xlane.xlu0 %415 }
 0x499   :  { %7454 = vrcp.f32 %v416_v34 }
 0x49c   :  { %v413_v35 = vpop.xlane.xlu0 %412 }
 0x49d   :  { %7456 = vrcp.f32 %v413_v35 }
 0x4a0   :  { %v7314_v37 = vpop.permute.xlu0 %7313 }
 0x4a1   :  { %v7316_v39 = vunpack.i.h.bf16 %v7314_v37  ;;  %v7315_v40 = vunpack.i.l.bf16 %v7314_v37 }
 0x4a3   :  { %v6922_v41 = vpack.c.bf16 %v7316_v39, %v7315_v40  ;;  %v7455_v42 = vpop.eup %7454  ;;  %v8004_v39 = vadd.f32 %v7929_v57, %v7883_v24 }
 0x4a4   :  { %v420_v47 = vmul.f32 %v7455_v42, %v7451_v19 }
 0x4a5   :  { %6924 = vmatprep.subr.msk.bf16.mxu1 %vm7911_vm2, %v6922_v41  ;;  %v8008_v40 = vpack.i.bf16 %v8004_v39, %v7991_v18 }
 0x4a7   :  { %v7457_v43 = vpop.eup %7456 }
 0x4a8   :  { %v419_v44 = vmul.f32 %v7457_v43, %v7453_v21 }
 0x4aa   :  { %6541 = vmatprep.mubr.msk.f32.mxu1 %vm315_vm1, %v419_v44 }
 0x4ab   :  { %6542 = vmatmul.mubr.msk.f32.vlgmr.msra.gmra.mrb[2].mxu1 %vm315_vm1, %v420_v47 }
 0x4ac   :  { %6927 = vmatpush3.bf16.xpose.msk.msra.mxu1 %vm7911_vm2, %v6922_v41  ;;  %6548 = vmatprep.mubr.msk.f32.mxu1 %vm315_vm1, %v503_v23 }
 0x4b3   :  { %6549 = vmatmul.mubr.msk.f32.vlgmr.msra.gmra.mrb[4].mxu1 %vm315_vm1, %v505_v25 }
 0x4d1   :  { %v962_v50 = vpop.xlane.xlu0 %961 }
 0x4d2   :  { %v964_v54 = vsub.f32 %v954_v31, %v962_v50 }
 0x4d4   :  { %v967_v58 = vmul.f32 1.442695, %v964_v54 }
 0x4d6   :  { %7458 = vpow2.f32 %v967_v58 }
 0x4d7   :  { %7460 = vpow2.f32 %v965_v56 }
 0x4e0   :  { %v7459_v59 = vpop.eup %7458 }
 0x4e1   :  { %v972_v60 = vsel %vm315_vm1, %v7459_v59, 0.0  ;;  %v7461_v61 = vpop.eup %7460 }
 0x4e2   :  { %973 = vadd.xlane.f32.xlu0 %v972_v60  ;;  %v969_v0 = vsel %vm315_vm1, %v7461_v61, 0.0 }
 0x4e6   :  { %970 = vadd.xlane.f32.xlu0 %v969_v0 }
 0x4fc   :  { %7323 = vrot.lane.b32.xlu0 %v7897_v36, %s7712_s29  ;;  %v1150_v36 = vpop.permute.xlu1 %1149 }
 0x500   :  { %v1152_v19 = vpop.permute.xlu1 %1151 }
 0x56f   :  { %v974_v1 = vpop.xlane.xlu0 %973 }
 0x570   :  { %7462 = vrcp.f32 %v974_v1 }
 0x573   :  { %v971_v2 = vpop.xlane.xlu0 %970 }
 0x574   :  { %7464 = vrcp.f32 %v971_v2 }
 0x577   :  { %v7324_v3 = vpop.permute.xlu0 %7323 }
 0x578   :  { %v7326_v4 = vunpack.i.h.bf16 %v7324_v3  ;;  %v7325_v5 = vunpack.i.l.bf16 %v7324_v3 }
 0x57a   :  { %v6954_v6 = vpack.c.bf16 %v7326_v4, %v7325_v5  ;;  %v7463_v45 = vpop.eup %7462 }
 0x57b   :  { %v978_v13 = vmul.f32 %v7463_v45, %v7459_v59 }
 0x57c   :  { %6956 = vmatprep.subr.msk.bf16.mxu0 %vm7911_vm2, %v6954_v6 }
 0x57e   :  { %v7465_v7 = vpop.eup %7464  ;;  %v7978_v8 = vpop.f32.mrb[2].mxu1 }
 0x57f   :  { %v7980_v11 = vpop.f32.mrb[3].mxu1  ;;  %v977_v12 = vmul.f32 %v7465_v7, %v7461_v61 }
 0x581   :  { %6583 = vmatprep.mubr.msk.f32.mxu0 %vm315_vm1, %v977_v12 }
 0x582   :  { %6584 = vmatmul.mubr.msk.f32.vlgmr.msra.gmra.mrb[10].mxu0 %vm315_vm1, %v978_v13 }
 0x583   :  { %6959 = vmatpush3.bf16.xpose.msk.msra.mxu0 %vm7911_vm2, %v6954_v6  ;;  %6597 = vmatprep.mubr.msk.f32.mxu0 %vm315_vm1, %v1150_v36 }
 0x586   :  { %v6550_v14 = vpop.f32.mrb[4].mxu1 }
 0x587   :  { %v590_v15 = vadd.f32 %v6550_v14, %v7934_v62  ;;  %v584_v16 = vpop.f32.mrb[5].mxu1 }
 0x588   :  { %v585_v17 = vadd.f32 %v584_v16, %v7936_v63  ;;  %v72_v16 = vld [vmem:[%s9146_s2 + $0x18] sm:$0xff] }
 0x589   :  { %v596_v20 = vsel %vm315_vm1, %v590_v15, -inf }
 0x58a   :  { %597 = vmax.xlane.f32.xlu0 %v596_v20  ;;  %6598 = vmatmul.mubr.msk.f32.vlgmr.msra.gmra.mrb[12].mxu0 %vm315_vm1, %v1152_v19  ;;  %v593_v21 = vsel %vm315_vm1, %v585_v17, -inf  ;;  %v70_v19 = vld [vmem:[%s9146_s2 + $0x8] sm:$0xff] }
 0x58b   :  { %594 = vmax.xlane.f32.xlu1 %v593_v21  ;;  %6618 = vmatprep.mubr.msk.f32.mxu0 %vm315_vm1, %v7991_v18 }
 0x59c   :  { %7328 = vrot.lane.b32.xlu1 %v7899_v38, %s7709_s26 }
 0x617   :  { %v598_v22 = vpop.xlane.xlu0 %597 }
 0x618   :  { %v600_v23 = vsub.f32 %v590_v15, %v598_v22  ;;  %v595_v25 = vpop.xlane.xlu1 %594  ;;  %v71_v15 = vld [vmem:[%s9146_s2 + $0x10] sm:$0xff]  ;;  %v73_v22 = vld [vmem:[%s9146_s2 + $0x20] sm:$0xff] }
 0x619   :  { %v599_v55 = vsub.f32 %v585_v17, %v595_v25  ;;  %v8040_v17 = vpack.c.bf16 %v72_v16, %v71_v15 }
 0x61a   :  { %v603_v26 = vmul.f32 1.442695, %v600_v23  ;;  %v74_v23 = vld [vmem:[%s9146_s2 + $0x28] sm:$0xff] }
 0x61b   :  { %v601_v27 = vmul.f32 1.442695, %v599_v55 }
 0x61c   :  { %v7329_v28 = vpop.permute.xlu1 %7328 }
 0x61d   :  { %7466 = vpow2.f32 %v601_v27  ;;  %v7331_v29 = vunpack.i.h.bf16 %v7329_v28  ;;  %v7330_v30 = vunpack.i.l.bf16 %v7329_v28 }
 0x61e   :  { %7468 = vpow2.f32 %v603_v26  ;;  %v8067_v26 = vpack.c.bf16 %v74_v23, %v73_v22 }
 0x61f   :  { %v6928_v31 = vpack.c.bf16 %v7331_v29, %v7330_v30 }
 0x621   :  { %6929 = vmatprep.subr.bf16.mxu1 %v6928_v31 }
 0x622   :  { %6931 = vmatpush3.bf16.msra.mxu1 %v6928_v31 }
 0x623   :  { %6933 = vmatprep.subr.bf16.mxu1 %v8040_v17 }
 0x627   :  { %v7467_v32 = vpop.eup %7466 }
 0x628   :  { %v605_v34 = vsel %vm315_vm1, %v7467_v32, 0.0  ;;  %v7469_v35 = vpop.eup %7468 }
 0x629   :  { %606 = vadd.xlane.f32.xlu0 %v605_v34  ;;  %v608_v37 = vsel %vm315_vm1, %v7469_v35, 0.0 }
 0x62d   :  { %609 = vadd.xlane.f32.xlu0 %v608_v37 }
 0x643   :  { %7333 = vrot.lane.b32.xlu0 %v8008_v40, %s7705_s23 }
 0x655   :  { %v8012_v41 = vpop.f32.mrb[10].mxu0 }
 0x656   :  { %v8014_v42 = vpop.f32.mrb[11].mxu0 }
 0x65d   :  { %v6599_v43 = vpop.f32.mrb[12].mxu0 }
 0x65e   :  { %v1237_v44 = vadd.f32 %v6599_v43, %v7934_v62  ;;  %v1231_v47 = vpop.f32.mrb[13].mxu0 }
 0x65f   :  { %v1232_v48 = vadd.f32 %v1231_v47, %v7936_v63  ;;  %v76_v47 = vld [vmem:[%s9146_s2 + $0x38] sm:$0xff] }
 0x660   :  { %v1243_v24 = vsel %vm315_vm1, %v1237_v44, -inf }
 0x661   :  { %v1240_v57 = vsel %vm315_vm1, %v1232_v48, -inf }
 0x662   :  { %1244 = vmax.xlane.f32.xlu0 %v1243_v24  ;;  %1241 = vmax.xlane.f32.xlu1 %v1240_v57 }
 0x6b6   :  { %v607_v50 = vpop.xlane.xlu0 %606 }
 0x6b7   :  { %7470 = vrcp.f32 %v607_v50 }
 0x6ba   :  { %v610_v54 = vpop.xlane.xlu0 %609 }
 0x6bb   :  { %7472 = vrcp.f32 %v610_v54 }
 0x6be   :  { %v7334_v56 = vpop.permute.xlu0 %7333 }
 0x6bf   :  { %v7336_v58 = vunpack.i.h.bf16 %v7334_v56  ;;  %v7335_v59 = vunpack.i.l.bf16 %v7334_v56 }
 0x6c1   :  { %v7471_v60 = vpop.eup %7470  ;;  %v6968_v61 = vpack.c.bf16 %v7336_v58, %v7335_v59 }
 0x6c2   :  { %v613_v0 = vmul.f32 %v7471_v60, %v7467_v32 }
 0x6c3   :  { %6970 = vmatprep.subr.msk.bf16.mxu0 %vm7911_vm2, %v6968_v61 }
 0x6c4   :  { %6555 = vmatprep.mubr.msk.f32.mxu1 %vm315_vm1, %v613_v0  ;;  %6973 = vmatpush3.bf16.xpose.msk.msra.mxu0 %vm7911_vm2, %v6968_v61 }
 0x6c5   :  { %v7473_v1 = vpop.eup %7472 }
 0x6c6   :  { %v614_v2 = vmul.f32 %v7473_v1, %v7469_v35 }
 0x6c8   :  { %6556 = vmatmul.mubr.msk.f32.vlgmr.msra.gmra.mrb[6].mxu1 %vm315_vm1, %v614_v2 }
 0x6c9   :  { %6935 = vmatpush3.bf16.msra.mxu1 %v8040_v17 }
 0x6cb   :  { %6619 = vmatmul.mubr.msk.f32.vlgmr.msra.gmra.mrb[14].mxu0 %vm315_vm1, %v8004_v39 }
 0x6ef   :  { %v1245_v3 = vpop.xlane.xlu0 %1244  ;;  %v1242_v4 = vpop.xlane.xlu1 %1241 }
 0x6f0   :  { %v1247_v5 = vsub.f32 %v1237_v44, %v1245_v3  ;;  %v1246_v6 = vsub.f32 %v1232_v48, %v1242_v4  ;;  %v75_v44 = vld [vmem:[%s9146_s2 + $0x30] sm:$0xff] }
 0x6f2   :  { %v1250_v45 = vmul.f32 1.442695, %v1247_v5  ;;  %v1248_v7 = vmul.f32 1.442695, %v1246_v6 }
 0x6f4   :  { %7474 = vpow2.f32 %v1250_v45 }
 0x6f5   :  { %7476 = vpow2.f32 %v1248_v7 }
 0x6fe   :  { %v7475_v12 = vpop.eup %7474 }
 0x6ff   :  { %v7477_v13 = vpop.eup %7476  ;;  %v1255_v36 = vsel %vm315_vm1, %v7475_v12, 0.0 }
 0x700   :  { %1256 = vadd.xlane.f32.xlu0 %v1255_v36  ;;  %v1252_v14 = vsel %vm315_vm1, %v7477_v13, 0.0 }
 0x701   :  { %1253 = vadd.xlane.f32.xlu1 %v1252_v14 }
 0x712   :  { %7338 = vrot.lane.b32.xlu1 %v7899_v38, %s7710_s27  ;;  %v69_v38 = vld [vmem:[%s9146_s2] sm:$0xff] }
 0x713   :  { %v8054_v20 = vpack.c.bf16 %v70_v19, %v69_v38 }
 0x715   :  { %6937 = vmatprep.subr.bf16.mxu1 %v8054_v20 }
 0x716   :  { %7343 = vrot.lane.b32.xlu1 %v8008_v40, %s7711_s28 }
 0x71a   :  { %1626 = vrot.lane.b32.xlu1 %v8004_v39, %s7709_s26 }
 0x71e   :  { %7348 = vrot.lane.b32.xlu1 %v8008_v40, %s7706_s24 }
 0x722   :  { %1988 = vrot.lane.b32.xlu1 %v7991_v18, %s7707_s25 }
 0x726   :  { %1990 = vrot.lane.b32.xlu1 %v8004_v39, %s7707_s25 }
 0x78d   :  { %v1257_v30 = vpop.xlane.xlu0 %1256 }
 0x78e   :  { %v1254_v21 = vpop.xlane.xlu1 %1253 }
 0x78f   :  { %7478 = vrcp.f32 %v1254_v21 }
 0x790   :  { %7480 = vrcp.f32 %v1257_v30 }
 0x792   :  { %v7339_v28 = vpop.permute.xlu1 %7338 }
 0x793   :  { %v7341_v32 = vunpack.i.h.bf16 %v7339_v28  ;;  %v7340_v34 = vunpack.i.l.bf16 %v7339_v28 }
 0x795   :  { %v6960_v43 = vpack.c.bf16 %v7341_v32, %v7340_v34 }
 0x796   :  { %v7344_v2 = vpop.permute.xlu1 %7343 }
 0x797   :  { %v7346_v3 = vunpack.i.h.bf16 %v7344_v2  ;;  %v7345_v4 = vunpack.i.l.bf16 %v7344_v2 }
 0x799   :  { %v7479_v48 = vpop.eup %7478  ;;  %v6978_v45 = vpack.c.bf16 %v7346_v3, %v7345_v4 }
 0x79a   :  { %v7481_v24 = vpop.eup %7480  ;;  %v1260_v57 = vmul.f32 %v7479_v48, %v7477_v13  ;;  %v1627_v13 = vpop.permute.xlu1 %1626 }
 0x79b   :  { %v6557_v25 = vpop.f32.mrb[6].mxu1 }
 0x79c   :  { %v695_v55 = vpop.f32.mrb[7].mxu1 }
 0x79d   :  { %6562 = vmatprep.mubr.msk.f32.mxu1 %vm315_vm1, %v695_v55 }
 0x79e   :  { %6563 = vmatmul.mubr.msk.f32.vlgmr.msra.gmra.mrb[8].mxu1 %vm315_vm1, %v6557_v25  ;;  %v6620_v27 = vpop.f32.mrb[14].mxu0  ;;  %v7349_v14 = vpop.permute.xlu1 %7348 }
 0x79f   :  { %6569 = vmatprep.mubr.msk.f32.mxu1 %vm315_vm1, %v7980_v11  ;;  %v1512_v29 = vpop.f32.mrb[15].mxu0  ;;  %6939 = vmatpush3.bf16.msra.mxu1 %v8054_v20  ;;  %v1518_v35 = vadd.f32 %v6620_v27, %v7934_v62  ;;  %v7351_v16 = vunpack.i.h.bf16 %v7349_v14  ;;  %v7350_v38 = vunpack.i.l.bf16 %v7349_v14 }
 0x7a0   :  { %v1513_v31 = vadd.f32 %v1512_v29, %v7936_v63  ;;  %6951 = vmatprep.subr.bf16.mxu1 %v8067_v26 }
 0x7a1   :  { %v1524_v11 = vsel %vm315_vm1, %v1518_v35, -inf  ;;  %v6996_v22 = vpack.c.bf16 %v7351_v16, %v7350_v38 }
 0x7a2   :  { %v1521_v37 = vsel %vm315_vm1, %v1513_v31, -inf }
 0x7a3   :  { %1522 = vmax.xlane.f32.xlu0 %v1521_v37 }
 0x7a6   :  { %6570 = vmatmul.mubr.msk.f32.vlgmr.msra.gmra.mrb[8].mxu1 %vm315_vm1, %v7978_v8  ;;  %v8090_v8 = vpack.c.bf16 %v76_v47, %v75_v44 }
 0x7a7   :  { %6953 = vmatpush3.bf16.msra.mxu1 %v8067_v26  ;;  %1525 = vmax.xlane.f32.xlu0 %v1524_v11 }
 0x7a8   :  { %6590 = vmatprep.mubr.msk.f32.mxu1 %vm315_vm1, %v8014_v42  ;;  %6961 = vmatprep.subr.bf16.mxu1 %v6960_v43  ;;  %v1261_v42 = vmul.f32 %v7481_v24, %v7475_v12 }
 0x7ae   :  { %6591 = vmatmul.mubr.msk.f32.vlgmr.msra.gmra.mrb[8].mxu1 %vm315_vm1, %v8012_v41 }
 0x7af   :  { %6963 = vmatpush3.bf16.msra.mxu1 %v6960_v43  ;;  %6604 = vmatprep.mubr.msk.f32.mxu1 %vm315_vm1, %v1260_v57 }
 0x7b0   :  { %6965 = vmatprep.subr.bf16.mxu1 %v8090_v8 }
 0x7b2   :  { %6605 = vmatmul.mubr.msk.f32.vlgmr.msra.gmra.mrb[10].mxu1 %vm315_vm1, %v1261_v42 }
 0x7b3   :  { %6967 = vmatpush3.bf16.msra.mxu1 %v8090_v8 }
 0x7b4   :  { %6975 = vmatprep.subr.bf16.mxu1 %v7946_v9 }
 0x830   :  { %v1523_v50 = vpop.xlane.xlu0 %1522 }
 0x831   :  { %v1527_v54 = vsub.f32 %v1513_v31, %v1523_v50 }
 0x833   :  { %v1529_v56 = vmul.f32 1.442695, %v1527_v54 }
 0x834   :  { %v1526_v58 = vpop.xlane.xlu0 %1525 }
 0x835   :  { %7482 = vpow2.f32 %v1529_v56  ;;  %v1528_v59 = vsub.f32 %v1518_v35, %v1526_v58 }
 0x837   :  { %v1531_v60 = vmul.f32 1.442695, %v1528_v59 }
 0x839   :  { %7484 = vpow2.f32 %v1531_v60 }
 0x83f   :  { %v7483_v41 = vpop.eup %7482 }
 0x840   :  { %v1533_v61 = vsel %vm315_vm1, %v7483_v41, 0.0 }
 0x841   :  { %1534 = vadd.xlane.f32.xlu0 %v1533_v61 }
 0x843   :  { %v7485_v0 = vpop.eup %7484 }
 0x844   :  { %v1536_v1 = vsel %vm315_vm1, %v7485_v0, 0.0 }
 0x845   :  { %1537 = vadd.xlane.f32.xlu0 %v1536_v1 }
 0x85b   :  { %1624 = vrot.lane.b32.xlu0 %v7991_v18, %s7709_s26 }
 0x885   :  { %v6606_v5 = vpop.f32.mrb[10].mxu1 }
 0x886   :  { %v1340_v6 = vpop.f32.mrb[11].mxu1 }
 0x887   :  { %6611 = vmatprep.mubr.msk.f32.mxu1 %vm315_vm1, %v1340_v6 }
 0x888   :  { %6612 = vmatmul.mubr.msk.f32.vlgmr.msra.gmra.mrb[8].mxu1 %vm315_vm1, %v6606_v5 }
 0x889   :  { %6977 = vmatpush3.bf16.msra.mxu1 %v7946_v9  ;;  %v1989_v9 = vpop.permute.xlu1 %1988 }
 0x88a   :  { %6980 = vmatprep.subr.msk.bf16.mxu1 %vm7911_vm2, %v6978_v45 }
 0x88d   :  { %v1991_v25 = vpop.permute.xlu1 %1990 }
 0x8ce   :  { %v1535_v7 = vpop.xlane.xlu0 %1534 }
 0x8cf   :  { %7486 = vrcp.f32 %v1535_v7 }
 0x8d2   :  { %v1538_v12 = vpop.xlane.xlu0 %1537 }
 0x8d3   :  { %7488 = vrcp.f32 %v1538_v12 }
 0x8d6   :  { %v1625_v23 = vpop.permute.xlu0 %1624 }
 0x8d9   :  { %v7487_v36 = vpop.eup %7486 }
 0x8da   :  { %v1541_v15 = vmul.f32 %v7487_v36, %v7483_v41 }
 0x8dc   :  { %6625 = vmatprep.mubr.msk.f32.mxu1 %vm315_vm1, %v1541_v15 }
 0x8dd   :  { %v7489_v19 = vpop.eup %7488 }
 0x8de   :  { %v1542_v21 = vmul.f32 %v7489_v19, %v7485_v0 }
 0x8e0   :  { %6626 = vmatmul.mubr.msk.f32.vlgmr.msra.gmra.mrb[12].mxu1 %vm315_vm1, %v1542_v21 }
 0x8e1   :  { %6983 = vmatpush3.bf16.xpose.msk.msra.mxu1 %vm7911_vm2, %v6978_v45  ;;  %6632 = vmatprep.mubr.msk.f32.mxu1 %vm315_vm1, %v1625_v23 }
 0x8e2   :  { %6998 = vmatprep.subr.msk.bf16.mxu1 %vm7911_vm2, %v6996_v22 }
 0x8e8   :  { %6633 = vmatmul.mubr.msk.f32.vlgmr.msra.gmra.mrb[14].mxu1 %vm315_vm1, %v1627_v13 }
 0x8e9   :  { %7001 = vmatpush3.bf16.xpose.msk.msra.mxu1 %vm7911_vm2, %v6996_v22  ;;  %6660 = vmatprep.mubr.msk.f32.mxu1 %vm315_vm1, %v1989_v9 }
 0x8f0   :  { %6661 = vmatmul.mubr.msk.f32.vlgmr.msra.gmra.mrb[16].mxu1 %vm315_vm1, %v1991_v25 }
 0x95b   :  { %v8120_v55 = vpop.f32.mrb[8].mxu1 }
 0x95c   :  { %v8122_v27 = vpop.f32.mrb[9].mxu1 }
 0x9b3   :  { %v8124_v28 = vpop.f32.mrb[12].mxu1 }
 0x9b4   :  { %v8126_v29 = vpop.f32.mrb[13].mxu1 }
 0x9bb   :  { %v6634_v30 = vpop.f32.mrb[14].mxu1 }
 0x9bc   :  { %v1712_v31 = vadd.f32 %v6634_v30, %v7934_v62  ;;  %v1706_v32 = vpop.f32.mrb[15].mxu1 }
 0x9bd   :  { %v1707_v34 = vadd.f32 %v1706_v32, %v7936_v63 }
 0x9be   :  { %v1718_v35 = vsel %vm315_vm1, %v1712_v31, -inf }
 0x9bf   :  { %1719 = vmax.xlane.f32.xlu0 %v1718_v35  ;;  %v1715_v37 = vsel %vm315_vm1, %v1707_v34, -inf }
 0x9c0   :  { %1716 = vmax.xlane.f32.xlu1 %v1715_v37 }
 0x9c3   :  { %v6662_v11 = vpop.f32.mrb[16].mxu1 }
 0x9c4   :  { %v2070_v43 = vpop.f32.mrb[17].mxu1  ;;  %v2076_v41 = vadd.f32 %v6662_v11, %v7934_v62 }
 0x9c5   :  { %v2071_v59 = vadd.f32 %v2070_v43, %v7936_v63 }
 0x9c6   :  { %v2082_v61 = vsel %vm315_vm1, %v2076_v41, -inf }
 0x9c7   :  { %v2079_v60 = vsel %vm315_vm1, %v2071_v59, -inf }
 0xa4c   :  { %v1720_v44 = vpop.xlane.xlu0 %1719 }
 0xa4d   :  { %v1722_v47 = vsub.f32 %v1712_v31, %v1720_v44  ;;  %v1717_v48 = vpop.xlane.xlu1 %1716 }
 0xa4e   :  { %v1721_v24 = vsub.f32 %v1707_v34, %v1717_v48  ;;  %v7674_v34 = vld [vmem:[%s9144_s0] sm:$0xff] }
 0xa4f   :  { %v1725_v57 = vmul.f32 1.442695, %v1722_v47 }
 0xa50   :  { %v1723_v42 = vmul.f32 1.442695, %v1721_v24 }
 0xa51   :  { %7490 = vpow2.f32 %v1725_v57 }
 0xa52   :  { %7492 = vpow2.f32 %v1723_v42 }
 0xa5b   :  { %v7491_v50 = vpop.eup %7490 }
 0xa5c   :  { %v7493_v54 = vpop.eup %7492  ;;  %v1730_v56 = vsel %vm315_vm1, %v7491_v50, 0.0 }
 0xa5d   :  { %1731 = vadd.xlane.f32.xlu1 %v1730_v56  ;;  %v1727_v58 = vsel %vm315_vm1, %v7493_v54, 0.0 }
 0xa5e   :  { %1728 = vadd.xlane.f32.xlu0 %v1727_v58 }
 0xa6e   :  { %7358 = vrot.lane.b32.xlu1 %v8008_v40, %s7712_s29 }
 0xa72   :  { %2271 = vrot.lane.b32.xlu1 %v7991_v18, %s7710_s27 }
 0xa74   :  { %7353 = vrot.lane.b32.xlu0 %v7948_v10, %s7709_s26 }
 0xa76   :  { %2273 = vrot.lane.b32.xlu1 %v8004_v39, %s7710_s27 }
 0xa93   :  { %2080 = vmax.xlane.f32.xlu0 %v2079_v60 }
 0xa9a   :  { %2083 = vmax.xlane.f32.xlu1 %v2082_v61 }
 0xaea   :  { %v1732_v40 = vpop.xlane.xlu1 %1731 }
 0xaeb   :  { %7494 = vrcp.f32 %v1732_v40  ;;  %v1729_v0 = vpop.xlane.xlu0 %1728 }
 0xaec   :  { %7496 = vrcp.f32 %v1729_v0 }
 0xaee   :  { %v7359_v18 = vpop.permute.xlu1 %7358 }
 0xaef   :  { %v7361_v1 = vunpack.i.h.bf16 %v7359_v18  ;;  %v7360_v2 = vunpack.i.l.bf16 %v7359_v18  ;;  %v7354_v3 = vpop.permute.xlu0 %7353 }
 0xaf0   :  { %v7356_v4 = vunpack.i.h.bf16 %v7354_v3  ;;  %v7355_v39 = vunpack.i.l.bf16 %v7354_v3  ;;  %v79_v3 = vld [vmem:[%s9147_s3 + $0x10] sm:$0xff] }
 0xaf1   :  { %v7010_v5 = vpack.c.bf16 %v7361_v1, %v7360_v2  ;;  %v80_v1 = vld [vmem:[%s9147_s3 + $0x18] sm:$0xff] }
 0xaf2   :  { %v2272_v6 = vpop.permute.xlu1 %2271  ;;  %v6984_v45 = vpack.c.bf16 %v7356_v4, %v7355_v39  ;;  %v82_v39 = vld [vmem:[%s9147_s3 + $0x28] sm:$0xff] }
 0xaf3   :  { %7012 = vmatprep.subr.msk.bf16.mxu1 %vm7911_vm2, %v7010_v5  ;;  %6681 = vmatprep.mubr.msk.f32.mxu1 %vm315_vm1, %v2272_v6 }
 0xaf4   :  { %6985 = vmatprep.subr.bf16.mxu0 %v6984_v45  ;;  %7015 = vmatpush3.bf16.xpose.msk.msra.mxu1 %vm7911_vm2, %v7010_v5  ;;  %v84_v5 = vld [vmem:[%s9147_s3 + $0x38] sm:$0xff] }
 0xaf5   :  { %v7495_v7 = vpop.eup %7494  ;;  %6987 = vmatpush3.bf16.msra.mxu0 %v6984_v45  ;;  %v7028_v6 = vpack.c.bf16 %v84_v5, %v82_v39  ;;  %v81_v45 = vld [vmem:[%s9147_s3 + $0x20] sm:$0xff] }
 0xaf6   :  { %v7497_v12 = vpop.eup %7496  ;;  %6989 = vmatprep.subr.bf16.mxu0 %v8040_v17  ;;  %v1736_v36 = vmul.f32 %v7495_v7, %v7491_v50  ;;  %v2274_v14 = vpop.permute.xlu1 %2273  ;;  %v83_v7 = vld [vmem:[%s9147_s3 + $0x30] sm:$0xff] }
 0xaf7   :  { %v1735_v13 = vmul.f32 %v7497_v12, %v7493_v54  ;;  %v7030_v12 = vpack.c.bf16 %v83_v7, %v81_v45 }
 0xaf9   :  { %6639 = vmatprep.mubr.msk.f32.mxu0 %vm315_vm1, %v1735_v13  ;;  %v86_v13 = vld [vmem:[%s9147_s3 + $0x48] sm:$0xff] }
 0xafa   :  { %6640 = vmatmul.mubr.msk.f32.vlgmr.msra.gmra.mrb[16].mxu0 %vm315_vm1, %v1736_v36  ;;  %v88_v36 = vld [vmem:[%s9147_s3 + $0x58] sm:$0xff] }
 0xafb   :  { %6682 = vmatmul.mubr.msk.f32.vlgmr.msra.gmra.mrb[18].mxu1 %vm315_vm1, %v2274_v14  ;;  %6991 = vmatpush3.bf16.msra.mxu0 %v8040_v17  ;;  %v2556_v17 = vsub.s32 4, %v7852_v49  ;;  %v7032_v14 = vpack.c.bf16 %v88_v36, %v86_v13 }
 0xafc   :  { %6993 = vmatprep.subr.bf16.mxu0 %v8054_v20  ;;  %2721 = vmatprep.mubr.f32.mxu1 %v7704_v33 }
 0xafd   :  { %v8166_v31 = vrot.slane %v7860_v52, %v2556_v17 }
 0xaff   :  { %v2558_v32 = vadd.f32 %v8166_v31, %v8122_v27 }
 0xb01   :  { %v8173_v35 = vadd.f32 %v7674_v34, %v2558_v32 }
 0xb03   :  { %v2566_v37 = vsel %vm127_vm0, %v8173_v35, 0.0 }
 0xb20   :  { %v2081_v15 = vpop.xlane.xlu0 %2080 }
 0xb21   :  { %v2085_v16 = vsub.f32 %v2071_v59, %v2081_v15  ;;  %v85_v15 = vld [vmem:[%s9147_s3 + $0x40] sm:$0xff] }
 0xb23   :  { %v2087_v21 = vmul.f32 1.442695, %v2085_v16  ;;  %v87_v16 = vld [vmem:[%s9147_s3 + $0x50] sm:$0xff] }
 0xb27   :  { %v2084_v38 = vpop.xlane.xlu1 %2083 }
 0xb28   :  { %v2086_v19 = vsub.f32 %v2076_v41, %v2084_v38  ;;  %v7034_v38 = vpack.c.bf16 %v87_v16, %v85_v15  ;;  %v110_v15 = vld [vmem:[%s9148_s4 + $0x88] sm:$0xff] }
 0xb2a   :  { %v2089_v22 = vmul.f32 1.442695, %v2086_v19  ;;  %v90_v19 = vld [vmem:[%s9147_s3 + $0x68] sm:$0xff] }
 0xb2c   :  { %7498 = vpow2.f32 %v2089_v22  ;;  %v89_v22 = vld [vmem:[%s9147_s3 + $0x60] sm:$0xff] }
 0xb2d   :  { %7500 = vpow2.f32 %v2087_v21  ;;  %v92_v21 = vld [vmem:[%s9147_s3 + $0x78] sm:$0xff] }
 0xb36   :  { %v7499_v23 = vpop.eup %7498 }
 0xb37   :  { %v2094_v9 = vsel %vm315_vm1, %v7499_v23, 0.0  ;;  %v7501_v25 = vpop.eup %7500 }
 0xb38   :  { %2095 = vadd.xlane.f32.xlu0 %v2094_v9  ;;  %v2091_v30 = vsel %vm315_vm1, %v7501_v25, 0.0  ;;  %v91_v9 = vld [vmem:[%s9147_s3 + $0x70] sm:$0xff] }
 0xb3c   :  { %2092 = vadd.xlane.f32.xlu0 %v2091_v30 }
 0xb52   :  { %7363 = vrot.lane.b32.xlu0 %v7948_v10, %s7707_s25 }
 0xb71   :  { %2567 = vadd.xlane.f32.xlu0 %v2566_v37 }
 0xbc5   :  { %v2096_v11 = vpop.xlane.xlu0 %2095 }
 0xbc9   :  { %v2093_v43 = vpop.xlane.xlu0 %2092 }
 0xbca   :  { %7502 = vrcp.f32 %v2093_v43 }
 0xbcb   :  { %7504 = vrcp.f32 %v2096_v11 }
 0xbcd   :  { %v6641_v44 = vpop.f32.mrb[16].mxu0  ;;  %v7364_v52 = vpop.permute.xlu0 %7363 }
 0xbce   :  { %v7366_v47 = vunpack.i.h.bf16 %v7364_v52  ;;  %v7365_v48 = vunpack.i.l.bf16 %v7364_v52  ;;  %v1817_v24 = vpop.f32.mrb[17].mxu0  ;;  %v6683_v27 = vpop.f32.mrb[18].mxu1 }
 0xbcf   :  { %6646 = vmatprep.mubr.msk.f32.mxu0 %vm315_vm1, %v1817_v24  ;;  %v2353_v57 = vpop.f32.mrb[19].mxu1  ;;  %v2359_v54 = vadd.f32 %v6683_v27, %v7934_v62 }
 0xbd0   :  { %v7002_v42 = vpack.c.bf16 %v7366_v47, %v7365_v48  ;;  %v2354_v50 = vadd.f32 %v2353_v57, %v7936_v63  ;;  %6647 = vmatmul.mubr.msk.f32.vlgmr.msra.gmra.mrb[18].mxu0 %vm315_vm1, %v6641_v44 }
 0xbd1   :  { %6995 = vmatpush3.bf16.msra.mxu0 %v8054_v20  ;;  %6653 = vmatprep.mubr.msk.f32.mxu0 %vm315_vm1, %v8126_v29  ;;  %v2365_v59 = vsel %vm315_vm1, %v2359_v54, -inf }
 0xbd2   :  { %7003 = vmatprep.subr.bf16.mxu0 %v7002_v42  ;;  %v2362_v56 = vsel %vm315_vm1, %v2354_v50, -inf }
 0xbd3   :  { %2363 = vmax.xlane.f32.xlu1 %v2362_v56 }
 0xbd4   :  { %v7503_v58 = vpop.eup %7502 }
 0xbd5   :  { %v7505_v60 = vpop.eup %7504  ;;  %v2099_v41 = vmul.f32 %v7503_v58, %v7501_v25  ;;  %v7038_v25 = vpack.c.bf16 %v91_v9, %v89_v22 }
 0xbd6   :  { %v2100_v20 = vmul.f32 %v7505_v60, %v7499_v23  ;;  %v7036_v23 = vpack.c.bf16 %v92_v21, %v90_v19  ;;  %v2559_v60 = vadd.f32 %v8120_v55, %v8166_v31  ;;  %v126_v19 = vld [vmem:[%s9150_s6] sm:$0x3] }
 0xbd7   :  { %2366 = vmax.xlane.f32.xlu1 %v2365_v59  ;;  %v8294_v21 = vrot.slane %v126_v19, %v7863_v53 }
 0xbd8   :  { %6654 = vmatmul.mubr.msk.f32.vlgmr.msra.gmra.mrb[18].mxu0 %vm315_vm1, %v8124_v28  ;;  %v78_v28 = vld [vmem:[%s9147_s3 + $0x8] sm:$0xff] }
 0xbd9   :  { %7005 = vmatpush3.bf16.msra.mxu0 %v7002_v42  ;;  %6667 = vmatprep.mubr.msk.f32.mxu0 %vm315_vm1, %v2099_v41  ;;  %v7024_v2 = vpack.c.bf16 %v80_v1, %v78_v28  ;;  %v2620_v42 = vsub.s32 2, %v7852_v49 }
 0xbda   :  { %7007 = vmatprep.subr.bf16.mxu0 %v8067_v26 }
 0xbdb   :  { %7025 = vmatprep.subr.bf16.mxu1 %v7024_v2 }
 0xbdc   :  { %6668 = vmatmul.mubr.msk.f32.vlgmr.msra.gmra.mrb[20].mxu0 %vm315_vm1, %v2100_v20 }
 0xbdd   :  { %7009 = vmatpush3.bf16.msra.mxu0 %v8067_v26  ;;  %v77_v26 = vld [vmem:[%s9147_s3] sm:$0xff] }
 0xbde   :  { %v7026_v4 = vpack.c.bf16 %v79_v3, %v77_v26 }
 0xbe0   :  { %7027 = vmatpush1.bf16.msra.mxu1 %v7026_v4 }
 0xbe1   :  { %7029 = vmatprep.subr.bf16.mxu1 %v7028_v6 }
 0xbe4   :  { %7031 = vmatpush1.bf16.msra.mxu1 %v7030_v12 }
 0xbe5   :  { %7033 = vmatprep.subr.bf16.mxu1 %v7032_v14  ;;  %v109_v14 = vld [vmem:[%s9148_s4 + $0x80] sm:$0xff] }
 0xbe6   :  { %v7040_v16 = vpack.c.bf16 %v110_v15, %v109_v14  ;;  %v118_v14 = vld [vmem:[%s9148_s4 + $0xc8] sm:$0xff] }
 0xbe8   :  { %7035 = vmatpush1.bf16.msra.mxu1 %v7034_v38 }
 0xbe9   :  { %7037 = vmatprep.subr.bf16.mxu1 %v7036_v23 }
 0xbec   :  { %7039 = vmatpush1.bf16.msra.mxu1 %v7038_v25 }
 0xbfe   :  { %v2568_v29 = vpop.xlane.xlu0 %2567 }
 0xbff   :  { %v2578_v61 = vmul.f32 0.015625, %v2568_v29  ;;  %v7676_v29 = vld [vmem:[%s9144_s0 + $0x8] sm:$0xff] }
 0xc01   :  { %v2582_v40 = vsub.f32 %v8173_v35, %v2578_v61  ;;  %v8270_v61 = vadd.f32 %v7676_v29, %v2559_v60 }
 0xc03   :  { %v2586_v0 = vmul.f32 %v2582_v40, %v2582_v40 }
 0xc05   :  { %v2590_v18 = vsel %vm127_vm0, %v2586_v0, 0.0 }
 0xc06   :  { %2591 = vadd.xlane.f32.xlu0 %v2590_v18 }
 0xc60   :  { %v2364_v30 = vpop.xlane.xlu1 %2363 }
 0xc61   :  { %v2368_v32 = vsub.f32 %v2354_v50, %v2364_v30  ;;  %v2628_v50 = vsub.s32 3, %v7852_v49 }
 0xc63   :  { %v2370_v11 = vmul.f32 1.442695, %v2368_v32 }
 0xc64   :  { %v2367_v34 = vpop.xlane.xlu1 %2366 }
 0xc65   :  { %v2369_v37 = vsub.f32 %v2359_v54, %v2367_v34  ;;  %v8251_v54 = vld [vmem:[%s9151_s7] sm:$0xff] }
 0xc66   :  { %v8256_v56 = vrot.slane %v8251_v54, %v2620_v42  ;;  %v8261_v59 = vrot.slane %v8251_v54, %v2628_v50 }
 0xc67   :  { %v2372_v43 = vmul.f32 1.442695, %v2369_v37 }
 0xc69   :  { %7506 = vpow2.f32 %v2372_v43 }
 0xc6a   :  { %7508 = vpow2.f32 %v2370_v11  ;;  %v8298_v11 = vrot.slane %v126_v19, %v7855_v51  ;;  %v102_v19 = vld [vmem:[%s9148_s4 + $0x48] sm:$0xff] }
 0xc73   :  { %v7507_v44 = vpop.eup %7506 }
 0xc74   :  { %v2377_v52 = vsel %vm315_vm1, %v7507_v44, 0.0  ;;  %v7509_v47 = vpop.eup %7508 }
 0xc75   :  { %2378 = vadd.xlane.f32.xlu1 %v2377_v52  ;;  %v2374_v48 = vsel %vm315_vm1, %v7509_v47, 0.0 }
 0xc79   :  { %2375 = vadd.xlane.f32.xlu1 %v2374_v48 }
 0xc8a   :  { %7368 = vrot.lane.b32.xlu1 %v7948_v10, %s7710_s27 }
 0xc93   :  { %v2592_v24 = vpop.xlane.xlu0 %2591 }
 0xc94   :  { %v2602_v27 = vmul.f32 0.015625, %v2592_v24 }
 0xc96   :  { %v2606_v57 = vadd.f32 1e-05, %v2602_v27  ;;  %v93_v27 = vld [vmem:[%s9148_s4] sm:$0xff] }
 0xc98   :  { %7510 = vrsqrt.f32 %v2606_v57  ;;  %v94_v57 = vld [vmem:[%s9148_s4 + $0x8] sm:$0xff] }
 0xc99   :  { %v7042_v29 = vpack.c.bf16 %v94_v57, %v93_v27  ;;  %v123_v27 = vld [vmem:[%s9148_s4 + $0xf0] sm:$0xff]  ;;  %v124_v57 = vld [vmem:[%s9148_s4 + $0xf8] sm:$0xff] }
 0xca2   :  { %v7511_v58 = vpop.eup %7510 }
 0xca3   :  { %v2614_v10 = vmul.f32 %v7511_v58, %v2582_v40  ;;  %v2569_v40 = vsel %vm127_vm0, %v8270_v61, 0.0  ;;  %v111_v58 = vld [vmem:[%s9148_s4 + $0x90] sm:$0xff] }
 0xca5   :  { %v2622_v41 = vmul.f32 %v8256_v56, %v2614_v10  ;;  %v112_v10 = vld [vmem:[%s9148_s4 + $0x98] sm:$0xff] }
 0xca7   :  { %v2630_v20 = vadd.f32 %v8261_v59, %v2622_v41 }
 0xca9   :  { %6067 = vmatmul.mubr.msk.f32.vlgmr.msra.gmra.mrb[20].mxu1 %vm127_vm0, %v2630_v20 }
 0xcaa   :  { %2727 = vmatprep.mubr.f32.mxu1 %v7704_v33 }
 0xcae   :  { %2570 = vadd.xlane.f32.xlu1 %v2569_v40 }
 0xcaf   :  { %v6669_v0 = vpop.f32.mrb[20].mxu0 }
 0xcb0   :  { %v2179_v55 = vpop.f32.mrb[21].mxu0 }
 0xcb1   :  { %6674 = vmatprep.mubr.msk.f32.mxu0 %vm315_vm1, %v2179_v55  ;;  %v95_v55 = vld [vmem:[%s9148_s4 + $0x10] sm:$0xff] }
 0xcb2   :  { %6675 = vmatmul.mubr.msk.f32.vlgmr.msra.gmra.mrb[18].mxu0 %vm315_vm1, %v6669_v0  ;;  %v7044_v0 = vpack.c.bf16 %v112_v10, %v111_v58  ;;  %v7068_v10 = vpack.c.bf16 %v124_v57, %v123_v27 }
 0xd02   :  { %v2379_v18 = vpop.xlane.xlu1 %2378 }
 0xd03   :  { %7512 = vrcp.f32 %v2379_v18  ;;  %v96_v18 = vld [vmem:[%s9148_s4 + $0x18] sm:$0xff] }
 0xd06   :  { %v2376_v28 = vpop.xlane.xlu1 %2375 }
 0xd07   :  { %7514 = vrcp.f32 %v2376_v28 }
 0xd0a   :  { %v7369_v1 = vpop.permute.xlu1 %7368 }
 0xd0b   :  { %v7371_v2 = vunpack.i.h.bf16 %v7369_v1  ;;  %v7370_v26 = vunpack.i.l.bf16 %v7369_v1  ;;  %v113_v1 = vld [vmem:[%s9148_s4 + $0xa0] sm:$0xff] }
 0xd0d   :  { %v7016_v3 = vpack.c.bf16 %v7371_v2, %v7370_v26  ;;  %v7513_v4 = vpop.eup %7512  ;;  %v114_v2 = vld [vmem:[%s9148_s4 + $0xa8] sm:$0xff]  ;;  %v7046_v26 = vpack.c.bf16 %v96_v18, %v95_v55 }
 0xd0e   :  { %v2383_v6 = vmul.f32 %v7513_v4, %v7507_v44  ;;  %v97_v4 = vld [vmem:[%s9148_s4 + $0x20] sm:$0xff] }
 0xd0f   :  { %7017 = vmatprep.subr.bf16.mxu0 %v7016_v3 }
 0xd10   :  { %7019 = vmatpush3.bf16.msra.mxu0 %v7016_v3  ;;  %v7048_v3 = vpack.c.bf16 %v114_v2, %v113_v1 }
 0xd11   :  { %v7515_v39 = vpop.eup %7514  ;;  %7021 = vmatprep.subr.bf16.mxu0 %v8090_v8 }
 0xd12   :  { %v2382_v5 = vmul.f32 %v7515_v39, %v7509_v47  ;;  %v98_v39 = vld [vmem:[%s9148_s4 + $0x28] sm:$0xff] }
 0xd14   :  { %6688 = vmatprep.mubr.msk.f32.mxu0 %vm315_vm1, %v2382_v5  ;;  %v115_v5 = vld [vmem:[%s9148_s4 + $0xb0] sm:$0xff] }
 0xd15   :  { %6689 = vmatmul.mubr.msk.f32.vlgmr.msra.gmra.mrb[22].mxu0 %vm315_vm1, %v2383_v6  ;;  %v116_v6 = vld [vmem:[%s9148_s4 + $0xb8] sm:$0xff] }
 0xd16   :  { %7023 = vmatpush3.bf16.msra.mxu0 %v8090_v8 }
 0xd17   :  { %7041 = vmatprep.subr.bf16.mxu0 %v7040_v16 }
 0xd3b   :  { %v2571_v45 = vpop.xlane.xlu1 %2570 }
 0xd3c   :  { %v2579_v7 = vmul.f32 0.015625, %v2571_v45  ;;  %v7050_v45 = vpack.c.bf16 %v98_v39, %v97_v4 }
 0xd3e   :  { %v2583_v12 = vsub.f32 %v8270_v61, %v2579_v7  ;;  %v7052_v7 = vpack.c.bf16 %v116_v6, %v115_v5 }
 0xd40   :  { %v2587_v13 = vmul.f32 %v2583_v12, %v2583_v12 }
 0xd42   :  { %v2593_v36 = vsel %vm127_vm0, %v2587_v13, 0.0  ;;  %v100_v13 = vld [vmem:[%s9148_s4 + $0x38] sm:$0xff] }
 0xd43   :  { %2594 = vadd.xlane.f32.xlu0 %v2593_v36  ;;  %v117_v36 = vld [vmem:[%s9148_s4 + $0xc0] sm:$0xff] }
 0xd7c   :  { %v2723_v38 = vpop.f32.mrb[20].mxu1 }
 0xd7d   :  { %v2725_v8 = vpop.f32.mrb[21].mxu1  ;;  %v8301_v44 = vadd.f32 %v2723_v38, %v8298_v11  ;;  %v7056_v38 = vpack.c.bf16 %v118_v14, %v117_v36 }
 0xd7e   :  { %v2726_v22 = vadd.f32 %v2725_v8, %v8294_v21  ;;  %v101_v8 = vld [vmem:[%s9148_s4 + $0x40] sm:$0xff] }
 0xd7f   :  { %v6071_v48 = vmul.f32 -1.702, %v8301_v44 }
 0xd80   :  { %v6072_v23 = vmul.f32 -1.702, %v2726_v22 }
 0xd81   :  { %v2762_v41 = vmul.f32 1.442695, %v6071_v48  ;;  %v105_v48 = vld [vmem:[%s9148_s4 + $0x60] sm:$0xff] }
 0xd82   :  { %v2764_v9 = vmul.f32 1.442695, %v6072_v23  ;;  %v120_v23 = vld [vmem:[%s9148_s4 + $0xd8] sm:$0xff] }
 0xd84   :  { %7516 = vpow2.f32 %v2764_v9 }
 0xd8e   :  { %v7517_v34 = vpop.eup %7516 }
 0xd8f   :  { %v2779_v37 = vadd.f32 1.0, %v7517_v34  ;;  %v104_v34 = vld [vmem:[%s9148_s4 + $0x58] sm:$0xff] }
 0xdd0   :  { %v2595_v25 = vpop.xlane.xlu0 %2594 }
 0xdd1   :  { %v2603_v30 = vmul.f32 0.015625, %v2595_v25  ;;  %v7058_v25 = vpack.c.bf16 %v102_v19, %v101_v8 }
 0xdd3   :  { %v2607_v32 = vadd.f32 1e-05, %v2603_v30 }
 0xdd5   :  { %7518 = vrsqrt.f32 %v2607_v32  ;;  %v103_v32 = vld [vmem:[%s9148_s4 + $0x50] sm:$0xff] }
 0xdd6   :  { %7520 = vrcp.f32 %v2779_v37  ;;  %v121_v37 = vld [vmem:[%s9148_s4 + $0xe0] sm:$0xff] }
 0xdd7   :  { %7522 = vpow2.f32 %v2762_v41  ;;  %v108_v41 = vld [vmem:[%s9148_s4 + $0x78] sm:$0xff] }
 0xddf   :  { %v7519_v43 = vpop.eup %7518 }
 0xde0   :  { %v2615_v52 = vmul.f32 %v7519_v43, %v2583_v12  ;;  %v7521_v60 = vpop.eup %7520  ;;  %v99_v12 = vld [vmem:[%s9148_s4 + $0x30] sm:$0xff]  ;;  %v122_v43 = vld [vmem:[%s9148_s4 + $0xe8] sm:$0xff] }
 0xde1   :  { %v2803_v28 = vmul.f32 %v7521_v60, %v2726_v22  ;;  %v7054_v15 = vpack.c.bf16 %v100_v13, %v99_v12  ;;  %v7523_v16 = vpop.eup %7522  ;;  %v119_v22 = vld [vmem:[%s9148_s4 + $0xd0] sm:$0xff] }
 0xde2   :  { %v2623_v47 = vmul.f32 %v8256_v56, %v2615_v52  ;;  %v2778_v9 = vadd.f32 1.0, %v7523_v16  ;;  %v7060_v30 = vpack.c.bf16 %v120_v23, %v119_v22  ;;  %v7062_v52 = vpack.c.bf16 %v104_v34, %v103_v32  ;;  %v107_v60 = vld [vmem:[%s9148_s4 + $0x70] sm:$0xff] }
 0xde4   :  { %v2631_v24 = vadd.f32 %v8261_v59, %v2623_v47  ;;  %7524 = vrcp.f32 %v2778_v9  ;;  %v7064_v47 = vpack.c.bf16 %v122_v43, %v121_v37 }
 0xde6   :  { %6068 = vmatmul.mubr.msk.f32.gmra.mrb[22].mxu1 %vm127_vm0, %v2631_v24  ;;  %v106_v24 = vld [vmem:[%s9148_s4 + $0x68] sm:$0xff] }
 0xde7   :  { %2733 = vmatprep.mubr.f32.mxu1 %v7704_v33  ;;  %v7066_v58 = vpack.c.bf16 %v106_v24, %v105_v48 }
 0xde8   :  { %v6690_v20 = vpop.f32.mrb[22].mxu0 }
 0xde9   :  { %v2462_v40 = vpop.f32.mrb[23].mxu0 }
 0xdea   :  { %6695 = vmatprep.mubr.msk.f32.mxu0 %vm315_vm1, %v2462_v40 }
 0xdeb   :  { %6696 = vmatmul.mubr.msk.f32.vlgmr.msra.gmra.mrb[18].mxu0 %vm315_vm1, %v6690_v20  ;;  %v7070_v20 = vpack.c.bf16 %v108_v41, %v107_v60 }
 0xdec   :  { %7043 = vmatpush3.bf16.msra.mxu0 %v7042_v29  ;;  %2878 = vmatprep.mubr.f32.mxu0 %v2803_v28 }
 0xded   :  { %7045 = vmatprep.subr.bf16.mxu0 %v7044_v0 }
 0xdee   :  { %v7525_v29 = vpop.eup %7524 }
 0xdef   :  { %v2802_v40 = vmul.f32 %v7525_v29, %v8301_v44  ;;  %v7677_v44 = vld [vmem:[%s9144_s0 + $0x10] sm:$0xff] }
 0xdf0   :  { %7047 = vmatpush3.bf16.msra.mxu0 %v7046_v26 }
 0xdf1   :  { %7049 = vmatprep.subr.bf16.mxu0 %v7048_v3 }
 0xdf4   :  { %7051 = vmatpush3.bf16.msra.mxu0 %v7050_v45 }
 0xdf5   :  { %7053 = vmatprep.subr.bf16.mxu0 %v7052_v7  ;;  %v7678_v7 = vld [vmem:[%s9144_s0 + $0x18] sm:$0xff] }
 0xdf8   :  { %7055 = vmatpush3.bf16.msra.mxu0 %v7054_v15 }
 0xdf9   :  { %7057 = vmatprep.subr.bf16.mxu0 %v7056_v38 }
 0xdfc   :  { %7059 = vmatpush3.bf16.msra.mxu0 %v7058_v25 }
 0xdfd   :  { %7061 = vmatprep.subr.bf16.mxu0 %v7060_v30  ;;  %v2812_v30 = vsub.s32 5, %v7852_v49 }
 0xdff   :  { %v8423_v32 = vrot.slane %v8251_v54, %v2812_v30 }
 0xe00   :  { %7063 = vmatpush3.bf16.msra.mxu0 %v7062_v52 }
 0xe01   :  { %7065 = vmatprep.subr.bf16.mxu0 %v7064_v47 }
 0xe04   :  { %7067 = vmatpush3.bf16.msra.mxu0 %v7066_v58 }
 0xe05   :  { %7069 = vmatprep.subr.bf16.mxu0 %v7068_v10 }
 0xe08   :  { %7071 = vmatpush3.bf16.msra.mxu0 %v7070_v20 }
 0xe0b   :  { %2879 = vmatmul.mubr.f32.vlgmr.msra.gmra.mrb[24].mxu0 %v2802_v40 }
 0xeb9   :  { %v2729_v0 = vpop.f32.mrb[22].mxu1 }
 0xeba   :  { %v2730_v55 = vadd.f32 %v2729_v0, %v8298_v11  ;;  %v2731_v18 = vpop.f32.mrb[23].mxu1 }
 0xebb   :  { %v2732_v28 = vadd.f32 %v2731_v18, %v8294_v21 }
 0xebc   :  { %v6073_v1 = vmul.f32 -1.702, %v2730_v55 }
 0xebd   :  { %v6074_v2 = vmul.f32 -1.702, %v2732_v28 }
 0xebe   :  { %v2766_v26 = vmul.f32 1.442695, %v6073_v1  ;;  %v6697_v3 = vpop.f32.mrb[18].mxu0 }
 0xebf   :  { %v2768_v4 = vmul.f32 1.442695, %v6074_v2  ;;  %v2543_v39 = vpop.f32.mrb[19].mxu0  ;;  %v2561_v5 = vadd.f32 %v6697_v3, %v8166_v31 }
 0xec0   :  { %7526 = vpow2.f32 %v2766_v26  ;;  %v2560_v6 = vadd.f32 %v8166_v31, %v2543_v39 }
 0xec1   :  { %7528 = vpow2.f32 %v2768_v4  ;;  %v8413_v12 = vadd.f32 %v7678_v7, %v2561_v5 }
 0xec2   :  { %v8408_v45 = vadd.f32 %v7677_v44, %v2560_v6 }
 0xec3   :  { %v2575_v31 = vsel %vm127_vm0, %v8413_v12, 0.0 }
 0xec4   :  { %v2572_v13 = vsel %vm127_vm0, %v8408_v45, 0.0 }
 0xec5   :  { %2573 = vadd.xlane.f32.xlu0 %v2572_v13 }
 0xec9   :  { %2576 = vadd.xlane.f32.xlu0 %v2575_v31 }
 0xeca   :  { %v7527_v36 = vpop.eup %7526 }
 0xecb   :  { %v7529_v14 = vpop.eup %7528  ;;  %v2780_v15 = vadd.f32 1.0, %v7527_v36 }
 0xecc   :  { %v2781_v16 = vadd.f32 1.0, %v7529_v14 }
 0xecd   :  { %7530 = vrcp.f32 %v2780_v15 }
 0xece   :  { %7532 = vrcp.f32 %v2781_v16  ;;  %v6081_v16 = vld [vmem:[%s9145_s1 + $0x88] sm:$0xff] }
 0xed7   :  { %v7531_v38 = vpop.eup %7530 }
 0xed8   :  { %v7533_v8 = vpop.eup %7532  ;;  %v2804_v22 = vmul.f32 %v7531_v38, %v2730_v55  ;;  %v6083_v38 = vld [vmem:[%s9145_s1 + $0x98] sm:$0xff] }
 0xed9   :  { %v2805_v19 = vmul.f32 %v7533_v8, %v2732_v28  ;;  %v7072_v8 = vpack.c.bf16 %v6083_v38, %v6081_v16 }
 0xedb   :  { %2883 = vmatprep.mubr.f32.mxu0 %v2805_v19  ;;  %7073 = vmatprep.subr.bf16.mxu1 %v7072_v8 }
 0xedc   :  { %2884 = vmatmul.mubr.f32.gmra.mrb[26].mxu0 %v2804_v22  ;;  %v6085_v22 = vld [vmem:[%s9145_s1 + $0xa8] sm:$0xff] }
 0xede   :  { %v6364_v23 = vpop.f32.mrb[24].mxu0 }
 0xedf   :  { %v6365_v9 = vpop.f32.mrb[25].mxu0 }
 0xee0   :  { %v6366_v25 = vadd.f32 %v6365_v9, %v6364_v23  ;;  %v6087_v23 = vld [vmem:[%s9145_s1 + $0xb8] sm:$0xff] }
 0xee1   :  { %v7076_v9 = vpack.c.bf16 %v6087_v23, %v6085_v22 }
 0xee2   :  { %v2881_v43 = vadd.f32 %v6366_v25, %v8423_v32  ;;  %v6084_v25 = vld [vmem:[%s9145_s1 + $0xa0] sm:$0xff] }
 0xee4   :  { %v8428_v27 = vadd.f32 %v2881_v43, %v8173_v35  ;;  %v6089_v43 = vld [vmem:[%s9145_s1 + $0xc8] sm:$0xff] }
 0xee6   :  { %v2985_v54 = vsel %vm127_vm0, %v8428_v27, 0.0 }
 0xf52   :  { %v2574_v34 = vpop.xlane.xlu0 %2573 }
 0xf53   :  { %v2580_v37 = vmul.f32 0.015625, %v2574_v34  ;;  %v6086_v34 = vld [vmem:[%s9145_s1 + $0xb0] sm:$0xff] }
 0xf55   :  { %v2584_v52 = vsub.f32 %v8408_v45, %v2580_v37  ;;  %v7078_v37 = vpack.c.bf16 %v6086_v34, %v6084_v25 }
 0xf56   :  { %v2577_v47 = vpop.xlane.xlu0 %2576 }
 0xf57   :  { %v2581_v48 = vmul.f32 0.015625, %v2577_v47  ;;  %v2588_v24 = vmul.f32 %v2584_v52, %v2584_v52 }
 0xf59   :  { %v2585_v57 = vsub.f32 %v8413_v12, %v2581_v48  ;;  %v2596_v58 = vsel %vm127_vm0, %v2588_v24, 0.0  ;;  %v6088_v48 = vld [vmem:[%s9145_s1 + $0xc0] sm:$0xff]  ;;  %v6090_v24 = vld [vmem:[%s9145_s1 + $0xd0] sm:$0xff] }
 0xf5a   :  { %2597 = vadd.xlane.f32.xlu0 %v2596_v58  ;;  %v6093_v58 = vld [vmem:[%s9145_s1 + $0xe8] sm:$0xff] }
 0xf5b   :  { %v2589_v10 = vmul.f32 %v2585_v57, %v2585_v57 }
 0xf5d   :  { %v2599_v60 = vsel %vm127_vm0, %v2589_v10, 0.0  ;;  %v6095_v10 = vld [vmem:[%s9145_s1 + $0xf8] sm:$0xff] }
 0xf5e   :  { %2986 = vadd.xlane.f32.xlu0 %v2985_v54  ;;  %2600 = vadd.xlane.f32.xlu1 %v2599_v60  ;;  %v7084_v54 = vpack.c.bf16 %v6095_v10, %v6093_v58  ;;  %v6092_v60 = vld [vmem:[%s9145_s1 + $0xe0] sm:$0xff] }
 0xfaf   :  { %v6367_v41 = vpop.f32.mrb[26].mxu0 }
 0xfb0   :  { %v6368_v20 = vpop.f32.mrb[27].mxu0 }
 0xfb1   :  { %v6369_v29 = vadd.f32 %v6368_v20, %v6367_v41  ;;  %v6094_v41 = vld [vmem:[%s9145_s1 + $0xf0] sm:$0xff] }
 0xfb2   :  { %v7086_v20 = vpack.c.bf16 %v6094_v41, %v6092_v60 }
 0xfb3   :  { %v2886_v40 = vadd.f32 %v6369_v29, %v8423_v32 }
 0xfb5   :  { %v8437_v35 = vadd.f32 %v2886_v40, %v8270_v61 }
 0xfb7   :  { %v2988_v0 = vsel %vm127_vm0, %v8437_v35, 0.0 }
 0xfb8   :  { %2989 = vadd.xlane.f32.xlu1 %v2988_v0 }
 0xfe7   :  { %v2598_v55 = vpop.xlane.xlu0 %2597 }
 0xfe8   :  { %v2604_v18 = vmul.f32 0.015625, %v2598_v55 }
 0xfea   :  { %v2608_v28 = vadd.f32 1e-05, %v2604_v18 }
 0xfeb   :  { %v2601_v1 = vpop.xlane.xlu1 %2600  ;;  %v2987_v2 = vpop.xlane.xlu0 %2986 }
 0xfec   :  { %7534 = vrsqrt.f32 %v2608_v28  ;;  %v2605_v26 = vmul.f32 0.015625, %v2601_v1  ;;  %v2997_v3 = vmul.f32 0.015625, %v2987_v2 }
 0xfee   :  { %v2609_v4 = vadd.f32 1e-05, %v2605_v26  ;;  %v8442_v39 = vsub.f32 %v8428_v27, %v2997_v3  ;;  %v6079_v26 = vld [vmem:[%s9151_s7 + $0x8] sm:$0xff] }
 0xfef   :  { %v8509_v3 = vrot.slane %v6079_v26, %v7855_v51 }
 0xff0   :  { %7536 = vrsqrt.f32 %v2609_v4  ;;  %v3005_v61 = vmul.f32 %v8442_v39, %v8442_v39 }
 0xff2   :  { %v3009_v5 = vsel %vm127_vm0, %v3005_v61, 0.0  ;;  %v8512_v61 = vrot.slane %v6079_v26, %v7863_v53  ;;  %v6152_v26 = vld [vmem:[%s9149_s5 + $0x2] sm:$0x3] }
 0xff3   :  { %3010 = vadd.xlane.f32.xlu0 %v3009_v5 }
 0xff6   :  { %v7535_v6 = vpop.eup %7534 }
 0xff7   :  { %v2616_v44 = vmul.f32 %v7535_v6, %v2584_v52  ;;  %v6091_v52 = vld [vmem:[%s9145_s1 + $0xd8] sm:$0xff] }
 0xff8   :  { %v7080_v47 = vpack.c.bf16 %v6091_v52, %v6089_v43 }
 0xff9   :  { %v2624_v7 = vmul.f32 %v8256_v56, %v2616_v44 }
 0xffa   :  { %v7537_v13 = vpop.eup %7536 }
 0xffb   :  { %v2632_v31 = vadd.f32 %v8261_v59, %v2624_v7  ;;  %v2617_v36 = vmul.f32 %v7537_v13, %v2585_v57  ;;  %v7082_v57 = vpack.c.bf16 %v6090_v24, %v6088_v48 }
 0xffd   :  { %6069 = vmatmul.mubr.msk.f32.gmra.mrb[24].mxu1 %vm127_vm0, %v2632_v31  ;;  %v2625_v14 = vmul.f32 %v8256_v56, %v2617_v36  ;;  %v6080_v56 = vld [vmem:[%s9145_s1 + $0x80] sm:$0xff] }
 0xffe   :  { %2739 = vmatprep.mubr.f32.mxu1 %v7704_v33 }
 0xfff   :  { %v2633_v15 = vadd.f32 %v8261_v59, %v2625_v14  ;;  %v6082_v59 = vld [vmem:[%s9145_s1 + $0x90] sm:$0xff] }
0x1000   :  { %v7074_v19 = vpack.c.bf16 %v6082_v59, %v6080_v56 }
0x1001   :  { %6070 = vmatmul.mubr.msk.f32.gmra.mrb[26].mxu1 %vm127_vm0, %v2633_v15 }
0x1002   :  { %3140 = vmatprep.mubr.f32.mxu1 %v7704_v33  ;;  %7075 = vmatpush1.bf16.msra.mxu1 %v7074_v19 }
0x1003   :  { %7077 = vmatprep.subr.bf16.mxu1 %v7076_v9 }
0x1006   :  { %7079 = vmatpush1.bf16.msra.mxu1 %v7078_v37 }
0x1007   :  { %7081 = vmatprep.subr.bf16.mxu1 %v7080_v47 }
0x100a   :  { %7083 = vmatpush1.bf16.msra.mxu1 %v7082_v57 }
0x100b   :  { %7085 = vmatprep.subr.bf16.mxu1 %v7084_v54 }
0x100e   :  { %7087 = vmatpush1.bf16.msra.mxu1 %v7086_v20 }
0x1045   :  { %v2990_v29 = vpop.xlane.xlu1 %2989 }
0x1046   :  { %v2998_v40 = vmul.f32 0.015625, %v2990_v29 }
0x1048   :  { %v3002_v0 = vsub.f32 %v8437_v35, %v2998_v40 }
0x104a   :  { %v3006_v55 = vmul.f32 %v3002_v0, %v3002_v0 }
0x104c   :  { %v3012_v18 = vsel %vm127_vm0, %v3006_v55, 0.0 }
0x104d   :  { %3013 = vadd.xlane.f32.xlu1 %v3012_v18 }
0x1080   :  { %v3011_v28 = vpop.xlane.xlu0 %3010 }
0x1081   :  { %v3021_v1 = vmul.f32 0.015625, %v3011_v28 }
0x1083   :  { %v3025_v2 = vadd.f32 1e-05, %v3021_v1 }
0x1085   :  { %7538 = vrsqrt.f32 %v3025_v2 }
0x108f   :  { %v7539_v4 = vpop.eup %7538 }
0x1090   :  { %v3033_v5 = vmul.f32 %v7539_v4, %v8442_v39  ;;  %v8531_v4 = vrot.slane %v6152_v26, %v7863_v53 }
0x1092   :  { %v3041_v6 = vmul.f32 %v8509_v3, %v3033_v5 }
0x1094   :  { %v3049_v44 = vadd.f32 %v8512_v61, %v3041_v6 }
0x1096   :  { %6154 = vmatmul.mubr.msk.f32.vlgmr.msra.gmra.mrb[28].mxu1 %vm127_vm0, %v3049_v44 }
0x1097   :  { %3146 = vmatprep.mubr.f32.mxu1 %v7704_v33 }
0x10d0   :  { %v2735_v7 = vpop.f32.mrb[24].mxu1 }
0x10d1   :  { %v2736_v13 = vadd.f32 %v2735_v7, %v8298_v11  ;;  %v2737_v31 = vpop.f32.mrb[25].mxu1 }
0x10d2   :  { %v2738_v36 = vadd.f32 %v2737_v31, %v8294_v21 }
0x10d3   :  { %v6075_v14 = vmul.f32 -1.702, %v2736_v13 }
0x10d4   :  { %v6076_v15 = vmul.f32 -1.702, %v2738_v36  ;;  %v2741_v16 = vpop.f32.mrb[26].mxu1 }
0x10d5   :  { %v2770_v38 = vmul.f32 1.442695, %v6075_v14  ;;  %v2742_v39 = vadd.f32 %v2741_v16, %v8298_v11  ;;  %v2743_v8 = vpop.f32.mrb[27].mxu1 }
0x10d6   :  { %v2772_v56 = vmul.f32 1.442695, %v6076_v15  ;;  %v2744_v59 = vadd.f32 %v2743_v8, %v8294_v21 }
0x10d7   :  { %7540 = vpow2.f32 %v2770_v38  ;;  %v6077_v19 = vmul.f32 -1.702, %v2742_v39 }
0x10d8   :  { %7542 = vpow2.f32 %v2772_v56  ;;  %v6078_v22 = vmul.f32 -1.702, %v2744_v59 }
0x10d9   :  { %v2774_v23 = vmul.f32 1.442695, %v6077_v19 }
0x10da   :  { %v2776_v9 = vmul.f32 1.442695, %v6078_v22  ;;  %v3014_v25 = vpop.xlane.xlu1 %3013 }
0x10db   :  { %7544 = vpow2.f32 %v2774_v23  ;;  %v3022_v34 = vmul.f32 0.015625, %v3014_v25 }
0x10dc   :  { %7546 = vpow2.f32 %v2776_v9 }
0x10dd   :  { %v3026_v37 = vadd.f32 1e-05, %v3022_v34 }
0x10df   :  { %7548 = vrsqrt.f32 %v3026_v37 }
0x10e1   :  { %v7541_v43 = vpop.eup %7540 }
0x10e2   :  { %v7543_v52 = vpop.eup %7542  ;;  %v2782_v47 = vadd.f32 1.0, %v7541_v43 }
0x10e3   :  { %v2783_v11 = vadd.f32 1.0, %v7543_v52 }
0x10e4   :  { %7550 = vrcp.f32 %v2782_v47 }
0x10e5   :  { %v7545_v48 = vpop.eup %7544  ;;  %7552 = vrcp.f32 %v2783_v11  ;;  %v8556_v11 = vrot.slane %v6152_v26, %v7855_v51 }
0x10e6   :  { %v7547_v21 = vpop.eup %7546  ;;  %v2784_v24 = vadd.f32 1.0, %v7545_v48 }
0x10e7   :  { %v2785_v57 = vadd.f32 1.0, %v7547_v21 }
0x10e8   :  { %7554 = vrcp.f32 %v2784_v24 }
0x10e9   :  { %v7549_v58 = vpop.eup %7548  ;;  %7556 = vrcp.f32 %v2785_v57 }
0x10ea   :  { %v3034_v10 = vmul.f32 %v7549_v58, %v3002_v0 }
0x10ec   :  { %v3042_v54 = vmul.f32 %v8509_v3, %v3034_v10 }
0x10ee   :  { %v7551_v60 = vpop.eup %7550  ;;  %v3050_v41 = vadd.f32 %v8512_v61, %v3042_v54 }
0x10ef   :  { %v7553_v20 = vpop.eup %7552  ;;  %v2806_v40 = vmul.f32 %v7551_v60, %v2736_v13 }
0x10f0   :  { %v2807_v29 = vmul.f32 %v7553_v20, %v2738_v36  ;;  %6155 = vmatmul.mubr.msk.f32.gmra.mrb[30].mxu1 %vm127_vm0, %v3050_v41 }
0x10f1   :  { %3152 = vmatprep.mubr.f32.mxu1 %v7704_v33 }
0x10f2   :  { %v7555_v55 = vpop.eup %7554  ;;  %2888 = vmatprep.mubr.f32.mxu0 %v2807_v29 }
0x10f3   :  { %v7557_v18 = vpop.eup %7556  ;;  %2889 = vmatmul.mubr.f32.gmra.mrb[28].mxu0 %v2806_v40  ;;  %v2808_v1 = vmul.f32 %v7555_v55, %v2742_v39 }
0x10f4   :  { %v2809_v28 = vmul.f32 %v7557_v18, %v2744_v59 }
0x10f6   :  { %2893 = vmatprep.mubr.f32.mxu0 %v2809_v28 }
0x10f7   :  { %2894 = vmatmul.mubr.f32.gmra.mrb[30].mxu0 %v2808_v1 }
0x1169   :  { %v3142_v0 = vpop.f32.mrb[28].mxu1 }
0x116a   :  { %v3144_v2 = vpop.f32.mrb[29].mxu1  ;;  %v8562_v21 = vadd.f32 %v3142_v0, %v8556_v11 }
0x116b   :  { %v3145_v44 = vadd.f32 %v3144_v2, %v8531_v4 }
0x11c3   :  { %v3148_v5 = vpop.f32.mrb[30].mxu1 }
0x11c4   :  { %v3150_v6 = vpop.f32.mrb[31].mxu1  ;;  %v8559_v48 = vadd.f32 %v3148_v5, %v8556_v11 }
0x11c5   :  { %v3151_v7 = vadd.f32 %v3150_v6, %v8531_v4 }
0x11c6   :  { %v6370_v13 = vpop.f32.mrb[28].mxu0  ;;  %v8566_v24 = vpack.i.bf16 %v8559_v48, %v8562_v21 }
0x11c7   :  { %v6371_v31 = vpop.f32.mrb[29].mxu0  ;;  %v8535_v36 = vpack.c.bf16 %v3151_v7, %v3145_v44  ;;  %v8537_v14 = vpack.i.bf16 %v3151_v7, %v3145_v44 }
0x11c8   :  { %v6372_v15 = vadd.f32 %v6371_v31, %v6370_v13 }
0x11ca   :  { %v2891_v16 = vadd.f32 %v6372_v15, %v8423_v32  ;;  %v6373_v38 = vpop.f32.mrb[30].mxu0 }
0x11cb   :  { %v6374_v39 = vpop.f32.mrb[31].mxu0 }
0x11cc   :  { %v8541_v8 = vadd.f32 %v2891_v16, %v8408_v45  ;;  %v6375_v56 = vadd.f32 %v6374_v39, %v6373_v38 }
0x11ce   :  { %v2896_v59 = vadd.f32 %v6375_v56, %v8423_v32  ;;  %v2991_v19 = vsel %vm127_vm0, %v8541_v8, 0.0 }
0x11cf   :  { %2992 = vadd.xlane.f32.xlu0 %v2991_v19 }
0x11d0   :  { %v8547_v22 = vadd.f32 %v2896_v59, %v8413_v12 }
0x11d2   :  { %v2994_v23 = vsel %vm127_vm0, %v8547_v22, 0.0 }
0x11d3   :  { %2995 = vadd.xlane.f32.xlu1 %v2994_v23 }
0x125c   :  { %v2993_v9 = vpop.xlane.xlu0 %2992 }
0x125d   :  { %v2999_v25 = vmul.f32 0.015625, %v2993_v9 }
0x125f   :  { %v3003_v34 = vsub.f32 %v8541_v8, %v2999_v25 }
0x1260   :  { %v2996_v45 = vpop.xlane.xlu1 %2995 }
0x1261   :  { %v3000_v37 = vmul.f32 0.015625, %v2996_v45  ;;  %v3007_v43 = vmul.f32 %v3003_v34, %v3003_v34 }
0x1263   :  { %v3004_v32 = vsub.f32 %v8547_v22, %v3000_v37  ;;  %v3015_v52 = vsel %vm127_vm0, %v3007_v43, 0.0 }
0x1264   :  { %3016 = vadd.xlane.f32.xlu0 %v3015_v52 }
0x1265   :  { %v3008_v47 = vmul.f32 %v3004_v32, %v3004_v32 }
0x1267   :  { %v3018_v12 = vsel %vm127_vm0, %v3008_v47, 0.0 }
0x1268   :  { %3019 = vadd.xlane.f32.xlu1 %v3018_v12 }
0x1279   :  { %7378 = vrot.lane.b32.xlu1 %v8566_v24, %s7711_s28 }
0x127a   :  { %7373 = vrot.lane.b32.xlu0 %v8566_v24, %s7705_s23 }
0x127d   :  { %3357 = vrot.lane.b32.xlu1 %v8562_v21, %s7709_s26 }
0x1281   :  { %3359 = vrot.lane.b32.xlu1 %v8559_v48, %s7709_s26 }
0x12f1   :  { %v3017_v57 = vpop.xlane.xlu0 %3016 }
0x12f2   :  { %v3023_v58 = vmul.f32 0.015625, %v3017_v57 }
0x12f4   :  { %v3027_v10 = vadd.f32 1e-05, %v3023_v58 }
0x12f5   :  { %v3020_v54 = vpop.xlane.xlu1 %3019  ;;  %v7374_v60 = vpop.permute.xlu0 %7373 }
0x12f6   :  { %7558 = vrsqrt.f32 %v3027_v10  ;;  %v3024_v41 = vmul.f32 0.015625, %v3020_v54  ;;  %v7376_v20 = vunpack.i.h.bf16 %v7374_v60  ;;  %v7375_v29 = vunpack.i.l.bf16 %v7374_v60 }
0x12f8   :  { %v3028_v40 = vadd.f32 1e-05, %v3024_v41  ;;  %v7088_v55 = vpack.c.bf16 %v7376_v20, %v7375_v29 }
0x12f9   :  { %v7379_v18 = vpop.permute.xlu1 %7378 }
0x12fa   :  { %7560 = vrsqrt.f32 %v3028_v40  ;;  %v7381_v28 = vunpack.i.h.bf16 %v7379_v18  ;;  %v7380_v1 = vunpack.i.l.bf16 %v7379_v18  ;;  %7090 = vmatprep.subr.msk.bf16.mxu1 %vm7911_vm2, %v7088_v55 }
0x12fb   :  { %7093 = vmatpush3.bf16.xpose.msk.msra.mxu1 %vm7911_vm2, %v7088_v55 }
0x12fc   :  { %v7098_v0 = vpack.c.bf16 %v7381_v28, %v7380_v1  ;;  %7095 = vmatprep.subr.bf16.mxu1 %v8535_v36 }
0x12fd   :  { %v3358_v2 = vpop.permute.xlu1 %3357 }
0x12fe   :  { %7100 = vmatprep.subr.msk.bf16.mxu0 %vm7911_vm2, %v7098_v0  ;;  %6716 = vmatprep.mubr.msk.f32.mxu0 %vm315_vm1, %v3358_v2 }
0x12ff   :  { %7103 = vmatpush3.bf16.xpose.msk.msra.mxu0 %vm7911_vm2, %v7098_v0 }
0x1300   :  { %v7559_v26 = vpop.eup %7558 }
0x1301   :  { %v3035_v5 = vmul.f32 %v7559_v26, %v3003_v34  ;;  %v3360_v7 = vpop.permute.xlu1 %3359 }
0x1303   :  { %v3043_v6 = vmul.f32 %v8509_v3, %v3035_v5 }
0x1304   :  { %v7561_v44 = vpop.eup %7560 }
0x1305   :  { %v3051_v13 = vadd.f32 %v8512_v61, %v3043_v6  ;;  %v3036_v31 = vmul.f32 %v7561_v44, %v3004_v32 }
0x1306   :  { %6717 = vmatmul.mubr.msk.f32.vlgmr.msra.gmra.mrb[32].mxu0 %vm315_vm1, %v3360_v7 }
0x1307   :  { %6156 = vmatmul.mubr.msk.f32.gmra.mrb[32].mxu1 %vm127_vm0, %v3051_v13  ;;  %v3044_v15 = vmul.f32 %v8509_v3, %v3036_v31 }
0x1308   :  { %3158 = vmatprep.mubr.f32.mxu1 %v7704_v33 }
0x1309   :  { %v3052_v16 = vadd.f32 %v8512_v61, %v3044_v15 }
0x130b   :  { %6157 = vmatmul.mubr.msk.f32.gmra.mrb[34].mxu1 %vm127_vm0, %v3052_v16 }
0x130c   :  { %6702 = vmatprep.mubr.msk.f32.mxu1 %vm315_vm1, %v8562_v21 }
0x130f   :  { %6703 = vmatmul.mubr.msk.f32.vlgmr.msra.gmra.mrb[36].mxu1 %vm315_vm1, %v8559_v48 }
0x1310   :  { %7097 = vmatpush3.bf16.msra.mxu1 %v8535_v36 }
0x13d9   :  { %v6718_v38 = vpop.f32.mrb[32].mxu0 }
0x13da   :  { %v8599_v39 = vpop.f32.mrb[32].mxu1  ;;  %v3439_v56 = vpop.f32.mrb[33].mxu0 }
0x13db   :  { %v3156_v59 = vpop.f32.mrb[33].mxu1  ;;  %v3440_v32 = vadd.f32 %v3439_v56, %v7936_v63 }
0x13dc   :  { %v3157_v61 = vadd.f32 %v3156_v59, %v8531_v4 }
0x13dd   :  { %v3448_v47 = vsel %vm315_vm1, %v3440_v32, -inf }
0x13de   :  { %v8601_v3 = vpop.f32.mrb[34].mxu1 }
0x13df   :  { %v3162_v19 = vpop.f32.mrb[35].mxu1 }
0x13e0   :  { %v3163_v23 = vadd.f32 %v3162_v19, %v8531_v4  ;;  %v3445_v4 = vadd.f32 %v6718_v38, %v7934_v62 }
0x13e2   :  { %v6704_v9 = vpop.f32.mrb[36].mxu1  ;;  %v8605_v25 = vpack.c.bf16 %v3163_v23, %v3157_v61  ;;  %v8607_v34 = vpack.i.bf16 %v3163_v23, %v3157_v61  ;;  %v3451_v12 = vsel %vm315_vm1, %v3445_v4, -inf }
0x13e3   :  { %v3251_v45 = vadd.f32 %v6704_v9, %v7934_v62  ;;  %v3245_v36 = vpop.f32.mrb[37].mxu1 }
0x13e4   :  { %v3246_v37 = vadd.f32 %v3245_v36, %v7936_v63 }
0x13e5   :  { %v3257_v43 = vsel %vm315_vm1, %v3251_v45, -inf }
0x13e6   :  { %3258 = vmax.xlane.f32.xlu1 %v3257_v43  ;;  %v3254_v52 = vsel %vm315_vm1, %v3246_v37, -inf }
0x13e7   :  { %3255 = vmax.xlane.f32.xlu0 %v3254_v52 }
0x13eb   :  { %3449 = vmax.xlane.f32.xlu0 %v3448_v47 }
0x13ef   :  { %3452 = vmax.xlane.f32.xlu0 %v3451_v12 }
0x1473   :  { %v3259_v10 = vpop.xlane.xlu1 %3258 }
0x1474   :  { %v3256_v57 = vpop.xlane.xlu0 %3255  ;;  %v3261_v41 = vsub.f32 %v3251_v45, %v3259_v10 }
0x1475   :  { %v3260_v58 = vsub.f32 %v3246_v37, %v3256_v57 }
0x1476   :  { %v3264_v18 = vmul.f32 1.442695, %v3261_v41 }
0x1477   :  { %v3262_v20 = vmul.f32 1.442695, %v3260_v58 }
0x1478   :  { %v3450_v54 = vpop.xlane.xlu0 %3449 }
0x1479   :  { %v3454_v60 = vsub.f32 %v3440_v32, %v3450_v54 }
0x147b   :  { %v3456_v29 = vmul.f32 1.442695, %v3454_v60  ;;  %v8652_v60 = vadd.f32 %v8599_v39, %v8556_v11  ;;  %v6096_v39 = vld [vmem:[%s9146_s2 + $0x40] sm:$0xff] }
0x147c   :  { %v3453_v40 = vpop.xlane.xlu0 %3452 }
0x147d   :  { %7562 = vpow2.f32 %v3456_v29  ;;  %v3455_v55 = vsub.f32 %v3445_v4, %v3453_v40  ;;  %v6099_v29 = vld [vmem:[%s9146_s2 + $0x58] sm:$0xff] }
0x147e   :  { %7564 = vpow2.f32 %v3262_v20  ;;  %v6098_v20 = vld [vmem:[%s9146_s2 + $0x50] sm:$0xff] }
0x147f   :  { %v3458_v28 = vmul.f32 1.442695, %v3455_v55  ;;  %v8663_v40 = vpack.c.bf16 %v6099_v29, %v6098_v20  ;;  %v6097_v55 = vld [vmem:[%s9146_s2 + $0x48] sm:$0xff] }
0x1481   :  { %7566 = vpow2.f32 %v3458_v28  ;;  %7109 = vmatprep.subr.bf16.mxu0 %v8663_v40 }
0x1482   :  { %7568 = vpow2.f32 %v3264_v18  ;;  %7111 = vmatpush3.bf16.msra.mxu0 %v8663_v40  ;;  %v8673_v18 = vpack.c.bf16 %v6097_v55, %v6096_v39 }
0x1484   :  { %7113 = vmatprep.subr.bf16.mxu0 %v8673_v18 }
0x1487   :  { %v7563_v1 = vpop.eup %7562 }
0x1488   :  { %v3460_v0 = vsel %vm315_vm1, %v7563_v1, 0.0  ;;  %v7565_v2 = vpop.eup %7564 }
0x1489   :  { %3461 = vadd.xlane.f32.xlu0 %v3460_v0  ;;  %v3266_v5 = vsel %vm315_vm1, %v7565_v2, 0.0 }
0x148b   :  { %v7567_v26 = vpop.eup %7566 }
0x148c   :  { %v3463_v6 = vsel %vm315_vm1, %v7567_v26, 0.0  ;;  %v7569_v44 = vpop.eup %7568 }
0x148d   :  { %3267 = vadd.xlane.f32.xlu0 %v3266_v5  ;;  %3464 = vadd.xlane.f32.xlu1 %v3463_v6  ;;  %v3269_v7 = vsel %vm315_vm1, %v7569_v44, 0.0 }
0x1491   :  { %3270 = vadd.xlane.f32.xlu1 %v3269_v7 }
0x14a2   :  { %7388 = vrot.lane.b32.xlu1 %v8566_v24, %s7706_s24 }
0x14a3   :  { %7383 = vrot.lane.b32.xlu0 %v8537_v14, %s7709_s26 }
0x14a6   :  { %3721 = vrot.lane.b32.xlu1 %v8562_v21, %s7707_s25 }
0x14a7   :  { %7393 = vrot.lane.b32.xlu0 %v8566_v24, %s7712_s29 }
0x14aa   :  { %3723 = vrot.lane.b32.xlu1 %v8559_v48, %s7707_s25 }
0x14ab   :  { %4006 = vrot.lane.b32.xlu0 %v8559_v48, %s7710_s27 }
0x14ae   :  { %4004 = vrot.lane.b32.xlu1 %v8562_v21, %s7710_s27 }
0x1516   :  { %v3462_v13 = vpop.xlane.xlu0 %3461 }
0x151a   :  { %v3465_v31 = vpop.xlane.xlu1 %3464  ;;  %v3268_v15 = vpop.xlane.xlu0 %3267 }
0x151b   :  { %7570 = vrcp.f32 %v3268_v15 }
0x151c   :  { %7572 = vrcp.f32 %v3462_v13 }
0x151e   :  { %v3271_v16 = vpop.xlane.xlu1 %3270  ;;  %v7384_v38 = vpop.permute.xlu0 %7383 }
0x151f   :  { %7574 = vrcp.f32 %v3271_v16  ;;  %v7386_v56 = vunpack.i.h.bf16 %v7384_v38  ;;  %v7385_v59 = vunpack.i.l.bf16 %v7384_v38  ;;  %v8687_v16 = vadd.f32 %v8601_v3, %v8556_v11 }
0x1520   :  { %7576 = vrcp.f32 %v3465_v31 }
0x1521   :  { %v7104_v24 = vpack.c.bf16 %v7386_v56, %v7385_v59  ;;  %v8693_v38 = vpack.i.bf16 %v8687_v16, %v8652_v60 }
0x1522   :  { %v7389_v19 = vpop.permute.xlu1 %7388  ;;  %v7394_v4 = vpop.permute.xlu0 %7393 }
0x1523   :  { %7105 = vmatprep.subr.bf16.mxu1 %v7104_v24  ;;  %v7391_v9 = vunpack.i.h.bf16 %v7389_v19  ;;  %v7390_v45 = vunpack.i.l.bf16 %v7389_v19  ;;  %v7396_v12 = vunpack.i.h.bf16 %v7394_v4  ;;  %v7395_v57 = vunpack.i.l.bf16 %v7394_v4 }
0x1525   :  { %v7571_v61 = vpop.eup %7570  ;;  %v7116_v32 = vpack.c.bf16 %v7391_v9, %v7390_v45  ;;  %v7130_v58 = vpack.c.bf16 %v7396_v12, %v7395_v57 }
0x1526   :  { %v3274_v23 = vmul.f32 %v7571_v61, %v7565_v2  ;;  %v7573_v48 = vpop.eup %7572  ;;  %v3722_v47 = vpop.permute.xlu1 %3721 }
0x1527   :  { %v3468_v43 = vmul.f32 %v7573_v48, %v7563_v1  ;;  %v4007_v41 = vpop.permute.xlu0 %4006 }
0x1528   :  { %6709 = vmatprep.mubr.msk.f32.mxu1 %vm315_vm1, %v3274_v23 }
0x1529   :  { %v7575_v21 = vpop.eup %7574 }
0x152a   :  { %v3275_v36 = vmul.f32 %v7575_v21, %v7569_v44  ;;  %v7577_v37 = vpop.eup %7576  ;;  %v3724_v10 = vpop.permute.xlu1 %3723 }
0x152b   :  { %v3469_v52 = vmul.f32 %v7577_v37, %v7567_v26 }
0x152c   :  { %6710 = vmatmul.mubr.msk.f32.vlgmr.msra.gmra.mrb[38].mxu1 %vm315_vm1, %v3275_v36 }
0x152d   :  { %7107 = vmatpush3.bf16.msra.mxu1 %v7104_v24  ;;  %6723 = vmatprep.mubr.msk.f32.mxu1 %vm315_vm1, %v3468_v43 }
0x152e   :  { %7118 = vmatprep.subr.msk.bf16.mxu1 %vm7911_vm2, %v7116_v32  ;;  %v4005_v54 = vpop.permute.xlu1 %4004 }
0x1530   :  { %6724 = vmatmul.mubr.msk.f32.vlgmr.msra.gmra.mrb[40].mxu1 %vm315_vm1, %v3469_v52 }
0x1531   :  { %6744 = vmatprep.mubr.msk.f32.mxu1 %vm315_vm1, %v3722_v47 }
0x1536   :  { %7121 = vmatpush3.bf16.xpose.msk.msra.mxu1 %vm7911_vm2, %v7116_v32 }
0x1537   :  { %7132 = vmatprep.subr.msk.bf16.mxu1 %vm7911_vm2, %v7130_v58 }
0x153d   :  { %6745 = vmatmul.mubr.msk.f32.vlgmr.msra.gmra.mrb[42].mxu1 %vm315_vm1, %v3724_v10 }
0x153e   :  { %7135 = vmatpush3.bf16.xpose.msk.msra.mxu1 %vm7911_vm2, %v7130_v58  ;;  %6765 = vmatprep.mubr.msk.f32.mxu1 %vm315_vm1, %v4005_v54 }
0x1545   :  { %6766 = vmatmul.mubr.msk.f32.vlgmr.msra.gmra.mrb[44].mxu1 %vm315_vm1, %v4007_v41 }
0x1546   :  { %6786 = vmatprep.mubr.msk.f32.mxu1 %vm315_vm1, %v8652_v60 }
0x15ff   :  { %v6711_v28 = vpop.f32.mrb[38].mxu1 }
0x1600   :  { %v3348_v1 = vpop.f32.mrb[39].mxu1 }
0x1603   :  { %v6725_v0 = vpop.f32.mrb[40].mxu1 }
0x1604   :  { %v3550_v2 = vpop.f32.mrb[41].mxu1 }
0x1605   :  { %6730 = vmatprep.mubr.msk.f32.mxu0 %vm315_vm1, %v3550_v2 }
0x1606   :  { %6731 = vmatmul.mubr.msk.f32.vlgmr.msra.gmra.mrb[34].mxu0 %vm315_vm1, %v6725_v0 }
0x1607   :  { %6737 = vmatprep.mubr.msk.f32.mxu0 %vm315_vm1, %v3348_v1  ;;  %7115 = vmatpush3.bf16.msra.mxu0 %v8673_v18 }
0x160e   :  { %6738 = vmatmul.mubr.msk.f32.vlgmr.msra.gmra.mrb[34].mxu0 %vm315_vm1, %v6711_v28 }
0x1610   :  { %v6746_v26 = vpop.f32.mrb[42].mxu1 }
0x1611   :  { %v3809_v5 = vadd.f32 %v6746_v26, %v7934_v62  ;;  %v3803_v6 = vpop.f32.mrb[43].mxu1 }
0x1612   :  { %v3804_v44 = vadd.f32 %v3803_v6, %v7936_v63 }
0x1613   :  { %v3815_v7 = vsel %vm315_vm1, %v3809_v5, -inf }
0x1614   :  { %3816 = vmax.xlane.f32.xlu0 %v3815_v7  ;;  %v3812_v13 = vsel %vm315_vm1, %v3804_v44, -inf }
0x1615   :  { %3813 = vmax.xlane.f32.xlu1 %v3812_v13 }
0x1618   :  { %v6767_v31 = vpop.f32.mrb[44].mxu1 }
0x1619   :  { %v4086_v15 = vpop.f32.mrb[45].mxu1  ;;  %v4092_v56 = vadd.f32 %v6767_v31, %v7934_v62 }
0x161a   :  { %v4087_v10 = vadd.f32 %v4086_v15, %v7936_v63 }
0x161b   :  { %v4098_v11 = vsel %vm315_vm1, %v4092_v56, -inf }
0x161c   :  { %v4095_v54 = vsel %vm315_vm1, %v4087_v10, -inf }
0x1626   :  { %7398 = vrot.lane.b32.xlu1 %v8537_v14, %s7707_s25 }
0x162a   :  { %7408 = vrot.lane.b32.xlu1 %v8693_v38, %s7711_s28 }
0x162e   :  { %4479 = vrot.lane.b32.xlu1 %v8652_v60, %s7709_s26 }
0x1632   :  { %4481 = vrot.lane.b32.xlu1 %v8687_v16, %s7709_s26 }
0x1656   :  { %4099 = vmax.xlane.f32.xlu1 %v4098_v11 }
0x1667   :  { %7418 = vrot.lane.b32.xlu1 %v8693_v38, %s7706_s24 }
0x166b   :  { %4843 = vrot.lane.b32.xlu1 %v8652_v60, %s7707_s25 }
0x166f   :  { %4845 = vrot.lane.b32.xlu1 %v8687_v16, %s7707_s25 }
0x16a1   :  { %v3817_v3 = vpop.xlane.xlu0 %3816 }
0x16a2   :  { %v3819_v59 = vsub.f32 %v3809_v5, %v3817_v3  ;;  %v3814_v24 = vpop.xlane.xlu1 %3813 }
0x16a3   :  { %v3818_v19 = vsub.f32 %v3804_v44, %v3814_v24 }
0x16a4   :  { %v3822_v61 = vmul.f32 1.442695, %v3819_v59 }
0x16a5   :  { %v3820_v23 = vmul.f32 1.442695, %v3818_v19 }
0x16a6   :  { %v7399_v48 = vpop.permute.xlu1 %7398 }
0x16a7   :  { %7578 = vpow2.f32 %v3820_v23  ;;  %v7401_v9 = vunpack.i.h.bf16 %v7399_v48  ;;  %v7400_v45 = vunpack.i.l.bf16 %v7399_v48 }
0x16a8   :  { %7580 = vpow2.f32 %v3822_v61 }
0x16a9   :  { %v7122_v21 = vpack.c.bf16 %v7401_v9, %v7400_v45  ;;  %v6100_v9 = vld [vmem:[%s9146_s2 + $0x60] sm:$0xff]  ;;  %v6101_v45 = vld [vmem:[%s9146_s2 + $0x68] sm:$0xff] }
0x16aa   :  { %v7409_v52 = vpop.permute.xlu1 %7408 }
0x16ab   :  { %7123 = vmatprep.subr.bf16.mxu0 %v7122_v21  ;;  %v7411_v28 = vunpack.i.h.bf16 %v7409_v52  ;;  %v7410_v1 = vunpack.i.l.bf16 %v7409_v52 }
0x16ac   :  { %7125 = vmatpush3.bf16.msra.mxu0 %v7122_v21  ;;  %v8746_v21 = vpack.c.bf16 %v6101_v45, %v6100_v9 }
0x16ad   :  { %v7154_v44 = vpack.c.bf16 %v7411_v28, %v7410_v1 }
0x16ae   :  { %v4480_v4 = vpop.permute.xlu1 %4479  ;;  %7127 = vmatprep.subr.bf16.mxu0 %v8746_v21 }
0x16b1   :  { %v7579_v36 = vpop.eup %7578 }
0x16b2   :  { %v3824_v37 = vsel %vm315_vm1, %v7579_v36, 0.0  ;;  %v7581_v43 = vpop.eup %7580  ;;  %v4482_v47 = vpop.permute.xlu1 %4481 }
0x16b3   :  { %3825 = vadd.xlane.f32.xlu0 %v3824_v37  ;;  %v3827_v32 = vsel %vm315_vm1, %v7581_v43, 0.0 }
0x16b7   :  { %3828 = vadd.xlane.f32.xlu0 %v3827_v32 }
0x16cd   :  { %7403 = vrot.lane.b32.xlu0 %v8693_v38, %s7705_s23  ;;  %s7715_s23 = smov [#allocation2]  }
0x16ce   :  { %s5991_s24 = sshll.u32 %s7715_s23, 4  ;;  %s5992_s24 = int_to_ptr.vmem [resolvable:$true] %s5991_s24 }
0x16cf   :  { %s7680_s28 = scalar_lea.vmem %s5992_s24, 32  ;;  %p7685_p1 = scmp.lt.s32.totalorder %s5992_s24, %s5992_s24 }
0x16d0   :  { %p7681_p0 = scmp.ne.s32.totalorder %s5992_s24, %s7680_s28  ;;  %p7686_p2 = scmp.lt.s32.totalorder %s7680_s28, %s7680_s28 }
0x16d2   :  { %p7687_p3 = por %p7686_p2, %p7685_p1 }
0x16d4   :  { %p7688_p4 = pnand %p7687_p3, %p7681_p0 }
0x16e3   :  { %v4100_v12 = vpop.xlane.xlu1 %4099 }
0x16e4   :  { %v4102_v57 = vsub.f32 %v4092_v56, %v4100_v12  ;;  %v6103_v12 = vld [vmem:[%s9146_s2 + $0x78] sm:$0xff] }
0x16e6   :  { %v4105_v58 = vmul.f32 1.442695, %v4102_v57 }
0x16e7   :  { %v7419_v7 = vpop.permute.xlu1 %7418 }
0x16e8   :  { %7582 = vpow2.f32 %v4105_v58  ;;  %v7421_v15 = vunpack.i.h.bf16 %v7419_v7  ;;  %v7420_v56 = vunpack.i.l.bf16 %v7419_v7 }
0x16ea   :  { %v7172_v11 = vpack.c.bf16 %v7421_v15, %v7420_v56 }
0x16eb   :  { %v4844_v3 = vpop.permute.xlu1 %4843 }
0x16ec   :  { %4096 = vmax.xlane.f32.xlu0 %v4095_v54 }
0x16ef   :  { %v4846_v59 = vpop.permute.xlu1 %4845 }
0x16f2   :  { %v8715_v41 = vpop.eup %7582 }
0x16f3   :  { %v4110_v20 = vsel %vm315_vm1, %v8715_v41, 0.0 }
0x16f4   :  { %4111 = vadd.xlane.f32.xlu0 %v4110_v20 }
0x1740   :  { %v3826_v29 = vpop.xlane.xlu0 %3825 }
0x1741   :  { %7584 = vrcp.f32 %v3826_v29 }
0x1744   :  { %v3829_v39 = vpop.xlane.xlu0 %3828 }
0x1745   :  { %7586 = vrcp.f32 %v3829_v39 }
0x1748   :  { %v7404_v55 = vpop.permute.xlu0 %7403 }
0x1749   :  { %v7406_v0 = vunpack.i.h.bf16 %v7404_v55  ;;  %v7405_v2 = vunpack.i.l.bf16 %v7404_v55 }
0x174b   :  { %v7585_v26 = vpop.eup %7584  ;;  %v7144_v5 = vpack.c.bf16 %v7406_v0, %v7405_v2 }
0x174c   :  { %v3832_v6 = vmul.f32 %v7585_v26, %v7579_v36 }
0x174d   :  { %7146 = vmatprep.subr.msk.bf16.mxu1 %vm7911_vm2, %v7144_v5 }
0x174e   :  { %6751 = vmatprep.mubr.msk.f32.mxu0 %vm315_vm1, %v3832_v6  ;;  %7149 = vmatpush3.bf16.xpose.msk.msra.mxu1 %vm7911_vm2, %v7144_v5 }
0x174f   :  { %v7587_v13 = vpop.eup %7586  ;;  %7156 = vmatprep.subr.msk.bf16.mxu1 %vm7911_vm2, %v7154_v44 }
0x1750   :  { %v3833_v31 = vmul.f32 %v7587_v13, %v7581_v43 }
0x1752   :  { %6752 = vmatmul.mubr.msk.f32.vlgmr.msra.gmra.mrb[36].mxu0 %vm315_vm1, %v3833_v31 }
0x1753   :  { %7129 = vmatpush3.bf16.msra.mxu0 %v8746_v21 }
0x1755   :  { %6787 = vmatmul.mubr.msk.f32.vlgmr.msra.gmra.mrb[46].mxu1 %vm315_vm1, %v8687_v16 }
0x1756   :  { %7159 = vmatpush3.bf16.xpose.msk.msra.mxu1 %vm7911_vm2, %v7154_v44  ;;  %6800 = vmatprep.mubr.msk.f32.mxu1 %vm315_vm1, %v4480_v4 }
0x1757   :  { %7174 = vmatprep.subr.msk.bf16.mxu1 %vm7911_vm2, %v7172_v11 }
0x175d   :  { %6801 = vmatmul.mubr.msk.f32.vlgmr.msra.gmra.mrb[48].mxu1 %vm315_vm1, %v4482_v47  ;;  %v6102_v47 = vld [vmem:[%s9146_s2 + $0x70] sm:$0xff] }
0x175e   :  { %7177 = vmatpush3.bf16.xpose.msk.msra.mxu1 %vm7911_vm2, %v7172_v11  ;;  %6828 = vmatprep.mubr.msk.f32.mxu1 %vm315_vm1, %v4844_v3 }
0x1765   :  { %6829 = vmatmul.mubr.msk.f32.vlgmr.msra.gmra.mrb[50].mxu1 %vm315_vm1, %v4846_v59 }
0x1779   :  { %v4097_v24 = vpop.xlane.xlu0 %4096 }
0x177a   :  { %v4101_v19 = vsub.f32 %v4087_v10, %v4097_v24  ;;  %v8758_v10 = vpack.c.bf16 %v6103_v12, %v6102_v47 }
0x177c   :  { %v4103_v61 = vmul.f32 1.442695, %v4101_v19 }
0x177e   :  { %7588 = vpow2.f32 %v4103_v61 }
0x1781   :  { %v4112_v36 = vpop.xlane.xlu0 %4111 }
0x1788   :  { %v7589_v23 = vpop.eup %7588 }
0x1789   :  { %v4107_v48 = vsel %vm315_vm1, %v7589_v23, 0.0 }
0x178a   :  { %4108 = vadd.xlane.f32.xlu0 %v4107_v48 }
0x17a0   :  { %7413 = vrot.lane.b32.xlu0 %v8537_v14, %s7710_s27 }
0x1817   :  { %v4109_v37 = vpop.xlane.xlu0 %4108 }
0x1818   :  { %7590 = vrcp.f32 %v4109_v37 }
0x1819   :  { %7592 = vrcp.f32 %v4112_v36 }
0x181b   :  { %v7414_v43 = vpop.permute.xlu0 %7413 }
0x181c   :  { %v7416_v32 = vunpack.i.h.bf16 %v7414_v43  ;;  %v7415_v52 = vunpack.i.l.bf16 %v7414_v43 }
0x181e   :  { %v7136_v4 = vpack.c.bf16 %v7416_v32, %v7415_v52 }
0x1820   :  { %7137 = vmatprep.subr.bf16.mxu0 %v7136_v4 }
0x1822   :  { %v7591_v57 = vpop.eup %7590 }
0x1823   :  { %v7593_v54 = vpop.eup %7592  ;;  %v4115_v20 = vmul.f32 %v7591_v57, %v7589_v23 }
0x1824   :  { %v4116_v28 = vmul.f32 %v7593_v54, %v8715_v41 }
0x1825   :  { %v6753_v58 = vpop.f32.mrb[36].mxu0 }
0x1826   :  { %v3912_v14 = vpop.f32.mrb[37].mxu0 }
0x1827   :  { %6758 = vmatprep.mubr.msk.f32.mxu0 %vm315_vm1, %v3912_v14 }
0x1828   :  { %6759 = vmatmul.mubr.msk.f32.vlgmr.msra.gmra.mrb[34].mxu0 %vm315_vm1, %v6753_v58  ;;  %v6788_v29 = vpop.f32.mrb[46].mxu1 }
0x1829   :  { %7139 = vmatpush3.bf16.msra.mxu0 %v7136_v4  ;;  %v4373_v39 = vadd.f32 %v6788_v29, %v7934_v62  ;;  %6772 = vmatprep.mubr.msk.f32.mxu0 %vm315_vm1, %v4115_v20  ;;  %v4367_v55 = vpop.f32.mrb[47].mxu1 }
0x182a   :  { %v4368_v1 = vadd.f32 %v4367_v55, %v7936_v63  ;;  %7141 = vmatprep.subr.bf16.mxu0 %v8758_v10 }
0x182b   :  { %v4379_v0 = vsel %vm315_vm1, %v4373_v39, -inf }
0x182c   :  { %4380 = vmax.xlane.f32.xlu1 %v4379_v0  ;;  %6773 = vmatmul.mubr.msk.f32.vlgmr.msra.gmra.mrb[38].mxu0 %vm315_vm1, %v4116_v28  ;;  %v4376_v2 = vsel %vm315_vm1, %v4368_v1, -inf }
0x182d   :  { %7143 = vmatpush3.bf16.msra.mxu0 %v8758_v10  ;;  %4377 = vmax.xlane.f32.xlu0 %v4376_v2 }
0x182e   :  { %7151 = vmatprep.subr.bf16.mxu0 %v8605_v25 }
0x1830   :  { %v6802_v26 = vpop.f32.mrb[48].mxu1 }
0x1831   :  { %v4561_v5 = vpop.f32.mrb[49].mxu1  ;;  %v4567_v6 = vadd.f32 %v6802_v26, %v7934_v62 }
0x1832   :  { %v4562_v41 = vadd.f32 %v4561_v5, %v7936_v63 }
0x1833   :  { %v4573_v13 = vsel %vm315_vm1, %v4567_v6, -inf }
0x1834   :  { %v4570_v44 = vsel %vm315_vm1, %v4562_v41, -inf }
0x1835   :  { %4571 = vmax.xlane.f32.xlu0 %v4570_v44 }
0x1838   :  { %v6830_v7 = vpop.f32.mrb[50].mxu1 }
0x1839   :  { %v4925_v31 = vpop.f32.mrb[51].mxu1  ;;  %4574 = vmax.xlane.f32.xlu0 %v4573_v13  ;;  %v4931_v54 = vadd.f32 %v6830_v7, %v7934_v62 }
0x183a   :  { %v4926_v14 = vadd.f32 %v4925_v31, %v7936_v63 }
0x18b9   :  { %v4381_v15 = vpop.xlane.xlu1 %4380 }
0x18ba   :  { %v4383_v56 = vsub.f32 %v4373_v39, %v4381_v15  ;;  %v4378_v11 = vpop.xlane.xlu0 %4377 }
0x18bb   :  { %v4382_v3 = vsub.f32 %v4368_v1, %v4378_v11 }
0x18bc   :  { %v4386_v59 = vmul.f32 1.442695, %v4383_v56 }
0x18bd   :  { %v4384_v24 = vmul.f32 1.442695, %v4382_v3 }
0x18be   :  { %7594 = vpow2.f32 %v4386_v59 }
0x18bf   :  { %7596 = vpow2.f32 %v4384_v24 }
0x18c2   :  { %v4572_v19 = vpop.xlane.xlu0 %4571 }
0x18c3   :  { %v4576_v61 = vsub.f32 %v4562_v41, %v4572_v19 }
0x18c5   :  { %v4578_v23 = vmul.f32 1.442695, %v4576_v61 }
0x18c6   :  { %v4575_v48 = vpop.xlane.xlu0 %4574 }
0x18c7   :  { %7598 = vpow2.f32 %v4578_v23  ;;  %v4577_v9 = vsub.f32 %v4567_v6, %v4575_v48 }
0x18c8   :  { %v7595_v45 = vpop.eup %7594 }
0x18c9   :  { %v7597_v36 = vpop.eup %7596  ;;  %v4580_v37 = vmul.f32 1.442695, %v4577_v9  ;;  %v4391_v43 = vsel %vm315_vm1, %v7595_v45, 0.0 }
0x18ca   :  { %4392 = vadd.xlane.f32.xlu1 %v4391_v43  ;;  %v4388_v32 = vsel %vm315_vm1, %v7597_v36, 0.0  ;;  %v8816_v43 = vld [vmem:[%s9151_s7 + $0x8] sm:$0xff] }
0x18cb   :  { %7600 = vpow2.f32 %v4580_v37  ;;  %4389 = vadd.xlane.f32.xlu0 %v4388_v32  ;;  %v8821_v32 = vrot.slane %v8816_v43, %v2556_v17 }
0x18d1   :  { %v7599_v52 = vpop.eup %7598 }
0x18d2   :  { %v4582_v4 = vsel %vm315_vm1, %v7599_v52, 0.0 }
0x18d3   :  { %4583 = vadd.xlane.f32.xlu0 %v4582_v4 }
0x18d5   :  { %v7601_v47 = vpop.eup %7600 }
0x18d6   :  { %v4585_v12 = vsel %vm315_vm1, %v7601_v47, 0.0 }
0x18d7   :  { %4586 = vadd.xlane.f32.xlu1 %v4585_v12 }
0x18e8   :  { %7428 = vrot.lane.b32.xlu1 %v8693_v38, %s7712_s29  ;;  %v4934_v38 = vsel %vm315_vm1, %v4926_v14, -inf }
0x18e9   :  { %7423 = vrot.lane.b32.xlu0 %v8607_v34, %s7709_s26 }
0x18ec   :  { %5126 = vrot.lane.b32.xlu1 %v8652_v60, %s7710_s27  ;;  %v4937_v60 = vsel %vm315_vm1, %v4931_v54, -inf }
0x18f0   :  { %5128 = vrot.lane.b32.xlu1 %v8687_v16, %s7710_s27 }
0x18ff   :  { %v6774_v57 = vpop.f32.mrb[38].mxu0 }
0x1900   :  { %v4195_v58 = vpop.f32.mrb[39].mxu0 }
0x1901   :  { %6779 = vmatprep.mubr.msk.f32.mxu0 %vm315_vm1, %v4195_v58 }
0x1902   :  { %6780 = vmatmul.mubr.msk.f32.vlgmr.msra.gmra.mrb[34].mxu0 %vm315_vm1, %v6774_v57 }
0x1903   :  { %7153 = vmatpush3.bf16.msra.mxu0 %v8605_v25 }
0x1908   :  { %4935 = vmax.xlane.f32.xlu0 %v4934_v38 }
0x1914   :  { %4938 = vmax.xlane.f32.xlu1 %v4937_v60 }
0x1957   :  { %v4393_v20 = vpop.xlane.xlu1 %4392 }
0x1958   :  { %7602 = vrcp.f32 %v4393_v20  ;;  %v4390_v16 = vpop.xlane.xlu0 %4389 }
0x1959   :  { %7604 = vrcp.f32 %v4390_v16 }
0x1960   :  { %v4584_v29 = vpop.xlane.xlu0 %4583 }
0x1961   :  { %7606 = vrcp.f32 %v4584_v29 }
0x1962   :  { %v7603_v39 = vpop.eup %7602 }
0x1963   :  { %v7605_v55 = vpop.eup %7604  ;;  %v4397_v25 = vmul.f32 %v7603_v39, %v7595_v45 }
0x1964   :  { %v4587_v28 = vpop.xlane.xlu1 %4586  ;;  %v7424_v1 = vpop.permute.xlu0 %7423  ;;  %v4396_v0 = vmul.f32 %v7605_v55, %v7597_v36 }
0x1965   :  { %7608 = vrcp.f32 %v4587_v28  ;;  %v7426_v2 = vunpack.i.h.bf16 %v7424_v1  ;;  %v7425_v26 = vunpack.i.l.bf16 %v7424_v1 }
0x1966   :  { %6793 = vmatprep.mubr.msk.f32.mxu0 %vm315_vm1, %v4396_v0 }
0x1967   :  { %v7160_v5 = vpack.c.bf16 %v7426_v2, %v7425_v26  ;;  %6794 = vmatmul.mubr.msk.f32.vlgmr.msra.gmra.mrb[40].mxu0 %vm315_vm1, %v4397_v25 }
0x1968   :  { %v7429_v41 = vpop.permute.xlu1 %7428 }
0x1969   :  { %v7431_v6 = vunpack.i.h.bf16 %v7429_v41  ;;  %v7430_v44 = vunpack.i.l.bf16 %v7429_v41  ;;  %7161 = vmatprep.subr.bf16.mxu0 %v7160_v5 }
0x196a   :  { %7163 = vmatpush3.bf16.msra.mxu0 %v7160_v5 }
0x196b   :  { %v7607_v7 = vpop.eup %7606  ;;  %v7186_v13 = vpack.c.bf16 %v7431_v6, %v7430_v44  ;;  %7165 = vmatprep.subr.bf16.mxu0 %v8663_v40 }
0x196c   :  { %v5127_v31 = vpop.permute.xlu1 %5126  ;;  %v4590_v15 = vmul.f32 %v7607_v7, %v7599_v52 }
0x196d   :  { %7188 = vmatprep.subr.msk.bf16.mxu1 %vm7911_vm2, %v7186_v13  ;;  %6849 = vmatprep.mubr.msk.f32.mxu1 %vm315_vm1, %v5127_v31 }
0x196e   :  { %6807 = vmatprep.mubr.msk.f32.mxu0 %vm315_vm1, %v4590_v15  ;;  %7191 = vmatpush3.bf16.xpose.msk.msra.mxu1 %vm7911_vm2, %v7186_v13 }
0x196f   :  { %v7609_v56 = vpop.eup %7608 }
0x1970   :  { %v4591_v11 = vmul.f32 %v7609_v56, %v7601_v47  ;;  %v5129_v3 = vpop.permute.xlu1 %5128 }
0x1972   :  { %6808 = vmatmul.mubr.msk.f32.vlgmr.msra.gmra.mrb[42].mxu0 %vm315_vm1, %v4591_v11 }
0x1973   :  { %7167 = vmatpush3.bf16.msra.mxu0 %v8663_v40 }
0x1974   :  { %7169 = vmatprep.subr.bf16.mxu0 %v8673_v18 }
0x1975   :  { %6850 = vmatmul.mubr.msk.f32.vlgmr.msra.gmra.mrb[52].mxu1 %vm315_vm1, %v5129_v3 }
0x1976   :  { %5576 = vmatprep.mubr.f32.mxu1 %v7704_v33 }
0x1995   :  { %v4936_v59 = vpop.xlane.xlu0 %4935 }
0x1996   :  { %v4940_v24 = vsub.f32 %v4926_v14, %v4936_v59 }
0x1998   :  { %v4942_v23 = vmul.f32 1.442695, %v4940_v24 }
0x19a1   :  { %v4939_v19 = vpop.xlane.xlu1 %4938 }
0x19a2   :  { %v4941_v61 = vsub.f32 %v4931_v54, %v4939_v19 }
0x19a4   :  { %v4944_v46 = vmul.f32 1.442695, %v4941_v61 }
0x19a6   :  { %7610 = vpow2.f32 %v4944_v46 }
0x19a7   :  { %7612 = vpow2.f32 %v4942_v23 }
0x19b0   :  { %v7611_v48 = vpop.eup %7610 }
0x19b1   :  { %v4949_v9 = vsel %vm315_vm1, %v7611_v48, 0.0  ;;  %v7613_v45 = vpop.eup %7612 }
0x19b2   :  { %4950 = vadd.xlane.f32.xlu0 %v4949_v9  ;;  %v4946_v40 = vsel %vm315_vm1, %v7613_v45, 0.0 }
0x19b6   :  { %4947 = vadd.xlane.f32.xlu0 %v4946_v40 }
0x19cc   :  { %7433 = vrot.lane.b32.xlu0 %v8607_v34, %s7707_s25 }
0x19d5   :  { %v6781_v36 = vpop.f32.mrb[34].mxu0 }
0x19d6   :  { %v4276_v37 = vpop.f32.mrb[35].mxu0 }
0x19d7   :  { %v5413_v52 = vadd.f32 %v8821_v32, %v4276_v37 }
0x19d9   :  { %v8825_v4 = vadd.f32 %v5413_v52, %v8428_v27 }
0x19db   :  { %v5421_v47 = vsel %vm127_vm0, %v8825_v4, 0.0 }
0x19eb   :  { %5422 = vadd.xlane.f32.xlu0 %v5421_v47 }
0x1a3a   :  { %v6795_v12 = vpop.f32.mrb[40].mxu0 }
0x1a3b   :  { %v4470_v57 = vpop.f32.mrb[41].mxu0 }
0x1a3f   :  { %v4951_v58 = vpop.xlane.xlu0 %4950 }
0x1a43   :  { %v4948_v14 = vpop.xlane.xlu0 %4947 }
0x1a44   :  { %7614 = vrcp.f32 %v4948_v14 }
0x1a45   :  { %7616 = vrcp.f32 %v4951_v58  ;;  %v6809_v38 = vpop.f32.mrb[42].mxu0 }
0x1a46   :  { %v4672_v54 = vpop.f32.mrb[43].mxu0 }
0x1a47   :  { %v7434_v60 = vpop.permute.xlu0 %7433  ;;  %6814 = vmatprep.mubr.msk.f32.mxu0 %vm315_vm1, %v4672_v54 }
0x1a48   :  { %v7436_v17 = vunpack.i.h.bf16 %v7434_v60  ;;  %v7435_v20 = vunpack.i.l.bf16 %v7434_v60  ;;  %6815 = vmatmul.mubr.msk.f32.vlgmr.msra.gmra.mrb[44].mxu0 %vm315_vm1, %v6809_v38  ;;  %v6851_v27 = vpop.f32.mrb[52].mxu1 }
0x1a49   :  { %6821 = vmatprep.mubr.msk.f32.mxu0 %vm315_vm1, %v4470_v57  ;;  %v5208_v16 = vpop.f32.mrb[53].mxu1  ;;  %7171 = vmatpush3.bf16.msra.mxu0 %v8673_v18  ;;  %v5214_v55 = vadd.f32 %v6851_v27, %v7934_v62 }
0x1a4a   :  { %v7178_v29 = vpack.c.bf16 %v7436_v17, %v7435_v20  ;;  %v5209_v39 = vadd.f32 %v5208_v16, %v7936_v63  ;;  %v6105_v16 = vld [vmem:[%s9147_s3 + $0x88] sm:$0xff] }
0x1a4b   :  { %v5220_v2 = vsel %vm315_vm1, %v5214_v55, -inf }
0x1a4c   :  { %7179 = vmatprep.subr.bf16.mxu0 %v7178_v29  ;;  %v5217_v28 = vsel %vm315_vm1, %v5209_v39, -inf }
0x1a4d   :  { %5218 = vmax.xlane.f32.xlu1 %v5217_v28  ;;  %v6106_v28 = vld [vmem:[%s9147_s3 + $0x90] sm:$0xff] }
0x1a4e   :  { %v7615_v1 = vpop.eup %7614 }
0x1a4f   :  { %v7617_v0 = vpop.eup %7616  ;;  %v4954_v25 = vmul.f32 %v7615_v1, %v7613_v45 }
0x1a50   :  { %6822 = vmatmul.mubr.msk.f32.vlgmr.msra.gmra.mrb[44].mxu0 %vm315_vm1, %v6795_v12  ;;  %v4955_v26 = vmul.f32 %v7617_v0, %v7611_v48  ;;  %v6109_v0 = vld [vmem:[%s9147_s3 + $0xa8] sm:$0xff] }
0x1a51   :  { %7181 = vmatpush3.bf16.msra.mxu0 %v7178_v29  ;;  %5221 = vmax.xlane.f32.xlu1 %v5220_v2  ;;  %v6107_v29 = vld [vmem:[%s9147_s3 + $0x98] sm:$0xff] }
0x1a52   :  { %6835 = vmatprep.mubr.msk.f32.mxu0 %vm315_vm1, %v4954_v25  ;;  %7183 = vmatprep.subr.bf16.mxu0 %v8746_v21  ;;  %v6111_v25 = vld [vmem:[%s9147_s3 + $0xb8] sm:$0xff] }
0x1a53   :  { %v7204_v2 = vpack.c.bf16 %v6111_v25, %v6109_v0  ;;  %v6123_v0 = vld [vmem:[%s9148_s4 + $0x118] sm:$0xff] }
0x1a54   :  { %6836 = vmatmul.mubr.msk.f32.vlgmr.msra.gmra.mrb[46].mxu0 %vm315_vm1, %v4955_v26  ;;  %v6108_v26 = vld [vmem:[%s9147_s3 + $0xa0] sm:$0xff] }
0x1a55   :  { %7185 = vmatpush3.bf16.msra.mxu0 %v8746_v21  ;;  %v5414_v21 = vadd.f32 %v6781_v36, %v8821_v32 }
0x1a57   :  { %v8848_v15 = vadd.f32 %v5414_v21, %v8437_v35  ;;  %v6116_v21 = vld [vmem:[%s9147_s3 + $0xe0] sm:$0xff] }
0x1a59   :  { %v5424_v11 = vsel %vm127_vm0, %v8848_v15, 0.0 }
0x1a78   :  { %v5423_v36 = vpop.xlane.xlu0 %5422 }
0x1a79   :  { %v5433_v47 = vmul.f32 0.015625, %v5423_v36 }
0x1ada   :  { %v5219_v62 = vpop.xlane.xlu1 %5218 }
0x1adb   :  { %v5223_v63 = vsub.f32 %v5209_v39, %v5219_v62  ;;  %v7200_v39 = vpack.c.bf16 %v6107_v29, %v6105_v16  ;;  %v6110_v62 = vld [vmem:[%s9147_s3 + $0xb0] sm:$0xff]  ;;  %v6121_v16 = vld [vmem:[%s9148_s4 + $0x108] sm:$0xff] }
0x1add   :  { %v5225_v41 = vmul.f32 1.442695, %v5223_v63  ;;  %7201 = vmatprep.subr.bf16.mxu1 %v7200_v39  ;;  %v7206_v63 = vpack.c.bf16 %v6110_v62, %v6108_v26  ;;  %v6138_v39 = vld [vmem:[%s9148_s4 + $0x190] sm:$0xff]  ;;  %v6141_v26 = vld [vmem:[%s9148_s4 + $0x1a8] sm:$0xff] }
0x1ade   :  { %v5222_v18 = vpop.xlane.xlu1 %5221 }
0x1adf   :  { %v5224_v5 = vsub.f32 %v5214_v55, %v5222_v18  ;;  %v6104_v55 = vld [vmem:[%s9147_s3 + $0x80] sm:$0xff]  ;;  %v6113_v18 = vld [vmem:[%s9147_s3 + $0xc8] sm:$0xff] }
0x1ae0   :  { %v7202_v1 = vpack.c.bf16 %v6106_v28, %v6104_v55  ;;  %v6139_v55 = vld [vmem:[%s9148_s4 + $0x198] sm:$0xff] }
0x1ae1   :  { %v5227_v6 = vmul.f32 1.442695, %v5224_v5  ;;  %v6115_v5 = vld [vmem:[%s9147_s3 + $0xd8] sm:$0xff]  ;;  %v7220_v28 = vpack.c.bf16 %v6139_v55, %v6138_v39 }
0x1ae2   :  { %7203 = vmatpush1.bf16.msra.mxu1 %v7202_v1  ;;  %v6122_v1 = vld [vmem:[%s9148_s4 + $0x110] sm:$0xff] }
0x1ae3   :  { %7618 = vpow2.f32 %v5227_v6  ;;  %7205 = vmatprep.subr.bf16.mxu1 %v7204_v2  ;;  %v6112_v6 = vld [vmem:[%s9147_s3 + $0xc0] sm:$0xff]  ;;  %v7222_v25 = vpack.c.bf16 %v6123_v0, %v6122_v1 }
0x1ae4   :  { %7620 = vpow2.f32 %v5225_v41  ;;  %v7208_v41 = vpack.c.bf16 %v6115_v5, %v6113_v18  ;;  %v6140_v2 = vld [vmem:[%s9148_s4 + $0x1a0] sm:$0xff]  ;;  %v6125_v18 = vld [vmem:[%s9148_s4 + $0x128] sm:$0xff] }
0x1ae5   :  { %v7224_v62 = vpack.c.bf16 %v6141_v26, %v6140_v2 }
0x1ae6   :  { %7207 = vmatpush1.bf16.msra.mxu1 %v7206_v63  ;;  %v6124_v63 = vld [vmem:[%s9148_s4 + $0x120] sm:$0xff] }
0x1ae7   :  { %7209 = vmatprep.subr.bf16.mxu1 %v7208_v41  ;;  %v7226_v5 = vpack.c.bf16 %v6125_v18, %v6124_v63  ;;  %v6142_v41 = vld [vmem:[%s9148_s4 + $0x1b0] sm:$0xff] }
0x1aed   :  { %v7619_v44 = vpop.eup %7618 }
0x1aee   :  { %v5232_v7 = vsel %vm315_vm1, %v7619_v44, 0.0  ;;  %v7621_v13 = vpop.eup %7620 }
0x1aef   :  { %5233 = vadd.xlane.f32.xlu1 %v5232_v7  ;;  %v5229_v31 = vsel %vm315_vm1, %v7621_v13, 0.0 }
0x1af3   :  { %5230 = vadd.xlane.f32.xlu1 %v5229_v31  ;;  %v6119_v31 = vld [vmem:[%s9147_s3 + $0xf8] sm:$0xff] }
0x1b04   :  { %7438 = vrot.lane.b32.xlu1 %v8607_v34, %s7710_s27 }
0x1b27   :  { %v6837_v56 = vpop.f32.mrb[46].mxu0 }
0x1b28   :  { %5425 = vadd.xlane.f32.xlu1 %v5424_v11  ;;  %v5034_v3 = vpop.f32.mrb[47].mxu0  ;;  %v6118_v11 = vld [vmem:[%s9147_s3 + $0xf0] sm:$0xff] }
0x1b29   :  { %6842 = vmatprep.mubr.msk.f32.mxu0 %vm315_vm1, %v5034_v3  ;;  %v7214_v3 = vpack.c.bf16 %v6118_v11, %v6116_v21  ;;  %v6144_v21 = vld [vmem:[%s9148_s4 + $0x1c0] sm:$0xff] }
0x1b2a   :  { %6843 = vmatmul.mubr.msk.f32.vlgmr.msra.gmra.mrb[44].mxu0 %vm315_vm1, %v6837_v56 }
0x1b7c   :  { %v5234_v59 = vpop.xlane.xlu1 %5233 }
0x1b7d   :  { %7622 = vrcp.f32 %v5234_v59 }
0x1b80   :  { %v5231_v24 = vpop.xlane.xlu1 %5230 }
0x1b81   :  { %7624 = vrcp.f32 %v5231_v24 }
0x1b84   :  { %v7439_v34 = vpop.permute.xlu1 %7438 }
0x1b85   :  { %v7441_v19 = vunpack.i.h.bf16 %v7439_v34  ;;  %v7440_v61 = vunpack.i.l.bf16 %v7439_v34 }
0x1b87   :  { %v7192_v23 = vpack.c.bf16 %v7441_v19, %v7440_v61  ;;  %v7623_v35 = vpop.eup %7622 }
0x1b88   :  { %v5238_v9 = vmul.f32 %v7623_v35, %v7619_v44  ;;  %v6114_v44 = vld [vmem:[%s9147_s3 + $0xd0] sm:$0xff] }
0x1b89   :  { %7193 = vmatprep.subr.bf16.mxu0 %v7192_v23  ;;  %v7210_v7 = vpack.c.bf16 %v6114_v44, %v6112_v6  ;;  %v6143_v6 = vld [vmem:[%s9148_s4 + $0x1b8] sm:$0xff] }
0x1b8a   :  { %7195 = vmatpush3.bf16.msra.mxu0 %v7192_v23  ;;  %v7228_v44 = vpack.c.bf16 %v6143_v6, %v6142_v41 }
0x1b8b   :  { %v7625_v46 = vpop.eup %7624  ;;  %7197 = vmatprep.subr.bf16.mxu0 %v8758_v10  ;;  %7211 = vmatpush1.bf16.msra.mxu1 %v7210_v7  ;;  %v6126_v7 = vld [vmem:[%s9148_s4 + $0x130] sm:$0xff] }
0x1b8c   :  { %v5237_v48 = vmul.f32 %v7625_v46, %v7621_v13  ;;  %v6117_v13 = vld [vmem:[%s9147_s3 + $0xe8] sm:$0xff] }
0x1b8d   :  { %v7212_v56 = vpack.c.bf16 %v6119_v31, %v6117_v13  ;;  %v6127_v13 = vld [vmem:[%s9148_s4 + $0x138] sm:$0xff] }
0x1b8e   :  { %6856 = vmatprep.mubr.msk.f32.mxu0 %vm315_vm1, %v5237_v48  ;;  %v7230_v31 = vpack.c.bf16 %v6127_v13, %v6126_v7 }
0x1b8f   :  { %6857 = vmatmul.mubr.msk.f32.vlgmr.msra.gmra.mrb[48].mxu0 %vm315_vm1, %v5238_v9  ;;  %7213 = vmatprep.subr.bf16.mxu1 %v7212_v56  ;;  %v6145_v56 = vld [vmem:[%s9148_s4 + $0x1c8] sm:$0xff] }
0x1b90   :  { %7199 = vmatpush3.bf16.msra.mxu0 %v8758_v10  ;;  %v8866_v10 = vsub.f32 %v8825_v4, %v5433_v47  ;;  %7215 = vmatpush1.bf16.msra.mxu1 %v7214_v3  ;;  %v7232_v11 = vpack.c.bf16 %v6145_v56, %v6144_v21  ;;  %v6128_v3 = vld [vmem:[%s9148_s4 + $0x140] sm:$0xff] }
0x1bb5   :  { %v5426_v58 = vpop.xlane.xlu1 %5425 }
0x1bb6   :  { %v5434_v38 = vmul.f32 0.015625, %v5426_v58 }
0x1bb8   :  { %v8874_v17 = vsub.f32 %v8848_v15, %v5434_v38  ;;  %v8953_v38 = vrot.slane %v8816_v43, %v2628_v50  ;;  %v6136_v50 = vld [vmem:[%s9148_s4 + $0x180] sm:$0xff] }
0x1c62   :  { %v6858_v45 = vpop.f32.mrb[48].mxu0 }
0x1c63   :  { %v5317_v40 = vpop.f32.mrb[49].mxu0 }
0x1c64   :  { %6863 = vmatprep.mubr.msk.f32.mxu0 %vm315_vm1, %v5317_v40 }
0x1c65   :  { %6864 = vmatmul.mubr.msk.f32.vlgmr.msra.gmra.mrb[44].mxu0 %vm315_vm1, %v6858_v45 }
0x1d38   :  { %v6865_v37 = vpop.f32.mrb[44].mxu0 }
0x1d39   :  { %v5398_v52 = vpop.f32.mrb[45].mxu0  ;;  %v5416_v12 = vadd.f32 %v6865_v37, %v8821_v32 }
0x1d3a   :  { %v5415_v57 = vadd.f32 %v8821_v32, %v5398_v52 }
0x1d3b   :  { %v8869_v54 = vadd.f32 %v5416_v12, %v8547_v22  ;;  %v5442_v22 = vmul.f32 %v8874_v17, %v8874_v17  ;;  %v8947_v12 = vrot.slane %v8816_v43, %v2620_v42 }
0x1d3c   :  { %v8863_v14 = vadd.f32 %v5415_v57, %v8541_v8  ;;  %v5441_v8 = vmul.f32 %v8866_v10, %v8866_v10 }
0x1d3d   :  { %v5430_v32 = vsel %vm127_vm0, %v8869_v54, 0.0  ;;  %v5448_v27 = vsel %vm127_vm0, %v5442_v22, 0.0 }
0x1d3e   :  { %v5427_v60 = vsel %vm127_vm0, %v8863_v14, 0.0  ;;  %v5445_v20 = vsel %vm127_vm0, %v5441_v8, 0.0 }
0x1d3f   :  { %5428 = vadd.xlane.f32.xlu0 %v5427_v60 }
0x1d43   :  { %5431 = vadd.xlane.f32.xlu0 %v5430_v32 }
0x1d47   :  { %5446 = vadd.xlane.f32.xlu0 %v5445_v20 }
0x1d4b   :  { %5449 = vadd.xlane.f32.xlu0 %v5448_v27  ;;  %v6120_v27 = vld [vmem:[%s9148_s4 + $0x100] sm:$0xff] }
0x1d4c   :  { %v7218_v29 = vpack.c.bf16 %v6121_v16, %v6120_v27 }
0x1dcc   :  { %v5429_v59 = vpop.xlane.xlu0 %5428 }
0x1dcd   :  { %v5435_v24 = vmul.f32 0.015625, %v5429_v59  ;;  %v6129_v59 = vld [vmem:[%s9148_s4 + $0x148] sm:$0xff] }
0x1dcf   :  { %v8933_v34 = vsub.f32 %v8863_v14, %v5435_v24  ;;  %v7234_v24 = vpack.c.bf16 %v6129_v59, %v6128_v3 }
0x1dd0   :  { %v5432_v19 = vpop.xlane.xlu0 %5431 }
0x1dd1   :  { %v5436_v61 = vmul.f32 0.015625, %v5432_v19  ;;  %v5443_v23 = vmul.f32 %v8933_v34, %v8933_v34  ;;  %v6146_v19 = vld [vmem:[%s9148_s4 + $0x1d0] sm:$0xff] }
0x1dd3   :  { %v8938_v35 = vsub.f32 %v8869_v54, %v5436_v61  ;;  %v5451_v46 = vsel %vm127_vm0, %v5443_v23, 0.0  ;;  %v6147_v61 = vld [vmem:[%s9148_s4 + $0x1d8] sm:$0xff] }
0x1dd4   :  { %5452 = vadd.xlane.f32.xlu0 %v5451_v46  ;;  %v5447_v48 = vpop.xlane.xlu0 %5446  ;;  %v7236_v23 = vpack.c.bf16 %v6147_v61, %v6146_v19  ;;  %v6130_v46 = vld [vmem:[%s9148_s4 + $0x150] sm:$0xff] }
0x1dd5   :  { %v5457_v9 = vmul.f32 0.015625, %v5447_v48  ;;  %v5444_v45 = vmul.f32 %v8938_v35, %v8938_v35  ;;  %v6131_v48 = vld [vmem:[%s9148_s4 + $0x158] sm:$0xff] }
0x1dd7   :  { %v5461_v40 = vadd.f32 1e-05, %v5457_v9  ;;  %v5454_v36 = vsel %vm127_vm0, %v5444_v45, 0.0  ;;  %v7238_v9 = vpack.c.bf16 %v6131_v48, %v6130_v46  ;;  %v6148_v45 = vld [vmem:[%s9148_s4 + $0x1e0] sm:$0xff] }
0x1dd8   :  { %5455 = vadd.xlane.f32.xlu1 %v5454_v36  ;;  %v5450_v37 = vpop.xlane.xlu0 %5449 }
0x1dd9   :  { %7626 = vrsqrt.f32 %v5461_v40  ;;  %v5458_v52 = vmul.f32 0.015625, %v5450_v37  ;;  %v6149_v40 = vld [vmem:[%s9148_s4 + $0x1e8] sm:$0xff]  ;;  %v6132_v37 = vld [vmem:[%s9148_s4 + $0x160] sm:$0xff] }
0x1dda   :  { %v7240_v36 = vpack.c.bf16 %v6149_v40, %v6148_v45 }
0x1ddb   :  { %v5462_v47 = vadd.f32 1e-05, %v5458_v52  ;;  %v6133_v52 = vld [vmem:[%s9148_s4 + $0x168] sm:$0xff] }
0x1ddd   :  { %7628 = vrsqrt.f32 %v5462_v47  ;;  %v7242_v47 = vpack.c.bf16 %v6133_v52, %v6132_v37 }
0x1de3   :  { %v7627_v57 = vpop.eup %7626 }
0x1de4   :  { %v5469_v58 = vmul.f32 %v7627_v57, %v8866_v10  ;;  %v6150_v57 = vld [vmem:[%s9148_s4 + $0x1f0] sm:$0xff] }
0x1de6   :  { %v5477_v60 = vmul.f32 %v8947_v12, %v5469_v58  ;;  %v6151_v58 = vld [vmem:[%s9148_s4 + $0x1f8] sm:$0xff] }
0x1de7   :  { %v7629_v32 = vpop.eup %7628 }
0x1de8   :  { %v5485_v8 = vadd.f32 %v8953_v38, %v5477_v60  ;;  %v5470_v20 = vmul.f32 %v7629_v32, %v8874_v17  ;;  %v6137_v17 = vld [vmem:[%s9148_s4 + $0x188] sm:$0xff]  ;;  %v7244_v60 = vpack.c.bf16 %v6151_v58, %v6150_v57  ;;  %v6134_v32 = vld [vmem:[%s9148_s4 + $0x170] sm:$0xff] }
0x1de9   :  { %v7216_v22 = vpack.c.bf16 %v6137_v17, %v6136_v50 }
0x1dea   :  { %6222 = vmatmul.mubr.msk.f32.vlgmr.msra.gmra.mrb[54].mxu1 %vm127_vm0, %v5485_v8  ;;  %v5478_v42 = vmul.f32 %v8947_v12, %v5470_v20  ;;  %v6135_v8 = vld [vmem:[%s9148_s4 + $0x178] sm:$0xff] }
0x1deb   :  { %5582 = vmatprep.mubr.f32.mxu1 %v7704_v33  ;;  %7217 = vmatprep.subr.bf16.mxu0 %v7216_v22  ;;  %v7246_v20 = vpack.c.bf16 %v6135_v8, %v6134_v32 }
0x1dec   :  { %v5486_v10 = vadd.f32 %v8953_v38, %v5478_v42  ;;  %7219 = vmatpush3.bf16.msra.mxu0 %v7218_v29 }
0x1ded   :  { %7221 = vmatprep.subr.bf16.mxu0 %v7220_v28 }
0x1dee   :  { %6223 = vmatmul.mubr.msk.f32.gmra.mrb[56].mxu1 %vm127_vm0, %v5486_v10 }
0x1def   :  { %5588 = vmatprep.mubr.f32.mxu1 %v7704_v33 }
0x1df0   :  { %7223 = vmatpush3.bf16.msra.mxu0 %v7222_v25 }
0x1df1   :  { %7225 = vmatprep.subr.bf16.mxu0 %v7224_v62 }
0x1df4   :  { %7227 = vmatpush3.bf16.msra.mxu0 %v7226_v5 }
0x1df5   :  { %7229 = vmatprep.subr.bf16.mxu0 %v7228_v44 }
0x1df8   :  { %7231 = vmatpush3.bf16.msra.mxu0 %v7230_v31 }
0x1df9   :  { %7233 = vmatprep.subr.bf16.mxu0 %v7232_v11 }
0x1dfc   :  { %7235 = vmatpush3.bf16.msra.mxu0 %v7234_v24 }
0x1dfd   :  { %7237 = vmatprep.subr.bf16.mxu0 %v7236_v23 }
0x1e00   :  { %7239 = vmatpush3.bf16.msra.mxu0 %v7238_v9 }
0x1e01   :  { %7241 = vmatprep.subr.bf16.mxu0 %v7240_v36 }
0x1e04   :  { %7243 = vmatpush3.bf16.msra.mxu0 %v7242_v47 }
0x1e05   :  { %7245 = vmatprep.subr.bf16.mxu0 %v7244_v60 }
0x1e08   :  { %7247 = vmatpush3.bf16.msra.mxu0 %v7246_v20 }
0x1e61   :  { %v5453_v42 = vpop.xlane.xlu0 %5452 }
0x1e62   :  { %v5459_v10 = vmul.f32 0.015625, %v5453_v42 }
0x1e64   :  { %v5463_v50 = vadd.f32 1e-05, %v5459_v10 }
0x1e65   :  { %v5456_v17 = vpop.xlane.xlu1 %5455 }
0x1e66   :  { %7630 = vrsqrt.f32 %v5463_v50  ;;  %v5460_v22 = vmul.f32 0.015625, %v5456_v17 }
0x1e68   :  { %v5464_v27 = vadd.f32 1e-05, %v5460_v22 }
0x1e6a   :  { %7632 = vrsqrt.f32 %v5464_v27 }
0x1e70   :  { %v7631_v16 = vpop.eup %7630 }
0x1e71   :  { %v5471_v29 = vmul.f32 %v7631_v16, %v8933_v34  ;;  %v6153_v34 = vld [vmem:[%s9150_s6 + $0x2] sm:$0x3] }
0x1e72   :  { %v5493_v2 = vrot.slane %v6153_v34, %v7855_v51  ;;  %v5497_v26 = vrot.slane %v6153_v34, %v7863_v53 }
0x1e73   :  { %v5479_v39 = vmul.f32 %v8947_v12, %v5471_v29 }
0x1e74   :  { %v7633_v55 = vpop.eup %7632 }
0x1e75   :  { %v5487_v28 = vadd.f32 %v8953_v38, %v5479_v39  ;;  %v5472_v1 = vmul.f32 %v7633_v55, %v8938_v35 }
0x1e77   :  { %6224 = vmatmul.mubr.msk.f32.gmra.mrb[58].mxu1 %vm127_vm0, %v5487_v28  ;;  %v5480_v0 = vmul.f32 %v8947_v12, %v5472_v1 }
0x1e78   :  { %5594 = vmatprep.mubr.f32.mxu1 %v7704_v33 }
0x1e79   :  { %v5488_v25 = vadd.f32 %v8953_v38, %v5480_v0 }
0x1e7b   :  { %6225 = vmatmul.mubr.msk.f32.gmra.mrb[60].mxu1 %vm127_vm0, %v5488_v25 }
0x1e7c   :  { %6874 = vmatprep.mubr.msk.f32.mxu1 %vm7714_vm5, %v7704_v33 }
0x1ebd   :  { %v5578_v62 = vpop.f32.mrb[54].mxu1 }
0x1ebe   :  { %v5579_v35 = vadd.f32 %v5578_v62, %v5493_v2  ;;  %v5580_v63 = vpop.f32.mrb[55].mxu1 }
0x1ebf   :  { %v5581_v18 = vadd.f32 %v5580_v63, %v5497_v26 }
0x1ec0   :  { %v6226_v5 = vmul.f32 -1.702, %v5579_v35 }
0x1ec1   :  { %v6227_v12 = vmul.f32 -1.702, %v5581_v18  ;;  %v5584_v41 = vpop.f32.mrb[56].mxu1 }
0x1ec2   :  { %v5617_v6 = vmul.f32 1.442695, %v6226_v5  ;;  %v5585_v44 = vadd.f32 %v5584_v41, %v5493_v2  ;;  %v5586_v38 = vpop.f32.mrb[57].mxu1 }
0x1ec3   :  { %v5619_v7 = vmul.f32 1.442695, %v6227_v12  ;;  %v5587_v13 = vadd.f32 %v5586_v38, %v5497_v26 }
0x1ec4   :  { %7634 = vpow2.f32 %v5617_v6  ;;  %v6228_v31 = vmul.f32 -1.702, %v5585_v44 }
0x1ec5   :  { %7636 = vpow2.f32 %v5619_v7  ;;  %v6229_v21 = vmul.f32 -1.702, %v5587_v13 }
0x1ec6   :  { %v5621_v56 = vmul.f32 1.442695, %v6228_v31 }
0x1ec7   :  { %v5623_v11 = vmul.f32 1.442695, %v6229_v21 }
0x1ec8   :  { %7638 = vpow2.f32 %v5621_v56 }
0x1ec9   :  { %7640 = vpow2.f32 %v5623_v11 }
0x1ece   :  { %v7635_v3 = vpop.eup %7634 }
0x1ecf   :  { %v7637_v59 = vpop.eup %7636  ;;  %v5633_v24 = vadd.f32 1.0, %v7635_v3 }
0x1ed0   :  { %v5634_v19 = vadd.f32 1.0, %v7637_v59 }
0x1ed1   :  { %7642 = vrcp.f32 %v5633_v24 }
0x1ed2   :  { %v7639_v61 = vpop.eup %7638  ;;  %7644 = vrcp.f32 %v5634_v19 }
0x1ed3   :  { %v7641_v23 = vpop.eup %7640  ;;  %v5635_v46 = vadd.f32 1.0, %v7639_v61 }
0x1ed4   :  { %v5636_v48 = vadd.f32 1.0, %v7641_v23 }
0x1ed5   :  { %7646 = vrcp.f32 %v5635_v46 }
0x1ed6   :  { %7648 = vrcp.f32 %v5636_v48 }
0x1edb   :  { %v7643_v9 = vpop.eup %7642 }
0x1edc   :  { %v7645_v45 = vpop.eup %7644  ;;  %v5657_v36 = vmul.f32 %v7643_v9, %v5579_v35 }
0x1edd   :  { %v5658_v40 = vmul.f32 %v7645_v45, %v5581_v18 }
0x1edf   :  { %v7647_v37 = vpop.eup %7646  ;;  %5733 = vmatprep.mubr.f32.mxu0 %v5658_v40 }
0x1ee0   :  { %v7649_v52 = vpop.eup %7648  ;;  %5734 = vmatmul.mubr.f32.vlgmr.msra.gmra.mrb[50].mxu0 %v5657_v36  ;;  %v5659_v57 = vmul.f32 %v7647_v37, %v5585_v44 }
0x1ee1   :  { %v5660_v47 = vmul.f32 %v7649_v52, %v5587_v13  ;;  %v5668_v13 = vrot.slane %v8816_v43, %v2812_v30 }
0x1ee3   :  { %5738 = vmatprep.mubr.f32.mxu0 %v5660_v47 }
0x1ee4   :  { %5739 = vmatmul.mubr.f32.gmra.mrb[52].mxu0 %v5659_v57 }
0x1f4a   :  { %v5590_v58 = vpop.f32.mrb[58].mxu1 }
0x1f4b   :  { %v5591_v60 = vadd.f32 %v5590_v58, %v5493_v2  ;;  %v5592_v32 = vpop.f32.mrb[59].mxu1 }
0x1f4c   :  { %v5593_v8 = vadd.f32 %v5592_v32, %v5497_v26 }
0x1f4d   :  { %v6230_v20 = vmul.f32 -1.702, %v5591_v60 }
0x1f4e   :  { %v6231_v42 = vmul.f32 -1.702, %v5593_v8  ;;  %v5596_v10 = vpop.f32.mrb[60].mxu1 }
0x1f4f   :  { %v5625_v50 = vmul.f32 1.442695, %v6230_v20  ;;  %v5597_v17 = vadd.f32 %v5596_v10, %v5493_v2  ;;  %v5598_v22 = vpop.f32.mrb[61].mxu1 }
0x1f50   :  { %v5627_v27 = vmul.f32 1.442695, %v6231_v42  ;;  %v5599_v16 = vadd.f32 %v5598_v22, %v5497_v26 }
0x1f51   :  { %7650 = vpow2.f32 %v5625_v50  ;;  %v6232_v29 = vmul.f32 -1.702, %v5597_v17  ;;  %v7713_v50 = vmov 0.0|0.0  }
0x1f52   :  { %7652 = vpow2.f32 %v5627_v27  ;;  %v6233_v39 = vmul.f32 -1.702, %v5599_v16  ;;  %7248 = vmatprep.subr.bf16.mxu1 %v7713_v50 }
0x1f53   :  { %v5629_v55 = vmul.f32 1.442695, %v6232_v29 }
0x1f54   :  { %v5631_v28 = vmul.f32 1.442695, %v6233_v39 }
0x1f55   :  { %7654 = vpow2.f32 %v5629_v55 }
0x1f56   :  { %7656 = vpow2.f32 %v5631_v28 }
0x1f5b   :  { %v7651_v1 = vpop.eup %7650 }
0x1f5c   :  { %v7653_v0 = vpop.eup %7652  ;;  %v5637_v25 = vadd.f32 1.0, %v7651_v1 }
0x1f5d   :  { %v5638_v34 = vadd.f32 1.0, %v7653_v0 }
0x1f5e   :  { %7658 = vrcp.f32 %v5637_v25 }
0x1f5f   :  { %v7655_v62 = vpop.eup %7654  ;;  %7660 = vrcp.f32 %v5638_v34 }
0x1f60   :  { %v7657_v35 = vpop.eup %7656  ;;  %v5639_v2 = vadd.f32 1.0, %v7655_v62 }
0x1f61   :  { %v5640_v63 = vadd.f32 1.0, %v7657_v35 }
0x1f62   :  { %7662 = vrcp.f32 %v5639_v2 }
0x1f63   :  { %7664 = vrcp.f32 %v5640_v63  ;;  %v5758_v63 = vld [vmem:[%s9152_s8] sm:$0x3] }
0x1f68   :  { %v7659_v26 = vpop.eup %7658 }
0x1f69   :  { %v7661_v18 = vpop.eup %7660  ;;  %v5661_v12 = vmul.f32 %v7659_v26, %v5591_v60 }
0x1f6a   :  { %v5662_v5 = vmul.f32 %v7661_v18, %v5593_v8 }
0x1f6c   :  { %v7663_v41 = vpop.eup %7662  ;;  %5743 = vmatprep.mubr.f32.mxu0 %v5662_v5  ;;  %v5814_v5 = vrot.slane %v5758_v63, %v7855_v51 }
0x1f6d   :  { %v7665_v6 = vpop.eup %7664  ;;  %5744 = vmatmul.mubr.f32.gmra.mrb[54].mxu0 %v5661_v12  ;;  %v5663_v38 = vmul.f32 %v7663_v41, %v5597_v17 }
0x1f6e   :  { %v5664_v44 = vmul.f32 %v7665_v6, %v5599_v16 }
0x1f70   :  { %5748 = vmatprep.mubr.f32.mxu0 %v5664_v44  ;;  %v5822_v44 = vrot.slane %v5758_v63, %v7863_v53 }
0x1f71   :  { %5749 = vmatmul.mubr.f32.gmra.mrb[56].mxu0 %v5663_v38 }
0x1fb3   :  { %v6504_v7 = vpop.f32.mrb[50].mxu0 }
0x1fb4   :  { %v6505_v31 = vpop.f32.mrb[51].mxu0 }
0x1fb5   :  { %v6506_v21 = vadd.f32 %v6505_v31, %v6504_v7 }
0x1fb7   :  { %v5736_v56 = vadd.f32 %v6506_v21, %v5668_v13  ;;  %v6507_v11 = vpop.f32.mrb[52].mxu0 }
0x1fb8   :  { %v6508_v3 = vpop.f32.mrb[53].mxu0 }
0x1fb9   :  { %v6509_v59 = vadd.f32 %v6508_v3, %v6507_v11  ;;  %v5754_v24 = vadd.f32 %v5736_v56, %v8825_v4 }
0x1fbb   :  { %v5741_v19 = vadd.f32 %v6509_v59, %v5668_v13  ;;  %v5759_v61 = vsel %vm127_vm0, %v5754_v24, 0.0 }
0x1fbc   :  { %5760 = vadd.xlane.f32.xlu0 %v5759_v61 }
0x1fbd   :  { %v5755_v23 = vadd.f32 %v5741_v19, %v8848_v15 }
0x1fbf   :  { %v5762_v46 = vsel %vm127_vm0, %v5755_v23, 0.0 }
0x1fc0   :  { %5763 = vadd.xlane.f32.xlu1 %v5762_v46 }
0x2040   :  { %v6510_v49 = vpop.f32.mrb[54].mxu0 }
0x2041   :  { %v6511_v48 = vpop.f32.mrb[55].mxu0 }
0x2042   :  { %v6512_v30 = vadd.f32 %v6511_v48, %v6510_v49 }
0x2044   :  { %v5746_v43 = vadd.f32 %v6512_v30, %v5668_v13  ;;  %v6513_v9 = vpop.f32.mrb[56].mxu0  ;;  %v5902_v30 = vld [vmem:[%s9154_s10] sm:$0xff] }
0x2045   :  { %v6514_v45 = vpop.f32.mrb[57].mxu0 }
0x2046   :  { %v6515_v40 = vadd.f32 %v6514_v45, %v6513_v9  ;;  %v5756_v36 = vadd.f32 %v5746_v43, %v8863_v14  ;;  %v5903_v43 = vld [vmem:[%s9154_s10 + $0x8] sm:$0xff]  ;;  %v5827_v45 = vld [vmem:[%s9153_s9] sm:$0x3] }
0x2048   :  { %v5751_v37 = vadd.f32 %v6515_v40, %v5668_v13  ;;  %v5765_v4 = vsel %vm127_vm0, %v5756_v36, 0.0  ;;  %v7255_v40 = vpack.c.bf16 %v5903_v43, %v5902_v30 }
0x2049   :  { %5766 = vadd.xlane.f32.xlu0 %v5765_v4  ;;  %v5761_v52 = vpop.xlane.xlu0 %5760 }
0x204a   :  { %v5771_v47 = vmul.f32 0.015625, %v5761_v52  ;;  %v5757_v15 = vadd.f32 %v5751_v37, %v8869_v54  ;;  %v5905_v37 = vld [vmem:[%s9154_s10 + $0x18] sm:$0xff]  ;;  %v5906_v52 = vld [vmem:[%s9154_s10 + $0x20] sm:$0xff] }
0x204c   :  { %v5775_v57 = vsub.f32 %v5754_v24, %v5771_v47  ;;  %v5768_v58 = vsel %vm127_vm0, %v5757_v15, 0.0  ;;  %v5907_v47 = vld [vmem:[%s9154_s10 + $0x28] sm:$0xff] }
0x204d   :  { %v5764_v60 = vpop.xlane.xlu1 %5763  ;;  %5769 = vadd.xlane.f32.xlu1 %v5768_v58 }
0x204e   :  { %v5772_v32 = vmul.f32 0.015625, %v5764_v60  ;;  %v5779_v8 = vmul.f32 %v5775_v57, %v5775_v57 }
0x2050   :  { %v5776_v20 = vsub.f32 %v5755_v23, %v5772_v32  ;;  %v5783_v42 = vsel %vm127_vm0, %v5779_v8, 0.0 }
0x2051   :  { %5784 = vadd.xlane.f32.xlu0 %v5783_v42 }
0x2052   :  { %v5780_v14 = vmul.f32 %v5776_v20, %v5776_v20 }
0x2054   :  { %v5786_v10 = vsel %vm127_vm0, %v5780_v14, 0.0 }
0x2055   :  { %5787 = vadd.xlane.f32.xlu1 %v5786_v10 }
0x20d6   :  { %v5767_v17 = vpop.xlane.xlu0 %5766 }
0x20d7   :  { %v5773_v54 = vmul.f32 0.015625, %v5767_v17 }
0x20d9   :  { %v5777_v22 = vsub.f32 %v5756_v36, %v5773_v54  ;;  %v5904_v36 = vld [vmem:[%s9154_s10 + $0x10] sm:$0xff] }
0x20da   :  { %v5770_v27 = vpop.xlane.xlu1 %5769  ;;  %v7258_v4 = vpack.c.bf16 %v5905_v37, %v5904_v36 }
0x20db   :  { %v5774_v16 = vmul.f32 0.015625, %v5770_v27  ;;  %v5781_v29 = vmul.f32 %v5777_v22, %v5777_v22 }
0x20dd   :  { %v5778_v39 = vsub.f32 %v5757_v15, %v5774_v16  ;;  %v5789_v55 = vsel %vm127_vm0, %v5781_v29, 0.0  ;;  %v7261_v15 = vpack.c.bf16 %v5907_v47, %v5906_v52 }
0x20de   :  { %5790 = vadd.xlane.f32.xlu0 %v5789_v55  ;;  %v5785_v28 = vpop.xlane.xlu0 %5784 }
0x20df   :  { %v5795_v1 = vmul.f32 0.015625, %v5785_v28  ;;  %v5782_v0 = vmul.f32 %v5778_v39, %v5778_v39 }
0x20e1   :  { %v5799_v25 = vadd.f32 1e-05, %v5795_v1  ;;  %v5792_v34 = vsel %vm127_vm0, %v5782_v0, 0.0 }
0x20e2   :  { %5793 = vadd.xlane.f32.xlu1 %v5792_v34  ;;  %v5788_v62 = vpop.xlane.xlu1 %5787 }
0x20e3   :  { %7666 = vrsqrt.f32 %v5799_v25  ;;  %v5796_v35 = vmul.f32 0.015625, %v5788_v62 }
0x20e5   :  { %v5800_v2 = vadd.f32 1e-05, %v5796_v35 }
0x20e7   :  { %7668 = vrsqrt.f32 %v5800_v2 }
0x20ed   :  { %v7667_v26 = vpop.eup %7666 }
0x20ee   :  { %v5807_v18 = vmul.f32 %v7667_v26, %v5775_v57  ;;  %v5908_v57 = vld [vmem:[%s9154_s10 + $0x30] sm:$0xff] }
0x20f0   :  { %v5815_v6 = vmul.f32 %v5814_v5, %v5807_v18 }
0x20f1   :  { %v7669_v12 = vpop.eup %7668 }
0x20f2   :  { %v5808_v41 = vmul.f32 %v7669_v12, %v5776_v20  ;;  %v5823_v7 = vadd.f32 %v5822_v44, %v5815_v6 }
0x20f4   :  { %v5816_v38 = vmul.f32 %v5814_v5, %v5808_v41 }
0x20f6   :  { %v5824_v13 = vadd.f32 %v5822_v44, %v5816_v38 }
0x20f8   :  { %v7249_v31 = vpack.c.bf16 %v5824_v13, %v5823_v7 }
0x20fa   :  { %7250 = vmatpush3.bf16.msra.mxu1 %v7249_v31 }
0x20fb   :  { %7251 = vmatprep.subr.bf16.mxu1 %v7713_v50 }
0x216b   :  { %v5791_v21 = vpop.xlane.xlu0 %5790 }
0x216c   :  { %v5797_v56 = vmul.f32 0.015625, %v5791_v21 }
0x216e   :  { %v5801_v11 = vadd.f32 1e-05, %v5797_v56 }
0x216f   :  { %v5794_v51 = vpop.xlane.xlu1 %5793 }
0x2170   :  { %7670 = vrsqrt.f32 %v5801_v11  ;;  %v5798_v3 = vmul.f32 0.015625, %v5794_v51 }
0x2172   :  { %v5802_v59 = vadd.f32 1e-05, %v5798_v3 }
0x2174   :  { %7672 = vrsqrt.f32 %v5802_v59 }
0x217a   :  { %v7671_v53 = vpop.eup %7670 }
0x217b   :  { %v5809_v24 = vmul.f32 %v7671_v53, %v5777_v22 }
0x217d   :  { %v5817_v23 = vmul.f32 %v5814_v5, %v5809_v24 }
0x217e   :  { %v7673_v19 = vpop.eup %7672 }
0x217f   :  { %v5810_v61 = vmul.f32 %v7673_v19, %v5778_v39  ;;  %v5825_v49 = vadd.f32 %v5822_v44, %v5817_v23 }
0x2181   :  { %v5818_v46 = vmul.f32 %v5814_v5, %v5810_v61 }
0x2183   :  { %v5826_v48 = vadd.f32 %v5822_v44, %v5818_v46 }
0x2185   :  { %v7252_v9 = vpack.c.bf16 %v5826_v48, %v5825_v49 }
0x2187   :  { %7253 = vmatpush3.bf16.msra.mxu1 %v7252_v9 }
0x2188   :  { %7254 = vmatprep.subr.bf16.mxu1 %v7713_v50 }
0x218a   :  { %6875 = vmatmul.mubr.msk.f32.vlgmr.msra.gmra.mrb[62].mxu1 %vm5828_vm6, %v5827_v45 }
0x218b   :  { %7256 = vmatpush3.bf16.msra.mxu1 %v7255_v40  ;;  %6893 = vmatprep.mubr.msk.f32.mxu1 %vm7714_vm5, %v7704_v33  ;;  %v5909_v33 = vld [vmem:[%s9154_s10 + $0x38] sm:$0xff] }
0x218c   :  { %7257 = vmatprep.subr.bf16.mxu1 %v7713_v50  ;;  %v7264_v58 = vpack.c.bf16 %v5909_v33, %v5908_v57 }
0x218f   :  { %7259 = vmatpush3.bf16.msra.mxu1 %v7258_v4 }
0x2190   :  { %7260 = vmatprep.subr.bf16.mxu1 %v7713_v50 }
0x2193   :  { %7262 = vmatpush3.bf16.msra.mxu1 %v7261_v15 }
0x2194   :  { %7263 = vmatprep.subr.bf16.mxu1 %v7713_v50 }
0x2197   :  { %7265 = vmatpush3.bf16.msra.mxu1 %v7264_v58 }
0x225d   :  { %v5898_v60 = vpop.f32.mrb[62].mxu1 }
0x225e   :  { %v6876_v32 = vpop.f32.mrb[63].mxu1  ;;  %6894 = vmatmul.mubr.msk.f32.vlgmr.msra.gmra.mrb[64].mxu1 %vm127_vm0, %v5898_v60 }
0x2331   :  { %v5979_v8 = vpop.f32.mrb[64].mxu1 }
0x2332   :  { %5984 = vst.msk [vmem:[#allocation2] sm:$0x3] %vm5983_vm7, %v5979_v8  ;;  %v6895_v20 = vpop.f32.mrb[65].mxu1 }
0x2333   :  { %7691 = shalt.err (!%p7688_p4)
}
0x2334   :  { %s7692_s18 = scalar_lea.hbm %s9155_s11, 32 }
0x2335   :  { %p7693_p5 = scmp.ne.s32.totalorder %s9155_s11, %s7692_s18  ;;  %p7696_p6 = scmp.lt.u32.totalorder %s7692_s18, %s9155_s11 }
0x2337   :  { %p7698_p7 = pnand %p7696_p6, %p7693_p5 }
0x2339   :  { %7701 = shalt.err (!%p7698_p7)
}
0x233a   :  { %5994 = dma.vmem_to_hbm [thread:$0]  %s5992_s24, 32, %s9155_s11, [#allocation3]  }
0x233b   :  { %7702 = dma.done.wait [#allocation3], 32  }
0x233c   :  { %7703 = vsyncadd [#allocation3], 4294967264 }
0x233d   :  { %5998 = vsyncpa [#allocation3], 1 }

</bundles_post_ra>
